<compile_context>
chip_gen: v7x
topology: tpu7x:2x2x1
jax: 0.10.0
libtpu: 0.0.40
codegen_flags: <defaults>
</compile_context>

<pallas_src>
import math
from functools import partial

import jax
import jax.numpy as jnp
from jax import lax
from jax.experimental import pallas as pl
from jax.experimental.pallas import tpu as pltpu


# ----------------------------------------------------------------------------
# Pallas kernel: fused  out = relu?((X @ W) + bias (+ residual))
#   X, W, residual: bf16   accumulation: f32 (VMEM scratch)   out: bf16
# ----------------------------------------------------------------------------
def _fused_mm_kernel(*refs, relu, has_res):
    if has_res:
        x_ref, w_ref, b_ref, r_ref, o_ref, acc_ref = refs
    else:
        x_ref, w_ref, b_ref, o_ref, acc_ref = refs
        r_ref = None
    k = pl.program_id(2)

    @pl.when(k == 0)
    def _():
        acc_ref[...] = jnp.zeros_like(acc_ref)

    acc_ref[...] += jnp.dot(x_ref[...], w_ref[...],
                            preferred_element_type=jnp.float32)

    @pl.when(k == pl.num_programs(2) - 1)
    def _():
        out = acc_ref[...] + b_ref[...]
        if has_res:
            out = out + r_ref[...].astype(jnp.float32)
        if relu:
            out = jnp.maximum(out, 0.0)
        o_ref[...] = out.astype(o_ref.dtype)


def _round_up(x, m):
    return (x + m - 1) // m * m


def _pad2d(a, m_mult, n_mult):
    M, N = a.shape
    Mp, Np = _round_up(M, m_mult), _round_up(N, n_mult)
    if (Mp, Np) == (M, N):
        return a
    return jnp.pad(a, ((0, Mp - M), (0, Np - N)))


def fused_matmul(x, w, bias, residual=None, relu=False,
                 tm=256, tn=256, tk=512, out_dtype=jnp.bfloat16):
    """x:(M,K) @ w:(K,N) + bias (per output channel), optional residual add
    and ReLU, fused in the Pallas epilogue.  bf16 operands, f32 accumulation."""
    M, K = x.shape
    K2, N = w.shape
    assert K == K2
    # Clamp tiles to the (aligned) problem size: no 128x padding of tiny dims,
    # but keep bf16 sublane (16) / lane (128) alignment.
    tm = min(tm, _round_up(M, 16))
    tn = min(tn, _round_up(N, 128))
    tk = min(tk, _round_up(K, 128))

    xp = _pad2d(x.astype(jnp.bfloat16), tm, tk)
    wp = _pad2d(w.astype(jnp.bfloat16), tk, tn)
    bp = _pad2d(bias.astype(jnp.float32).reshape(1, N), 1, tn)
    Mp, Kp = xp.shape
    Np = wp.shape[1]

    args = [xp, wp, bp]
    in_specs = [
        pl.BlockSpec((tm, tk), lambda i, j, k: (i, k)),
        pl.BlockSpec((tk, tn), lambda i, j, k: (k, j)),
        pl.BlockSpec((1, tn), lambda i, j, k: (0, j)),
    ]
    has_res = residual is not None
    if has_res:
        rp = _pad2d(residual.astype(jnp.bfloat16), tm, tn)
        args.append(rp)
        in_specs.append(pl.BlockSpec((tm, tn), lambda i, j, k: (i, j)))

    out = pl.pallas_call(
        partial(_fused_mm_kernel, relu=relu, has_res=has_res),
        out_shape=jax.ShapeDtypeStruct((Mp, Np), out_dtype),
        grid_spec=pltpu.PrefetchScalarGridSpec(
            num_scalar_prefetch=0,
            grid=(Mp // tm, Np // tn, Kp // tk),
            in_specs=in_specs,
            out_specs=pl.BlockSpec((tm, tn), lambda i, j, k: (i, j)),
            scratch_shapes=[pltpu.VMEM((tm, tn), jnp.float32)]),
        compiler_params=pltpu.CompilerParams(
            dimension_semantics=("parallel", "parallel", "arbitrary")),
    )(*args)
    return out[:M, :N]


# ----------------------------------------------------------------------------
# Convolutions on top of the fused Pallas matmul (im2col in bf16 as JAX glue)
# ----------------------------------------------------------------------------
def conv3d_bn_act(x, w, bias, stride, pad=1, residual=None, relu=True):
    """x:(N,D,H,W,Cin) channels-last, w:(3,3,3,Cin,Cout) with BN scale folded,
    bias = folded BN bias.  Optional fused residual add and ReLU."""
    N, D, H, W, Cin = x.shape
    kd, kh, kw, _, Cout = w.shape
    s = stride
    Do = (D + 2 * pad - kd) // s + 1
    Ho = (H + 2 * pad - kh) // s + 1
    Wo = (W + 2 * pad - kw) // s + 1
    xb = x.astype(jnp.bfloat16)                       # bf16 im2col (half traffic)
    xp = jnp.pad(xb, ((0, 0), (pad, pad), (pad, pad), (pad, pad), (0, 0)))
    cols = []
    for a in range(kd):
        for b in range(kh):
            for c in range(kw):
                cols.append(xp[:, a:a + (Do - 1) * s + 1:s,
                               b:b + (Ho - 1) * s + 1:s,
                               c:c + (Wo - 1) * s + 1:s, :])
    im = jnp.concatenate(cols, axis=-1).reshape(N * Do * Ho * Wo,
                                                kd * kh * kw * Cin)
    res2d = None if residual is None else residual.reshape(N * Do * Ho * Wo, Cout)
    out = fused_matmul(im, w.reshape(kd * kh * kw * Cin, Cout), bias,
                       residual=res2d, relu=relu)
    return out.reshape(N, Do, Ho, Wo, Cout)


def conv1x1x1_bn(x, w, bias, stride):
    """Downsample shortcut: Conv3d(kernel=1, stride) + BN (folded)."""
    xs = x[:, ::stride, ::stride, ::stride, :]
    N, Do, Ho, Wo, Cin = xs.shape
    out = fused_matmul(xs.reshape(-1, Cin), w, bias, relu=False)
    return out.reshape(N, Do, Ho, Wo, -1)


# ----------------------------------------------------------------------------
# Parameters (BN folded into weights/bias at build time)
# ----------------------------------------------------------------------------
EPS = 1e-5


def _fold_bn(w, gamma, beta, mean, var, eps=EPS):
    scale = gamma / jnp.sqrt(var + eps)               # (Cout,)
    return w * scale, beta - mean * scale


def build_basic_block_params(key, inplanes, planes, has_downsample):
    ks = jax.random.split(key, 12)

    def he(k, shape, fan_in):
        return jax.random.normal(k, shape, jnp.float32) * math.sqrt(2.0 / fan_in)

    def bn(k, c):
        k1, k2, k3, k4 = jax.random.split(k, 4)
        gamma = 1.0 + 0.2 * jax.random.normal(k1, (c,), jnp.float32)
        beta = 0.1 * jax.random.normal(k2, (c,), jnp.float32)
        mean = 0.1 * jax.random.normal(k3, (c,), jnp.float32)
        var = jax.random.uniform(k4, (c,), jnp.float32, minval=0.5, maxval=1.5)
        return gamma, beta, mean, var

    p = {}
    w1 = he(ks[0], (3, 3, 3, inplanes, planes), 27 * inplanes)
    p['w1'], p['b1'] = _fold_bn(w1, *bn(ks[1], planes))
    w2 = he(ks[2], (3, 3, 3, planes, planes), 27 * planes)
    p['w2'], p['b2'] = _fold_bn(w2, *bn(ks[3], planes))
    if has_downsample:
        wd = he(ks[4], (inplanes, planes), inplanes)
        p['ds_w'], p['ds_b'] = _fold_bn(wd, *bn(ks[5], planes))
    return p


# ----------------------------------------------------------------------------
# BasicBlock forward (mirrors the PyTorch module, eval mode)
# ----------------------------------------------------------------------------
def basic_block_forward(x_ncdhw, params, stride, has_downsample):
    x = jnp.transpose(x_ncdhw, (0, 2, 3, 4, 1))       # channels-last
    if has_downsample:
        residual = conv1x1x1_bn(x, params['ds_w'], params['ds_b'], stride)
    else:
        residual = x.astype(jnp.bfloat16)
    out = conv3d_bn_act(x, params['w1'], params['b1'], stride, relu=True)
    out = conv3d_bn_act(out, params['w2'], params['b2'], 1,
                        residual=residual, relu=True)
    return jnp.transpose(out, (0, 4, 1, 2, 3))        # back to NCDHW


# ----------------------------------------------------------------------------
# Pure-JAX reference (same bf16 input/activation quantization, f32 accum)
# ----------------------------------------------------------------------------
def reference_forward(x, p, stride, has_downsample):
    q = lambda a: a.astype(jnp.bfloat16).astype(jnp.float32)

    def conv(xx, w, s, pad):
        w_oi = jnp.transpose(q(w), (4, 3, 0, 1, 2))   # OIDHW
        return lax.conv_general_dilated(
            q(xx), w_oi, (s, s, s), [(pad, pad)] * 3,
            dimension_numbers=('NCDHW', 'OIDHW', 'NCDHW'),
            precision=lax.Precision.HIGHEST,
            preferred_element_type=jnp.float32)

    def bias(v):
        return v.astype(jnp.float32)[None, :, None, None, None]

    h = q(jnp.maximum(conv(x, p['w1'], stride, 1) + bias(p['b1']), 0.0))
    o = conv(h, p['w2'], 1, 1) + bias(p['b2'])
    if has_downsample:
        wd = p['ds_w'][None, None, None]              # (1,1,1,Cin,Cout)
        res = q(conv(x, wd, stride, 0) + bias(p['ds_b']))
    else:
        res = q(x)
    return jnp.maximum(o + res, 0.0)


# ----------------------------------------------------------------------------
if __name__ == "__main__":
    key = jax.random.PRNGKey(0)
    kx, kp1, kp2 = jax.random.split(key, 3)

    B, D, H, W = 2, 8, 16, 16

    # --- Config A: identity shortcut (stride=1, inplanes == planes) ---------
    C = 32
    x = jax.random.normal(kx, (B, C, D, H, W), jnp.float32)
    pA = build_basic_block_params(kp1, C, C, has_downsample=False)
    fwdA = jax.jit(lambda xx, pp: basic_block_forward(xx, pp, stride=1,
                                                      has_downsample=False))
    outA = jax.block_until_ready(fwdA(x, pA))
    assert outA.shape == (B, C, D, H, W), outA.shape
    refA = reference_forward(x, pA, 1, False)
    errA = float(jnp.max(jnp.abs(outA.astype(jnp.float32) - refA)) /
                 (jnp.max(jnp.abs(refA)) + 1e-6))
    assert bool(jnp.all(jnp.isfinite(outA)))
    assert errA < 3e-2, errA

    # --- Config B: stride-2 block with conv1x1+BN downsample shortcut -------
    Cin, Cout, S = 16, 32, 2
    x2 = jax.random.normal(kx, (B, Cin, D, H, W), jnp.float32)
    pB = build_basic_block_params(kp2, Cin, Cout, has_downsample=True)
    fwdB = jax.jit(lambda xx, pp: basic_block_forward(xx, pp, stride=S,
                                                      has_downsample=True))
    outB = jax.block_until_ready(fwdB(x2, pB))
    assert outB.shape == (B, Cout, D // 2, H // 2, W // 2), outB.shape
    refB = reference_forward(x2, pB, S, True)
    errB = float(jnp.max(jnp.abs(outB.astype(jnp.float32) - refB)) /
                 (jnp.max(jnp.abs(refB)) + 1e-6))
    assert bool(jnp.all(jnp.isfinite(outB)))
    assert errB < 3e-2, errB

    print("KERNEL_OK")
</pallas_src>

<mosaic_0001>
module attributes {stable_mosaic.version = 11 : i64} {
  func.func @_fused_mm_kernel(%arg0: i32, %arg1: i32, %arg2: i32, %arg3: memref<256x512xbf16, #tpu.memory_space<vmem>>, %arg4: memref<512x128xbf16, #tpu.memory_space<vmem>>, %arg5: memref<1x128xf32, #tpu.memory_space<vmem>>, %arg6: memref<256x128xbf16, #tpu.memory_space<vmem>>, %arg7: memref<256x128xf32, #tpu.memory_space<vmem>>) attributes {dimension_semantics = [#tpu.dimension_semantics<parallel>, #tpu.dimension_semantics<parallel>, #tpu.dimension_semantics<arbitrary>], iteration_bounds = array<i64: 16, 1, 2>, scalar_prefetch = 0 : i64, scratch_operands = 1 : i64, tpu.core_type = #tpu.core_type<tc>, window_params = [{transform_indices = @transform_0, window_bounds = array<i64: 256, 512>}, {transform_indices = @transform_1, window_bounds = array<i64: 512, 128>}, {transform_indices = @transform_2, window_bounds = array<i64: 1, 128>}, {transform_indices = @transform_3, window_bounds = array<i64: 256, 128>}]} {
    %c0_i32 = arith.constant 0 : i32
    %0 = arith.cmpi eq, %arg2, %c0_i32 : i32
    %1 = arith.extui %0 : i1 to i32
    %c0_i32_0 = arith.constant 0 : i32
    %2 = arith.cmpi ne, %1, %c0_i32_0 : i32
    scf.if %2 {
      %cst_9 = arith.constant 0.000000e+00 : f32
      %12 = vector.broadcast %cst_9 : f32 to vector<256x128xf32>
      %c0_10 = arith.constant 0 : index
      %c0_11 = arith.constant 0 : index
      %13 = vector.load %arg7[%c0_10, %c0_11] : memref<256x128xf32, #tpu.memory_space<vmem>>, vector<256x128xf32>
      tpu.vector_store %arg7[%c0_10, %c0_11], %12 {strides = array<i32>} : memref<256x128xf32, #tpu.memory_space<vmem>>, vector<256x128xf32>,
    } else {
    }
    %c0 = arith.constant 0 : index
    %c0_1 = arith.constant 0 : index
    %3 = vector.load %arg7[%c0, %c0_1] : memref<256x128xf32, #tpu.memory_space<vmem>>, vector<256x128xf32>
    %c0_2 = arith.constant 0 : index
    %c0_3 = arith.constant 0 : index
    %4 = vector.load %arg3[%c0_2, %c0_3] : memref<256x512xbf16, #tpu.memory_space<vmem>>, vector<256x512xbf16>
    %c0_4 = arith.constant 0 : index
    %c0_5 = arith.constant 0 : index
    %5 = vector.load %arg4[%c0_4, %c0_5] : memref<512x128xbf16, #tpu.memory_space<vmem>>, vector<512x128xbf16>
    %cst = arith.constant dense<0.000000e+00> : vector<256x128xf32>
    %6 = tpu.matmul %4, %5, %cst {dimension_numbers = #tpu.dot_dimension_numbers<[1], [0], [0], [1], [0, 0, 1, 1], [], []>} : vector<256x512xbf16>, vector<512x128xbf16>, vector<256x128xf32> -> vector<256x128xf32>
    %7 = arith.addf %3, %6 : vector<256x128xf32>
    %c0_6 = arith.constant 0 : index
    %c0_7 = arith.constant 0 : index
    %8 = vector.load %arg7[%c0_6, %c0_7] : memref<256x128xf32, #tpu.memory_space<vmem>>, vector<256x128xf32>
    tpu.vector_store %arg7[%c0_6, %c0_7], %7 {strides = array<i32>} : memref<256x128xf32, #tpu.memory_space<vmem>>, vector<256x128xf32>,
    %c1_i32 = arith.constant 1 : i32
    %9 = arith.cmpi eq, %arg2, %c1_i32 : i32
    %10 = arith.extui %9 : i1 to i32
    %c0_i32_8 = arith.constant 0 : i32
    %11 = arith.cmpi ne, %10, %c0_i32_8 : i32
    scf.if %11 {
      %c0_9 = arith.constant 0 : index
      %c0_10 = arith.constant 0 : index
      %12 = vector.load %arg7[%c0_9, %c0_10] : memref<256x128xf32, #tpu.memory_space<vmem>>, vector<256x128xf32>
      %c0_11 = arith.constant 0 : index
      %c0_12 = arith.constant 0 : index
      %13 = vector.load %arg5[%c0_11, %c0_12] : memref<1x128xf32, #tpu.memory_space<vmem>>, vector<1x128xf32>
      %14 = vector.broadcast %13 : vector<1x128xf32> to vector<256x128xf32>
      %15 = arith.addf %12, %14 : vector<256x128xf32>
      %cst_13 = arith.constant 0.000000e+00 : f32
      %16 = vector.broadcast %cst_13 : f32 to vector<256x128xf32>
      %17 = arith.maximumf %15, %16 : vector<256x128xf32>
      %18 = arith.truncf %17 : vector<256x128xf32> to vector<256x128xbf16>
      %c0_14 = arith.constant 0 : index
      %c0_15 = arith.constant 0 : index
      %19 = vector.load %arg6[%c0_14, %c0_15] : memref<256x128xbf16, #tpu.memory_space<vmem>>, vector<256x128xbf16>
      tpu.vector_store %arg6[%c0_14, %c0_15], %18 {strides = array<i32>} : memref<256x128xbf16, #tpu.memory_space<vmem>>, vector<256x128xbf16>,
    } else {
    }
    return
  }
  func.func @transform_0(%arg0: i32, %arg1: i32, %arg2: i32) -> (i32, i32) {
    %c0_i32 = arith.constant 0 : i32
    return %arg0, %arg2 : i32, i32
  }
  func.func @transform_1(%arg0: i32, %arg1: i32, %arg2: i32) -> (i32, i32) {
    %c0_i32 = arith.constant 0 : i32
    return %arg2, %arg1 : i32, i32
  }
  func.func @transform_2(%arg0: i32, %arg1: i32, %arg2: i32) -> (i32, i32) {
    %c0_i32 = arith.constant 0 : i32
    %c0_i32_0 = arith.constant 0 : i32
    return %c0_i32, %arg1 : i32, i32
  }
  func.func @transform_3(%arg0: i32, %arg1: i32, %arg2: i32) -> (i32, i32) {
    %c0_i32 = arith.constant 0 : i32
    return %arg0, %arg1 : i32, i32
  }
}

module attributes {stable_mosaic.version = 11 : i64} {
  func.func @_fused_mm_kernel(%arg0: i32, %arg1: i32, %arg2: i32, %arg3: memref<256x512xbf16, #tpu.memory_space<vmem>>, %arg4: memref<512x128xbf16, #tpu.memory_space<vmem>>, %arg5: memref<1x128xf32, #tpu.memory_space<vmem>>, %arg6: memref<256x128xbf16, #tpu.memory_space<vmem>>, %arg7: memref<256x128xbf16, #tpu.memory_space<vmem>>, %arg8: memref<256x128xf32, #tpu.memory_space<vmem>>) attributes {dimension_semantics = [#tpu.dimension_semantics<parallel>, #tpu.dimension_semantics<parallel>, #tpu.dimension_semantics<arbitrary>], iteration_bounds = array<i64: 16, 1, 2>, scalar_prefetch = 0 : i64, scratch_operands = 1 : i64, tpu.core_type = #tpu.core_type<tc>, window_params = [{transform_indices = @transform_0, window_bounds = array<i64: 256, 512>}, {transform_indices = @transform_1, window_bounds = array<i64: 512, 128>}, {transform_indices = @transform_2, window_bounds = array<i64: 1, 128>}, {transform_indices = @transform_3, window_bounds = array<i64: 256, 128>}, {transform_indices = @transform_4, window_bounds = array<i64: 256, 128>}]} {
    %c0_i32 = arith.constant 0 : i32
    %0 = arith.cmpi eq, %arg2, %c0_i32 : i32
    %1 = arith.extui %0 : i1 to i32
    %c0_i32_0 = arith.constant 0 : i32
    %2 = arith.cmpi ne, %1, %c0_i32_0 : i32
    scf.if %2 {
      %cst_9 = arith.constant 0.000000e+00 : f32
      %12 = vector.broadcast %cst_9 : f32 to vector<256x128xf32>
      %c0_10 = arith.constant 0 : index
      %c0_11 = arith.constant 0 : index
      %13 = vector.load %arg8[%c0_10, %c0_11] : memref<256x128xf32, #tpu.memory_space<vmem>>, vector<256x128xf32>
      tpu.vector_store %arg8[%c0_10, %c0_11], %12 {strides = array<i32>} : memref<256x128xf32, #tpu.memory_space<vmem>>, vector<256x128xf32>,
    } else {
    }
    %c0 = arith.constant 0 : index
    %c0_1 = arith.constant 0 : index
    %3 = vector.load %arg8[%c0, %c0_1] : memref<256x128xf32, #tpu.memory_space<vmem>>, vector<256x128xf32>
    %c0_2 = arith.constant 0 : index
    %c0_3 = arith.constant 0 : index
    %4 = vector.load %arg3[%c0_2, %c0_3] : memref<256x512xbf16, #tpu.memory_space<vmem>>, vector<256x512xbf16>
    %c0_4 = arith.constant 0 : index
    %c0_5 = arith.constant 0 : index
    %5 = vector.load %arg4[%c0_4, %c0_5] : memref<512x128xbf16, #tpu.memory_space<vmem>>, vector<512x128xbf16>
    %cst = arith.constant dense<0.000000e+00> : vector<256x128xf32>
    %6 = tpu.matmul %4, %5, %cst {dimension_numbers = #tpu.dot_dimension_numbers<[1], [0], [0], [1], [0, 0, 1, 1], [], []>} : vector<256x512xbf16>, vector<512x128xbf16>, vector<256x128xf32> -> vector<256x128xf32>
    %7 = arith.addf %3, %6 : vector<256x128xf32>
    %c0_6 = arith.constant 0 : index
    %c0_7 = arith.constant 0 : index
    %8 = vector.load %arg8[%c0_6, %c0_7] : memref<256x128xf32, #tpu.memory_space<vmem>>, vector<256x128xf32>
    tpu.vector_store %arg8[%c0_6, %c0_7], %7 {strides = array<i32>} : memref<256x128xf32, #tpu.memory_space<vmem>>, vector<256x128xf32>,
    %c1_i32 = arith.constant 1 : i32
    %9 = arith.cmpi eq, %arg2, %c1_i32 : i32
    %10 = arith.extui %9 : i1 to i32
    %c0_i32_8 = arith.constant 0 : i32
    %11 = arith.cmpi ne, %10, %c0_i32_8 : i32
    scf.if %11 {
      %c0_9 = arith.constant 0 : index
      %c0_10 = arith.constant 0 : index
      %12 = vector.load %arg8[%c0_9, %c0_10] : memref<256x128xf32, #tpu.memory_space<vmem>>, vector<256x128xf32>
      %c0_11 = arith.constant 0 : index
      %c0_12 = arith.constant 0 : index
      %13 = vector.load %arg5[%c0_11, %c0_12] : memref<1x128xf32, #tpu.memory_space<vmem>>, vector<1x128xf32>
      %14 = vector.broadcast %13 : vector<1x128xf32> to vector<256x128xf32>
      %15 = arith.addf %12, %14 : vector<256x128xf32>
      %c0_13 = arith.constant 0 : index
      %c0_14 = arith.constant 0 : index
      %16 = vector.load %arg6[%c0_13, %c0_14] : memref<256x128xbf16, #tpu.memory_space<vmem>>, vector<256x128xbf16>
      %17 = arith.extf %16 : vector<256x128xbf16> to vector<256x128xf32>
      %18 = arith.addf %15, %17 : vector<256x128xf32>
      %cst_15 = arith.constant 0.000000e+00 : f32
      %19 = vector.broadcast %cst_15 : f32 to vector<256x128xf32>
      %20 = arith.maximumf %18, %19 : vector<256x128xf32>
      %21 = arith.truncf %20 : vector<256x128xf32> to vector<256x128xbf16>
      %c0_16 = arith.constant 0 : index
      %c0_17 = arith.constant 0 : index
      %22 = vector.load %arg7[%c0_16, %c0_17] : memref<256x128xbf16, #tpu.memory_space<vmem>>, vector<256x128xbf16>
      tpu.vector_store %arg7[%c0_16, %c0_17], %21 {strides = array<i32>} : memref<256x128xbf16, #tpu.memory_space<vmem>>, vector<256x128xbf16>,
    } else {
    }
    return
  }
  func.func @transform_0(%arg0: i32, %arg1: i32, %arg2: i32) -> (i32, i32) {
    %c0_i32 = arith.constant 0 : i32
    return %arg0, %arg2 : i32, i32
  }
  func.func @transform_1(%arg0: i32, %arg1: i32, %arg2: i32) -> (i32, i32) {
    %c0_i32 = arith.constant 0 : i32
    return %arg2, %arg1 : i32, i32
  }
  func.func @transform_2(%arg0: i32, %arg1: i32, %arg2: i32) -> (i32, i32) {
    %c0_i32 = arith.constant 0 : i32
    %c0_i32_0 = arith.constant 0 : i32
    return %c0_i32, %arg1 : i32, i32
  }
  func.func @transform_3(%arg0: i32, %arg1: i32, %arg2: i32) -> (i32, i32) {
    %c0_i32 = arith.constant 0 : i32
    return %arg0, %arg1 : i32, i32
  }
  func.func @transform_4(%arg0: i32, %arg1: i32, %arg2: i32) -> (i32, i32) {
    %c0_i32 = arith.constant 0 : i32
    return %arg0, %arg1 : i32, i32
  }
}

</mosaic_0001>

<bundles_post_ra>
// kernel: _lambda_.2
= control target key start
LH: loop header
LB: loop body
LE: loop exit
PB: predicated region body
PF: predicated region fallthrough
CT: control target
= control target key end

     0   :  { %s2641_s12 = smov 0   ;;  %s2643_s13 = smov 0   ;;  %s3022_s0 = inlined_call_operand.vmem [shape: bf16[4096,1024], index: 0, kind: input, shape index: {}]   ;;  %s3023_s1 = inlined_call_operand.vmem [shape: bf16[1024,128], index: 1, kind: input, shape index: {}]   ;;  %s3024_s2 = inlined_call_operand.vmem [shape: f32[1,128], index: 2, kind: input, shape index: {}]   ;;  %s3025_s3 = inlined_call_operand.vmem [shape: bf16[4096,128], index: 3, kind: output, shape index: {}]  }
   0x1   :  { %s2645_s14 = smov 0   ;;  %s2647_s15 = smov 0  }
   0x2   :  { %s2649_s16 = smov 0   ;;  %s2651_s17 = smov 0  }
   0x3   :  { %s2653_s18 = smov 0  }
   0x4 LB: > { %s25_s19 = sadd.s32 1, %s2610_s16  ;;  %s32_s20 = sadd.s32 1, %s2614_s17  ;;  %s2618_s18 = sphi %s2653_s18, %s13_s18   ;;  %s2614_s17 = sphi %s2651_s17, %s3031_s17   ;;  %s2610_s16 = sphi %s2649_s16, %s3030_s16   ;;  %s2606_s15 = sphi %s2647_s15, %s3029_s15   ;;  %s2602_s14 = sphi %s2645_s14, %s3028_s14   ;;  %s2598_s13 = sphi %s2643_s13, %s3027_s13   ;;  %s2594_s12 = sphi %s2641_s12, %s3026_s12  }
   0x5   : > { %p26_p0 = scmp.ge.s32.totalorder %s25_s19, 2  ;;  %p48_p1 = scmp.ne.s32.totalorder %s2598_s13, %s2594_s12 }
   0x6   : > { %p49_p2 = scmp.eq.s32.totalorder %s2618_s18, 0  ;;  %s41_s24 = sadd.s32 1, %s2598_s13 }
   0x7   : > { %s3033_s19 = smov (%p26_p0, %s25_s19), 0  ;;  %s3035_s20 = smov (!%p26_p0, %s32_s20), %s2614_s17 }
   0x8   : > { %p50_p3 = por %p49_p2, %p48_p1  ;;  %p34_p4 = scmp.ge.s32.totalorder %s3035_s20, 16 }
   0x9   : > { %s37_s21 = ssub.s32 %s2610_s16, %s3033_s19  ;;  %p1882_p6 = scmp.ge.s32.totalorder %s2618_s18, 32 }
   0xa   : > { %s3037_s20 = smov (%p34_p4, %s3035_s20), 0 }
   0xb   : > { %s36_s22 = ssub.s32 %s2614_s17, %s3037_s20  ;;  %162 = sbr.rel (%p1882_p6) target bundleno = 57 (0x39), region = 20 }
   0xc   : > { %s38_s23 = sor.u32 %s37_s21, %s36_s22 }
   0xd   : > { %p39_p5 = scmp.eq.s32.totalorder %s38_s23, 0 }
   0xf   : > { %s2692_s25 = scalar_select %p39_p5, %s2598_s13, %s41_s24  }
  0x12   : > { %165 = sbr.rel (!%p50_p3) target bundleno = 57 (0x39), region = 24  ;;  %s167_s26 = sand.u32 (%p50_p3), 1, %s2598_s13  }
  0x13   : > { %s1885_s27 = sshll.u32 (%p50_p3), %s2610_s16, 2  ;;  %s1883_s28 = sshll.u32 (%p50_p3), %s167_s26, 9 }
  0x14   : > { %s2027_s29 = sshll.u32 (%p50_p3), %s2614_s17, 8  ;;  %s2706_s8 = scalar_lea.vmem (%p50_p3), [#allocation3], %s1883_s28 }
  0x15   : > { %s173_s30 = sadd.s32 (%p50_p3), %s2027_s29, %s1885_s27 }
  0x16   : > { %s1887_s4 = sshll.u32 (%p50_p3), %s173_s30, 2 }
  0x17   : > { %s2701_s7 = scalar_lea.vmem (%p50_p3), %s3022_s0, %s1887_s4 }
  0x18   : > { %v188_v0 = vld [vmem:[%s2701_s7] sm:$0xff] (%p50_p3)  ;;  %v190_v1 = vld [vmem:[%s2701_s7 + $0x8] sm:$0xff] (%p50_p3) }
  0x19   : > { %v192_v2 = vld [vmem:[%s2701_s7 + $0x20] sm:$0xff]  ;;  %189 = vst [vmem:[%s2706_s8] sm:$0xff] %v188_v0  ;;  %191 = vst [vmem:[%s2706_s8 + $0x8] sm:$0xff] %v190_v1  ;;  %v194_v3 = vld [vmem:[%s2701_s7 + $0x28] sm:$0xff] }
  0x1a   : > { %193 = vst [vmem:[%s2706_s8 + $0x10] sm:$0xff] %v192_v2  ;;  %v196_v4 = vld [vmem:[%s2701_s7 + $0x40] sm:$0xff]  ;;  %v198_v5 = vld [vmem:[%s2701_s7 + $0x48] sm:$0xff]  ;;  %195 = vst [vmem:[%s2706_s8 + $0x18] sm:$0xff] %v194_v3 }
  0x1b   : > { %197 = vst [vmem:[%s2706_s8 + $0x20] sm:$0xff] %v196_v4  ;;  %199 = vst [vmem:[%s2706_s8 + $0x28] sm:$0xff] %v198_v5  ;;  %v200_v6 = vld [vmem:[%s2701_s7 + $0x60] sm:$0xff]  ;;  %v202_v7 = vld [vmem:[%s2701_s7 + $0x68] sm:$0xff] }
  0x1c   : > { %v204_v8 = vld [vmem:[%s2701_s7 + $0x80] sm:$0xff]  ;;  %201 = vst [vmem:[%s2706_s8 + $0x30] sm:$0xff] %v200_v6  ;;  %203 = vst [vmem:[%s2706_s8 + $0x38] sm:$0xff] %v202_v7  ;;  %v206_v9 = vld [vmem:[%s2701_s7 + $0x88] sm:$0xff] }
  0x1d   : > { %205 = vst [vmem:[%s2706_s8 + $0x40] sm:$0xff] %v204_v8  ;;  %v208_v10 = vld [vmem:[%s2701_s7 + $0xa0] sm:$0xff]  ;;  %v210_v11 = vld [vmem:[%s2701_s7 + $0xa8] sm:$0xff]  ;;  %207 = vst [vmem:[%s2706_s8 + $0x48] sm:$0xff] %v206_v9 }
  0x1e   : > { %209 = vst [vmem:[%s2706_s8 + $0x50] sm:$0xff] %v208_v10  ;;  %211 = vst [vmem:[%s2706_s8 + $0x58] sm:$0xff] %v210_v11  ;;  %v212_v12 = vld [vmem:[%s2701_s7 + $0xc0] sm:$0xff]  ;;  %v214_v13 = vld [vmem:[%s2701_s7 + $0xc8] sm:$0xff] }
  0x1f   : > { %v216_v14 = vld [vmem:[%s2701_s7 + $0xe0] sm:$0xff]  ;;  %213 = vst [vmem:[%s2706_s8 + $0x60] sm:$0xff] %v212_v12  ;;  %215 = vst [vmem:[%s2706_s8 + $0x68] sm:$0xff] %v214_v13  ;;  %v218_v15 = vld [vmem:[%s2701_s7 + $0xe8] sm:$0xff] }
  0x20   : > { %217 = vst [vmem:[%s2706_s8 + $0x70] sm:$0xff] %v216_v14  ;;  %v220_v16 = vld [vmem:[%s2701_s7 + $0x100] sm:$0xff]  ;;  %v222_v17 = vld [vmem:[%s2701_s7 + $0x108] sm:$0xff]  ;;  %219 = vst [vmem:[%s2706_s8 + $0x78] sm:$0xff] %v218_v15 }
  0x21   : > { %221 = vst [vmem:[%s2706_s8 + $0x80] sm:$0xff] %v220_v16  ;;  %223 = vst [vmem:[%s2706_s8 + $0x88] sm:$0xff] %v222_v17  ;;  %v224_v18 = vld [vmem:[%s2701_s7 + $0x120] sm:$0xff]  ;;  %v226_v19 = vld [vmem:[%s2701_s7 + $0x128] sm:$0xff] }
  0x22   : > { %v228_v20 = vld [vmem:[%s2701_s7 + $0x140] sm:$0xff]  ;;  %225 = vst [vmem:[%s2706_s8 + $0x90] sm:$0xff] %v224_v18  ;;  %227 = vst [vmem:[%s2706_s8 + $0x98] sm:$0xff] %v226_v19  ;;  %v230_v21 = vld [vmem:[%s2701_s7 + $0x148] sm:$0xff] }
  0x23   : > { %229 = vst [vmem:[%s2706_s8 + $0xa0] sm:$0xff] %v228_v20  ;;  %v232_v22 = vld [vmem:[%s2701_s7 + $0x160] sm:$0xff]  ;;  %v234_v23 = vld [vmem:[%s2701_s7 + $0x168] sm:$0xff]  ;;  %231 = vst [vmem:[%s2706_s8 + $0xa8] sm:$0xff] %v230_v21 }
  0x24   : > { %233 = vst [vmem:[%s2706_s8 + $0xb0] sm:$0xff] %v232_v22  ;;  %235 = vst [vmem:[%s2706_s8 + $0xb8] sm:$0xff] %v234_v23  ;;  %v236_v24 = vld [vmem:[%s2701_s7 + $0x180] sm:$0xff]  ;;  %v238_v25 = vld [vmem:[%s2701_s7 + $0x188] sm:$0xff] }
  0x25   : > { %v240_v26 = vld [vmem:[%s2701_s7 + $0x1a0] sm:$0xff]  ;;  %237 = vst [vmem:[%s2706_s8 + $0xc0] sm:$0xff] %v236_v24  ;;  %239 = vst [vmem:[%s2706_s8 + $0xc8] sm:$0xff] %v238_v25  ;;  %v242_v27 = vld [vmem:[%s2701_s7 + $0x1a8] sm:$0xff] }
  0x26   : > { %241 = vst [vmem:[%s2706_s8 + $0xd0] sm:$0xff] %v240_v26  ;;  %v244_v28 = vld [vmem:[%s2701_s7 + $0x1c0] sm:$0xff]  ;;  %v246_v29 = vld [vmem:[%s2701_s7 + $0x1c8] sm:$0xff]  ;;  %243 = vst [vmem:[%s2706_s8 + $0xd8] sm:$0xff] %v242_v27 }
  0x27   : > { %245 = vst [vmem:[%s2706_s8 + $0xe0] sm:$0xff] %v244_v28  ;;  %247 = vst [vmem:[%s2706_s8 + $0xe8] sm:$0xff] %v246_v29  ;;  %v248_v30 = vld [vmem:[%s2701_s7 + $0x1e0] sm:$0xff]  ;;  %v250_v31 = vld [vmem:[%s2701_s7 + $0x1e8] sm:$0xff] }
  0x28   : > { %v252_v32 = vld [vmem:[%s2701_s7 + $0x200] sm:$0xff]  ;;  %249 = vst [vmem:[%s2706_s8 + $0xf0] sm:$0xff] %v248_v30  ;;  %251 = vst [vmem:[%s2706_s8 + $0xf8] sm:$0xff] %v250_v31  ;;  %v254_v33 = vld [vmem:[%s2701_s7 + $0x208] sm:$0xff] }
  0x29   : > { %253 = vst [vmem:[%s2706_s8 + $0x100] sm:$0xff] %v252_v32  ;;  %v256_v34 = vld [vmem:[%s2701_s7 + $0x220] sm:$0xff]  ;;  %v258_v35 = vld [vmem:[%s2701_s7 + $0x228] sm:$0xff]  ;;  %255 = vst [vmem:[%s2706_s8 + $0x108] sm:$0xff] %v254_v33 }
  0x2a   : > { %257 = vst [vmem:[%s2706_s8 + $0x110] sm:$0xff] %v256_v34  ;;  %259 = vst [vmem:[%s2706_s8 + $0x118] sm:$0xff] %v258_v35  ;;  %v260_v36 = vld [vmem:[%s2701_s7 + $0x240] sm:$0xff]  ;;  %v262_v37 = vld [vmem:[%s2701_s7 + $0x248] sm:$0xff] }
  0x2b   : > { %v264_v38 = vld [vmem:[%s2701_s7 + $0x260] sm:$0xff]  ;;  %261 = vst [vmem:[%s2706_s8 + $0x120] sm:$0xff] %v260_v36  ;;  %263 = vst [vmem:[%s2706_s8 + $0x128] sm:$0xff] %v262_v37  ;;  %v266_v39 = vld [vmem:[%s2701_s7 + $0x268] sm:$0xff] }
  0x2c   : > { %265 = vst [vmem:[%s2706_s8 + $0x130] sm:$0xff] %v264_v38  ;;  %v268_v40 = vld [vmem:[%s2701_s7 + $0x280] sm:$0xff]  ;;  %v270_v41 = vld [vmem:[%s2701_s7 + $0x288] sm:$0xff]  ;;  %267 = vst [vmem:[%s2706_s8 + $0x138] sm:$0xff] %v266_v39 }
  0x2d   : > { %269 = vst [vmem:[%s2706_s8 + $0x140] sm:$0xff] %v268_v40  ;;  %271 = vst [vmem:[%s2706_s8 + $0x148] sm:$0xff] %v270_v41  ;;  %v272_v42 = vld [vmem:[%s2701_s7 + $0x2a0] sm:$0xff]  ;;  %v274_v43 = vld [vmem:[%s2701_s7 + $0x2a8] sm:$0xff] }
  0x2e   : > { %v276_v44 = vld [vmem:[%s2701_s7 + $0x2c0] sm:$0xff]  ;;  %273 = vst [vmem:[%s2706_s8 + $0x150] sm:$0xff] %v272_v42  ;;  %275 = vst [vmem:[%s2706_s8 + $0x158] sm:$0xff] %v274_v43  ;;  %v278_v45 = vld [vmem:[%s2701_s7 + $0x2c8] sm:$0xff] }
  0x2f   : > { %277 = vst [vmem:[%s2706_s8 + $0x160] sm:$0xff] %v276_v44  ;;  %v280_v46 = vld [vmem:[%s2701_s7 + $0x2e0] sm:$0xff]  ;;  %v282_v47 = vld [vmem:[%s2701_s7 + $0x2e8] sm:$0xff]  ;;  %279 = vst [vmem:[%s2706_s8 + $0x168] sm:$0xff] %v278_v45 }
  0x30   : > { %281 = vst [vmem:[%s2706_s8 + $0x170] sm:$0xff] %v280_v46  ;;  %283 = vst [vmem:[%s2706_s8 + $0x178] sm:$0xff] %v282_v47  ;;  %v284_v48 = vld [vmem:[%s2701_s7 + $0x300] sm:$0xff]  ;;  %v286_v49 = vld [vmem:[%s2701_s7 + $0x308] sm:$0xff] }
  0x31   : > { %v288_v50 = vld [vmem:[%s2701_s7 + $0x320] sm:$0xff]  ;;  %285 = vst [vmem:[%s2706_s8 + $0x180] sm:$0xff] %v284_v48  ;;  %287 = vst [vmem:[%s2706_s8 + $0x188] sm:$0xff] %v286_v49  ;;  %v290_v51 = vld [vmem:[%s2701_s7 + $0x328] sm:$0xff] }
  0x32   : > { %289 = vst [vmem:[%s2706_s8 + $0x190] sm:$0xff] %v288_v50  ;;  %v292_v52 = vld [vmem:[%s2701_s7 + $0x340] sm:$0xff]  ;;  %v294_v53 = vld [vmem:[%s2701_s7 + $0x348] sm:$0xff]  ;;  %291 = vst [vmem:[%s2706_s8 + $0x198] sm:$0xff] %v290_v51 }
  0x33   : > { %293 = vst [vmem:[%s2706_s8 + $0x1a0] sm:$0xff] %v292_v52  ;;  %295 = vst [vmem:[%s2706_s8 + $0x1a8] sm:$0xff] %v294_v53  ;;  %v296_v54 = vld [vmem:[%s2701_s7 + $0x360] sm:$0xff]  ;;  %v298_v55 = vld [vmem:[%s2701_s7 + $0x368] sm:$0xff] }
  0x34   : > { %v300_v56 = vld [vmem:[%s2701_s7 + $0x380] sm:$0xff]  ;;  %297 = vst [vmem:[%s2706_s8 + $0x1b0] sm:$0xff] %v296_v54  ;;  %299 = vst [vmem:[%s2706_s8 + $0x1b8] sm:$0xff] %v298_v55  ;;  %v302_v57 = vld [vmem:[%s2701_s7 + $0x388] sm:$0xff] }
  0x35   : > { %301 = vst [vmem:[%s2706_s8 + $0x1c0] sm:$0xff] %v300_v56  ;;  %v304_v58 = vld [vmem:[%s2701_s7 + $0x3a0] sm:$0xff]  ;;  %v306_v59 = vld [vmem:[%s2701_s7 + $0x3a8] sm:$0xff]  ;;  %303 = vst [vmem:[%s2706_s8 + $0x1c8] sm:$0xff] %v302_v57 }
  0x36   : > { %305 = vst [vmem:[%s2706_s8 + $0x1d0] sm:$0xff] %v304_v58  ;;  %307 = vst [vmem:[%s2706_s8 + $0x1d8] sm:$0xff] %v306_v59  ;;  %v308_v60 = vld [vmem:[%s2701_s7 + $0x3c0] sm:$0xff]  ;;  %v310_v61 = vld [vmem:[%s2701_s7 + $0x3c8] sm:$0xff] }
  0x37   : > { %v312_v62 = vld [vmem:[%s2701_s7 + $0x3e0] sm:$0xff]  ;;  %309 = vst [vmem:[%s2706_s8 + $0x1e0] sm:$0xff] %v308_v60  ;;  %311 = vst [vmem:[%s2706_s8 + $0x1e8] sm:$0xff] %v310_v61  ;;  %v314_v63 = vld [vmem:[%s2701_s7 + $0x3e8] sm:$0xff] }
  0x38   : > { %313 = vst [vmem:[%s2706_s8 + $0x1f0] sm:$0xff] %v312_v62  ;;  %315 = vst [vmem:[%s2706_s8 + $0x1f8] sm:$0xff] %v314_v63 }
  0x39 PF: > { %p1888_p7 = scmp.ge.s32.totalorder %s2618_s18, 1  ;;  %p332_p8 = scmp.lt.s32.totalorder %s2618_s18, 33 }
  0x3b   : > { %p333_p9 = pnand %p1888_p7, %p332_p8 }
  0x3c   : > { %s339_s9 = sand.u32 (!%p333_p9), 1, %s2594_s12   ;;  %s1890_s10 = sshll.u32 (!%p333_p9), %s2602_s14, 6 }
  0x3d   : > { %336 = sbr.rel (%p333_p9) target bundleno = 477 (0x1dd), region = 51  ;;  %s1889_s11 = sshll.u32 (!%p333_p9), %s339_s9, 9 }
  0x3e   : > { %p379_p10 = scmp.lt.s32.totalorder (!%p333_p9), %s1890_s10, 127  ;;  %s1892_s21 = sshll.u32 (!%p333_p9), %s2606_s15, 5 }
  0x3f   : > { %p391_p11 = scmp.lt.s32.totalorder (!%p333_p9), %s1892_s21, 511  ;;  %s2848_s12 = scalar_lea.vmem (!%p333_p9), [#allocation3], %s1889_s11 }
  0x40   : > { %p1894_p12 = scmp.ne.s32.totalorder (!%p333_p9), %s2602_s14, 0 }
  0x44   : > { %s3039_s10 = smov (!%p379_p10, %s1890_s10), 127  ;;  %s3041_s21 = smov (!%p391_p11, %s1892_s21), 511 }
  0x45   : > { %s1891_s22 = sshll.u32 %s3039_s10, 2  ;;  %s1893_s27 = sshll.u32 %s3041_s21, 2  ;;  %v2620_v0 = vmov (!%p1894_p12), 0.0  }
  0x46   : > { %s2841_s26 = scalar_lea.vmem %s3023_s1, %s1891_s22  ;;  %s2846_s30 = scalar_lea.vmem %s3025_s3, %s1893_s27  ;;  %404 = vst [vmem:[#allocation2] sm:$0xff] (!%p1894_p12), %v2620_v0  ;;  %405 = vst [vmem:[#allocation2 + $0x8] sm:$0xff] (!%p1894_p12), %v2620_v0 }
  0x47   : > { %403 = sbr.rel (%p1894_p12) target bundleno = 86 (0x56), region = 59  ;;  %406 = vst [vmem:[#allocation2 + $0x10] sm:$0xff] (!%p1894_p12), %v2620_v0  ;;  %407 = vst [vmem:[#allocation2 + $0x18] sm:$0xff] (!%p1894_p12), %v2620_v0 }
  0x48   : > { %408 = vst [vmem:[#allocation2 + $0x20] sm:$0xff] (!%p1894_p12), %v2620_v0  ;;  %409 = vst [vmem:[#allocation2 + $0x28] sm:$0xff] (!%p1894_p12), %v2620_v0 }
  0x49   : > { %410 = vst [vmem:[#allocation2 + $0x30] sm:$0xff] (!%p1894_p12), %v2620_v0  ;;  %411 = vst [vmem:[#allocation2 + $0x38] sm:$0xff] (!%p1894_p12), %v2620_v0 }
  0x4a   : > { %412 = vst [vmem:[#allocation2 + $0x40] sm:$0xff] (!%p1894_p12), %v2620_v0  ;;  %413 = vst [vmem:[#allocation2 + $0x48] sm:$0xff] (!%p1894_p12), %v2620_v0 }
  0x4b   : > { %414 = vst [vmem:[#allocation2 + $0x50] sm:$0xff] (!%p1894_p12), %v2620_v0  ;;  %415 = vst [vmem:[#allocation2 + $0x58] sm:$0xff] (!%p1894_p12), %v2620_v0 }
  0x4c   : > { %416 = vst [vmem:[#allocation2 + $0x60] sm:$0xff] (!%p1894_p12), %v2620_v0  ;;  %417 = vst [vmem:[#allocation2 + $0x68] sm:$0xff] (!%p1894_p12), %v2620_v0 }
  0x4d   : > { %418 = vst [vmem:[#allocation2 + $0x70] sm:$0xff] (!%p1894_p12), %v2620_v0  ;;  %419 = vst [vmem:[#allocation2 + $0x78] sm:$0xff] (!%p1894_p12), %v2620_v0 }
  0x4e   : > { %420 = vst [vmem:[#allocation2 + $0x80] sm:$0xff] %v2620_v0  ;;  %421 = vst [vmem:[#allocation2 + $0x88] sm:$0xff] %v2620_v0 }
  0x4f   : > { %422 = vst [vmem:[#allocation2 + $0x90] sm:$0xff] %v2620_v0  ;;  %423 = vst [vmem:[#allocation2 + $0x98] sm:$0xff] %v2620_v0 }
  0x50   : > { %424 = vst [vmem:[#allocation2 + $0xa0] sm:$0xff] %v2620_v0  ;;  %425 = vst [vmem:[#allocation2 + $0xa8] sm:$0xff] %v2620_v0 }
  0x51   : > { %426 = vst [vmem:[#allocation2 + $0xb0] sm:$0xff] %v2620_v0  ;;  %427 = vst [vmem:[#allocation2 + $0xb8] sm:$0xff] %v2620_v0 }
  0x52   : > { %428 = vst [vmem:[#allocation2 + $0xc0] sm:$0xff] %v2620_v0  ;;  %429 = vst [vmem:[#allocation2 + $0xc8] sm:$0xff] %v2620_v0 }
  0x53   : > { %430 = vst [vmem:[#allocation2 + $0xd0] sm:$0xff] %v2620_v0  ;;  %431 = vst [vmem:[#allocation2 + $0xd8] sm:$0xff] %v2620_v0 }
  0x54   : > { %432 = vst [vmem:[#allocation2 + $0xe0] sm:$0xff] %v2620_v0  ;;  %433 = vst [vmem:[#allocation2 + $0xe8] sm:$0xff] %v2620_v0 }
  0x55   : > { %434 = vst [vmem:[#allocation2 + $0xf0] sm:$0xff] %v2620_v0  ;;  %435 = vst [vmem:[#allocation2 + $0xf8] sm:$0xff] %v2620_v0 }
  0x56 PF: > { %v2436_v1 = vld [vmem:[%s2841_s26 + $0x40] sm:$0xff]   ;;  %v2440_v5 = vld [vmem:[%s2841_s26 + $0x48] sm:$0xff]   ;;  %v2444_v9 = vld [vmem:[%s2841_s26 + $0x50] sm:$0xff]   ;;  %p1991_p13 = scmp.ne.s32.totalorder %s2602_s14, 1 }
  0x57   : > { %v2437_v2 = vld [vmem:[%s2841_s26 + $0xc0] sm:$0xff]   ;;  %2155 = vmatprep.subr.bf16.mxu0 %v2436_v1  ;;  %v2441_v6 = vld [vmem:[%s2841_s26 + $0xc8] sm:$0xff]   ;;  %v2445_v10 = vld [vmem:[%s2841_s26 + $0xd0] sm:$0xff]  }
  0x58   : > { %v2438_v3 = vld [vmem:[%s2841_s26] sm:$0xff]   ;;  %2267 = vmatprep.subr.bf16.mxu1 %v2437_v2  ;;  %v2442_v7 = vld [vmem:[%s2841_s26 + $0x8] sm:$0xff]   ;;  %v2446_v11 = vld [vmem:[%s2841_s26 + $0x10] sm:$0xff]  }
  0x59   : > { %v2439_v4 = vld [vmem:[%s2841_s26 + $0x80] sm:$0xff]   ;;  %2156 = vmatpush3.bf16.msra.mxu0 %v2438_v3  ;;  %v2443_v8 = vld [vmem:[%s2841_s26 + $0x88] sm:$0xff]   ;;  %v2447_v12 = vld [vmem:[%s2841_s26 + $0x90] sm:$0xff]  }
  0x5a   : > { %2268 = vmatpush3.bf16.msra.mxu1 %v2439_v4  ;;  %2157 = vmatprep.subr.bf16.mxu0 %v2440_v5  ;;  %v2448_v13 = vld [vmem:[%s2841_s26 + $0x58] sm:$0xff]   ;;  %v2452_v17 = vld [vmem:[%s2841_s26 + $0x60] sm:$0xff]   ;;  %v2456_v21 = vld [vmem:[%s2841_s26 + $0x68] sm:$0xff]  }
  0x5b   : > { %2269 = vmatprep.subr.bf16.mxu1 %v2441_v6  ;;  %v2449_v14 = vld [vmem:[%s2841_s26 + $0xd8] sm:$0xff]   ;;  %v2453_v18 = vld [vmem:[%s2841_s26 + $0xe0] sm:$0xff]   ;;  %v2457_v22 = vld [vmem:[%s2841_s26 + $0xe8] sm:$0xff]  }
  0x5c   : > { %v2450_v15 = vld [vmem:[%s2841_s26 + $0x18] sm:$0xff]   ;;  %v2454_v19 = vld [vmem:[%s2841_s26 + $0x20] sm:$0xff]   ;;  %v2458_v23 = vld [vmem:[%s2841_s26 + $0x28] sm:$0xff]  }
  0x5d   : > { %2158 = vmatpush3.bf16.msra.mxu0 %v2442_v7  ;;  %v2451_v16 = vld [vmem:[%s2841_s26 + $0x98] sm:$0xff]   ;;  %v2455_v20 = vld [vmem:[%s2841_s26 + $0xa0] sm:$0xff]   ;;  %v2459_v24 = vld [vmem:[%s2841_s26 + $0xa8] sm:$0xff]  }
  0x5e   : > { %2270 = vmatpush3.bf16.msra.mxu1 %v2443_v8  ;;  %2159 = vmatprep.subr.bf16.mxu0 %v2444_v9  ;;  %v2460_v25 = vld [vmem:[%s2841_s26 + $0x70] sm:$0xff]   ;;  %v2464_v29 = vld [vmem:[%s2841_s26 + $0x78] sm:$0xff]  }
  0x5f   : > { %2271 = vmatprep.subr.bf16.mxu1 %v2445_v10  ;;  %v2461_v26 = vld [vmem:[%s2841_s26 + $0xf0] sm:$0xff]   ;;  %v2465_v30 = vld [vmem:[%s2841_s26 + $0xf8] sm:$0xff]  }
  0x60   : > { %v2462_v27 = vld [vmem:[%s2841_s26 + $0x30] sm:$0xff]   ;;  %v2466_v31 = vld [vmem:[%s2841_s26 + $0x38] sm:$0xff]  }
  0x61   : > { %2160 = vmatpush3.bf16.msra.mxu0 %v2446_v11  ;;  %v2463_v28 = vld [vmem:[%s2841_s26 + $0xb0] sm:$0xff]   ;;  %v2467_v32 = vld [vmem:[%s2841_s26 + $0xb8] sm:$0xff]  }
  0x62   : > { %2272 = vmatpush3.bf16.msra.mxu1 %v2447_v12  ;;  %2161 = vmatprep.subr.bf16.mxu0 %v2448_v13  ;;  %v2468_v33 = vld [vmem:[%s2848_s12] ss:$16 sps:$4 sm:$0xff]   ;;  %v2470_v34 = vld [vmem:[%s2848_s12 + $0x4] ss:$16 sps:$4 sm:$0xff]   ;;  %v2471_v35 = vld [vmem:[%s2848_s12 + $0x8] ss:$16 sps:$4 sm:$0xff]  }
  0x63   : > { %2273 = vmatprep.subr.bf16.mxu1 %v2449_v14  ;;  %v2473_v36 = vld [vmem:[%s2848_s12 + $0xc] ss:$16 sps:$4 sm:$0xff]   ;;  %1140 = vmatprep.mubr.bf16.mxu0 %v2470_v34  ;;  %v2474_v37 = vld [vmem:[%s2848_s12 + $0x24] ss:$16 sps:$4 sm:$0xff]   ;;  %v2478_v39 = vld [vmem:[%s2848_s12 + $0x20] ss:$16 sps:$4 sm:$0xff]  }
  0x64   : > { %1301 = vmatprep.mubr.bf16.mxu1 %v2473_v36  ;;  %v2476_v38 = vld [vmem:[%s2848_s12 + $0x2c] ss:$16 sps:$4 sm:$0xff]   ;;  %v2479_v40 = vld [vmem:[%s2848_s12 + $0x28] ss:$16 sps:$4 sm:$0xff]   ;;  %v2480_v41 = vld [vmem:[%s2848_s12 + $0x44] ss:$16 sps:$4 sm:$0xff]  }
  0x65   : > { %2162 = vmatpush3.bf16.msra.mxu0 %v2450_v15  ;;  %v2482_v42 = vld [vmem:[%s2848_s12 + $0x4c] ss:$16 sps:$4 sm:$0xff]   ;;  %v2484_v43 = vld [vmem:[%s2848_s12 + $0x40] ss:$16 sps:$4 sm:$0xff]   ;;  %v2485_v44 = vld [vmem:[%s2848_s12 + $0x48] ss:$16 sps:$4 sm:$0xff]  }
  0x66   : > { %2274 = vmatpush3.bf16.msra.mxu1 %v2451_v16  ;;  %2163 = vmatprep.subr.bf16.mxu0 %v2452_v17  ;;  %v2486_v45 = vld [vmem:[%s2848_s12 + $0x64] ss:$16 sps:$4 sm:$0xff]   ;;  %v2488_v46 = vld [vmem:[%s2848_s12 + $0x6c] ss:$16 sps:$4 sm:$0xff]   ;;  %v2490_v47 = vld [vmem:[%s2848_s12 + $0x60] ss:$16 sps:$4 sm:$0xff]  }
  0x67   : > { %2275 = vmatprep.subr.bf16.mxu1 %v2453_v18  ;;  %v2491_v48 = vld [vmem:[%s2848_s12 + $0x68] ss:$16 sps:$4 sm:$0xff]   ;;  %v2492_v49 = vld [vmem:[%s2848_s12 + $0x84] ss:$16 sps:$4 sm:$0xff]   ;;  %v2494_v50 = vld [vmem:[%s2848_s12 + $0x8c] ss:$16 sps:$4 sm:$0xff]  }
  0x68   : > { %v2496_v51 = vld [vmem:[%s2848_s12 + $0x80] ss:$16 sps:$4 sm:$0xff]   ;;  %v2497_v52 = vld [vmem:[%s2848_s12 + $0x88] ss:$16 sps:$4 sm:$0xff]   ;;  %v2498_v53 = vld [vmem:[%s2848_s12 + $0xa4] ss:$16 sps:$4 sm:$0xff]  }
  0x69   : > { %2164 = vmatpush3.bf16.msra.mxu0 %v2454_v19  ;;  %v2500_v54 = vld [vmem:[%s2848_s12 + $0xac] ss:$16 sps:$4 sm:$0xff]   ;;  %v2502_v55 = vld [vmem:[%s2848_s12 + $0xa0] ss:$16 sps:$4 sm:$0xff]   ;;  %v2503_v56 = vld [vmem:[%s2848_s12 + $0xa8] ss:$16 sps:$4 sm:$0xff]  }
  0x6a   : > { %2276 = vmatpush3.bf16.msra.mxu1 %v2455_v20  ;;  %2165 = vmatprep.subr.bf16.mxu0 %v2456_v21  ;;  %v2504_v57 = vld [vmem:[%s2848_s12 + $0xc4] ss:$16 sps:$4 sm:$0xff]   ;;  %v2506_v58 = vld [vmem:[%s2848_s12 + $0xcc] ss:$16 sps:$4 sm:$0xff]   ;;  %v2508_v59 = vld [vmem:[%s2848_s12 + $0xc0] ss:$16 sps:$4 sm:$0xff]  }
  0x6b   : > { %2277 = vmatprep.subr.bf16.mxu1 %v2457_v22  ;;  %v2509_v60 = vld [vmem:[%s2848_s12 + $0xc8] ss:$16 sps:$4 sm:$0xff]   ;;  %v2510_v61 = vld [vmem:[%s2848_s12 + $0xe4] ss:$16 sps:$4 sm:$0xff]   ;;  %v2512_v62 = vld [vmem:[%s2848_s12 + $0xec] ss:$16 sps:$4 sm:$0xff]  }
  0x6c   : > { %v2514_v63 = vld [vmem:[%s2848_s12 + $0xe0] ss:$16 sps:$4 sm:$0xff]   ;;  %v2515_v0 = vld [vmem:[%s2848_s12 + $0xe8] ss:$16 sps:$4 sm:$0xff]   ;;  %v2516_v1 = vld [vmem:[%s2848_s12 + $0x104] ss:$16 sps:$4 sm:$0xff]  }
  0x6d   : > { %2166 = vmatpush3.bf16.msra.mxu0 %v2458_v23  ;;  %v2518_v2 = vld [vmem:[%s2848_s12 + $0x10c] ss:$16 sps:$4 sm:$0xff]   ;;  %v2520_v3 = vld [vmem:[%s2848_s12 + $0x100] ss:$16 sps:$4 sm:$0xff]   ;;  %v2521_v4 = vld [vmem:[%s2848_s12 + $0x108] ss:$16 sps:$4 sm:$0xff]  }
  0x6e   : > { %2278 = vmatpush3.bf16.msra.mxu1 %v2459_v24  ;;  %2167 = vmatprep.subr.bf16.mxu0 %v2460_v25  ;;  %v2522_v5 = vld [vmem:[%s2848_s12 + $0x124] ss:$16 sps:$4 sm:$0xff]   ;;  %v2524_v6 = vld [vmem:[%s2848_s12 + $0x12c] ss:$16 sps:$4 sm:$0xff]   ;;  %v2526_v7 = vld [vmem:[%s2848_s12 + $0x120] ss:$16 sps:$4 sm:$0xff]  }
  0x6f   : > { %2279 = vmatprep.subr.bf16.mxu1 %v2461_v26  ;;  %v2527_v8 = vld [vmem:[%s2848_s12 + $0x128] ss:$16 sps:$4 sm:$0xff]   ;;  %v2528_v9 = vld [vmem:[%s2848_s12 + $0x144] ss:$16 sps:$4 sm:$0xff]   ;;  %v2530_v10 = vld [vmem:[%s2848_s12 + $0x14c] ss:$16 sps:$4 sm:$0xff]  }
  0x70   : > { %v2532_v11 = vld [vmem:[%s2848_s12 + $0x140] ss:$16 sps:$4 sm:$0xff]   ;;  %v2533_v12 = vld [vmem:[%s2848_s12 + $0x148] ss:$16 sps:$4 sm:$0xff]   ;;  %v2534_v13 = vld [vmem:[%s2848_s12 + $0x164] ss:$16 sps:$4 sm:$0xff]  }
  0x71   : > { %2168 = vmatpush3.bf16.msra.mxu0 %v2462_v27  ;;  %v2536_v14 = vld [vmem:[%s2848_s12 + $0x16c] ss:$16 sps:$4 sm:$0xff]   ;;  %v2538_v15 = vld [vmem:[%s2848_s12 + $0x160] ss:$16 sps:$4 sm:$0xff]   ;;  %v2539_v16 = vld [vmem:[%s2848_s12 + $0x168] ss:$16 sps:$4 sm:$0xff]  }
  0x72   : > { %2280 = vmatpush3.bf16.msra.mxu1 %v2463_v28  ;;  %2169 = vmatprep.subr.bf16.mxu0 %v2464_v29  ;;  %v2540_v17 = vld [vmem:[%s2848_s12 + $0x184] ss:$16 sps:$4 sm:$0xff]   ;;  %v2542_v18 = vld [vmem:[%s2848_s12 + $0x18c] ss:$16 sps:$4 sm:$0xff]   ;;  %v2544_v19 = vld [vmem:[%s2848_s12 + $0x180] ss:$16 sps:$4 sm:$0xff]  }
  0x73   : > { %2281 = vmatprep.subr.bf16.mxu1 %v2465_v30  ;;  %v2545_v20 = vld [vmem:[%s2848_s12 + $0x188] ss:$16 sps:$4 sm:$0xff]   ;;  %v2546_v21 = vld [vmem:[%s2848_s12 + $0x1a4] ss:$16 sps:$4 sm:$0xff]   ;;  %v2548_v22 = vld [vmem:[%s2848_s12 + $0x1ac] ss:$16 sps:$4 sm:$0xff]  }
  0x74   : > { %v2550_v23 = vld [vmem:[%s2848_s12 + $0x1a0] ss:$16 sps:$4 sm:$0xff]   ;;  %v2551_v24 = vld [vmem:[%s2848_s12 + $0x1a8] ss:$16 sps:$4 sm:$0xff]   ;;  %v2552_v25 = vld [vmem:[%s2848_s12 + $0x1c4] ss:$16 sps:$4 sm:$0xff]  }
  0x75   : > { %2170 = vmatpush3.bf16.msra.mxu0 %v2466_v31  ;;  %v2554_v26 = vld [vmem:[%s2848_s12 + $0x1cc] ss:$16 sps:$4 sm:$0xff]   ;;  %v2556_v27 = vld [vmem:[%s2848_s12 + $0x1c0] ss:$16 sps:$4 sm:$0xff]   ;;  %v2557_v28 = vld [vmem:[%s2848_s12 + $0x1c8] ss:$16 sps:$4 sm:$0xff]  }
  0x76   : > { %2282 = vmatpush3.bf16.msra.mxu1 %v2467_v32  ;;  %v2558_v29 = vld [vmem:[%s2848_s12 + $0x1e4] ss:$16 sps:$4 sm:$0xff]   ;;  %v2560_v30 = vld [vmem:[%s2848_s12 + $0x1ec] ss:$16 sps:$4 sm:$0xff]   ;;  %v2562_v31 = vld [vmem:[%s2848_s12 + $0x1e0] ss:$16 sps:$4 sm:$0xff]  }
  0x77   : > { %v2563_v32 = vld [vmem:[%s2848_s12 + $0x1e8] ss:$16 sps:$4 sm:$0xff]  }
  0x78   : > { %1141 = vmatmul.mubr.bf16.vlgmr.msra.gmra.mrb[0].mxu0 %v2468_v33 }
  0x79   : > { %1302 = vmatmul.mubr.bf16.vlgmr.msra.gmra.mrb[0].mxu1 %v2471_v35  ;;  %1148 = vmatprep.mubr.bf16.mxu0 %v2474_v37 }
  0x7a   : > { %1309 = vmatprep.mubr.bf16.mxu1 %v2476_v38 }
  0x80   : > { %1149 = vmatmul.mubr.bf16.gmra.mrb[4].mxu0 %v2478_v39 }
  0x81   : > { %1310 = vmatmul.mubr.bf16.gmra.mrb[4].mxu1 %v2479_v40  ;;  %1156 = vmatprep.mubr.bf16.mxu0 %v2480_v41 }
  0x82   : > { %1317 = vmatprep.mubr.bf16.mxu1 %v2482_v42  ;;  %v436_v42 = vld [vmem:[#allocation2] sm:$0xff] }
  0x88   : > { %1157 = vmatmul.mubr.bf16.gmra.mrb[8].mxu0 %v2484_v43 }
  0x89   : > { %1318 = vmatmul.mubr.bf16.gmra.mrb[8].mxu1 %v2485_v44  ;;  %1164 = vmatprep.mubr.bf16.mxu0 %v2486_v45 }
  0x8a   : > { %1325 = vmatprep.mubr.bf16.mxu1 %v2488_v46 }
  0x90   : > { %1165 = vmatmul.mubr.bf16.gmra.mrb[12].mxu0 %v2490_v47  ;;  %v437_v47 = vld [vmem:[#allocation2 + $0x8] sm:$0xff] }
  0x91   : > { %1326 = vmatmul.mubr.bf16.gmra.mrb[12].mxu1 %v2491_v48  ;;  %1172 = vmatprep.mubr.bf16.mxu0 %v2492_v49 }
  0x92   : > { %1333 = vmatprep.mubr.bf16.mxu1 %v2494_v50 }
  0x98   : > { %1173 = vmatmul.mubr.bf16.gmra.mrb[16].mxu0 %v2496_v51 }
  0x99   : > { %1334 = vmatmul.mubr.bf16.gmra.mrb[16].mxu1 %v2497_v52  ;;  %1180 = vmatprep.mubr.bf16.mxu0 %v2498_v53 }
  0x9a   : > { %1341 = vmatprep.mubr.bf16.mxu1 %v2500_v54 }
  0xa0   : > { %1181 = vmatmul.mubr.bf16.gmra.mrb[20].mxu0 %v2502_v55 }
  0xa1   : > { %1342 = vmatmul.mubr.bf16.gmra.mrb[20].mxu1 %v2503_v56  ;;  %1188 = vmatprep.mubr.bf16.mxu0 %v2504_v57 }
  0xa2   : > { %1349 = vmatprep.mubr.bf16.mxu1 %v2506_v58 }
  0xa8   : > { %1189 = vmatmul.mubr.bf16.gmra.mrb[24].mxu0 %v2508_v59 }
  0xa9   : > { %1350 = vmatmul.mubr.bf16.gmra.mrb[24].mxu1 %v2509_v60  ;;  %1196 = vmatprep.mubr.bf16.mxu0 %v2510_v61  ;;  %v438_v60 = vld [vmem:[#allocation2 + $0x10] sm:$0xff] }
  0xaa   : > { %1357 = vmatprep.mubr.bf16.mxu1 %v2512_v62 }
  0xb0   : > { %1197 = vmatmul.mubr.bf16.gmra.mrb[28].mxu0 %v2514_v63 }
  0xb1   : > { %1358 = vmatmul.mubr.bf16.gmra.mrb[28].mxu1 %v2515_v0  ;;  %1204 = vmatprep.mubr.bf16.mxu0 %v2516_v1  ;;  %v439_v1 = vld [vmem:[#allocation2 + $0x18] sm:$0xff] }
  0xb2   : > { %1365 = vmatprep.mubr.bf16.mxu1 %v2518_v2 }
  0xb8   : > { %1205 = vmatmul.mubr.bf16.gmra.mrb[32].mxu0 %v2520_v3 }
  0xb9   : > { %1366 = vmatmul.mubr.bf16.gmra.mrb[32].mxu1 %v2521_v4  ;;  %1212 = vmatprep.mubr.bf16.mxu0 %v2522_v5 }
  0xba   : > { %1373 = vmatprep.mubr.bf16.mxu1 %v2524_v6 }
  0xc0   : > { %1213 = vmatmul.mubr.bf16.gmra.mrb[36].mxu0 %v2526_v7 }
  0xc1   : > { %1374 = vmatmul.mubr.bf16.gmra.mrb[36].mxu1 %v2527_v8  ;;  %1220 = vmatprep.mubr.bf16.mxu0 %v2528_v9 }
  0xc2   : > { %1381 = vmatprep.mubr.bf16.mxu1 %v2530_v10 }
  0xc8   : > { %1221 = vmatmul.mubr.bf16.gmra.mrb[40].mxu0 %v2532_v11 }
  0xc9   : > { %1382 = vmatmul.mubr.bf16.gmra.mrb[40].mxu1 %v2533_v12  ;;  %1228 = vmatprep.mubr.bf16.mxu0 %v2534_v13 }
  0xca   : > { %1389 = vmatprep.mubr.bf16.mxu1 %v2536_v14  ;;  %v440_v14 = vld [vmem:[#allocation2 + $0x20] sm:$0xff] }
  0xd0   : > { %1229 = vmatmul.mubr.bf16.gmra.mrb[44].mxu0 %v2538_v15 }
  0xd1   : > { %1390 = vmatmul.mubr.bf16.gmra.mrb[44].mxu1 %v2539_v16  ;;  %1236 = vmatprep.mubr.bf16.mxu0 %v2540_v17 }
  0xd2   : > { %1397 = vmatprep.mubr.bf16.mxu1 %v2542_v18 }
  0xd8   : > { %1237 = vmatmul.mubr.bf16.gmra.mrb[48].mxu0 %v2544_v19  ;;  %v441_v19 = vld [vmem:[#allocation2 + $0x28] sm:$0xff] }
  0xd9   : > { %1398 = vmatmul.mubr.bf16.gmra.mrb[48].mxu1 %v2545_v20  ;;  %1244 = vmatprep.mubr.bf16.mxu0 %v2546_v21 }
  0xda   : > { %1405 = vmatprep.mubr.bf16.mxu1 %v2548_v22 }
  0xe0   : > { %1245 = vmatmul.mubr.bf16.gmra.mrb[52].mxu0 %v2550_v23 }
  0xe1   : > { %1406 = vmatmul.mubr.bf16.gmra.mrb[52].mxu1 %v2551_v24  ;;  %1252 = vmatprep.mubr.bf16.mxu0 %v2552_v25 }
  0xe2   : > { %1413 = vmatprep.mubr.bf16.mxu1 %v2554_v26 }
  0xe8   : > { %1253 = vmatmul.mubr.bf16.gmra.mrb[56].mxu0 %v2556_v27 }
  0xe9   : > { %1414 = vmatmul.mubr.bf16.gmra.mrb[56].mxu1 %v2557_v28  ;;  %1260 = vmatprep.mubr.bf16.mxu0 %v2558_v29 }
  0xea   : > { %1421 = vmatprep.mubr.bf16.mxu1 %v2560_v30 }
  0xf0   : > { %1261 = vmatmul.mubr.bf16.gmra.mrb[60].mxu0 %v2562_v31 }
  0xf1   : > { %1422 = vmatmul.mubr.bf16.gmra.mrb[60].mxu1 %v2563_v32  ;;  %v442_v32 = vld [vmem:[#allocation2 + $0x30] sm:$0xff] }
 0x14b   : > { %v2171_v33 = vpop.f32.mrb[0].mxu0 }
 0x14c   : > { %v2283_v34 = vpop.f32.mrb[0].mxu1  ;;  %v2172_v35 = vpop.f32.mrb[1].mxu0 }
 0x14d   : > { %v2173_v36 = vadd.f32 %v2172_v35, %v2171_v33  ;;  %v2284_v37 = vpop.f32.mrb[1].mxu1  ;;  %v2174_v38 = vpop.f32.mrb[2].mxu0 }
 0x14e   : > { %v2285_v39 = vadd.f32 %v2284_v37, %v2283_v34  ;;  %v2286_v40 = vpop.f32.mrb[2].mxu1  ;;  %v2175_v41 = vpop.f32.mrb[3].mxu0  ;;  %v443_v37 = vld [vmem:[#allocation2 + $0x38] sm:$0xff] }
 0x14f   : > { %v2176_v43 = vadd.f32 %v2175_v41, %v2174_v38  ;;  %v2287_v44 = vpop.f32.mrb[3].mxu1 }
 0x150   : > { %v1304_v45 = vadd.f32 %v2285_v39, %v2173_v36  ;;  %v2288_v46 = vadd.f32 %v2287_v44, %v2286_v40 }
 0x152   : > { %v1430_v48 = vadd.f32 %v1304_v45, %v436_v42  ;;  %v1307_v49 = vadd.f32 %v2288_v46, %v2176_v43 }
 0x153   : > { %v2177_v50 = vpop.f32.mrb[4].mxu0 }
 0x154   : > { %1462 = vst [vmem:[#allocation2] sm:$0xff] %v1430_v48  ;;  %v1431_v51 = vadd.f32 %v1307_v49, %v437_v47  ;;  %v2289_v52 = vpop.f32.mrb[4].mxu1  ;;  %v2178_v53 = vpop.f32.mrb[5].mxu0 }
 0x155   : > { %v2179_v54 = vadd.f32 %v2178_v53, %v2177_v50  ;;  %v2290_v55 = vpop.f32.mrb[5].mxu1  ;;  %v2180_v56 = vpop.f32.mrb[6].mxu0  ;;  %v444_v50 = vld [vmem:[#allocation2 + $0x40] sm:$0xff] }
 0x156   : > { %1463 = vst [vmem:[#allocation2 + $0x8] sm:$0xff] %v1431_v51  ;;  %v2291_v57 = vadd.f32 %v2290_v55, %v2289_v52  ;;  %v2292_v58 = vpop.f32.mrb[6].mxu1  ;;  %v2181_v59 = vpop.f32.mrb[7].mxu0  ;;  %v445_v55 = vld [vmem:[#allocation2 + $0x48] sm:$0xff] }
 0x157   : > { %v2182_v61 = vadd.f32 %v2181_v59, %v2180_v56  ;;  %v2293_v62 = vpop.f32.mrb[7].mxu1 }
 0x158   : > { %v1312_v63 = vadd.f32 %v2291_v57, %v2179_v54  ;;  %v2294_v0 = vadd.f32 %v2293_v62, %v2292_v58 }
 0x15a   : > { %v1432_v2 = vadd.f32 %v1312_v63, %v438_v60  ;;  %v1315_v3 = vadd.f32 %v2294_v0, %v2182_v61 }
 0x15b   : > { %v2183_v4 = vpop.f32.mrb[8].mxu0 }
 0x15c   : > { %1464 = vst [vmem:[#allocation2 + $0x10] sm:$0xff] %v1432_v2  ;;  %v1433_v5 = vadd.f32 %v1315_v3, %v439_v1  ;;  %v2295_v6 = vpop.f32.mrb[8].mxu1  ;;  %v2184_v7 = vpop.f32.mrb[9].mxu0 }
 0x15d   : > { %v2185_v8 = vadd.f32 %v2184_v7, %v2183_v4  ;;  %v2296_v9 = vpop.f32.mrb[9].mxu1  ;;  %v2186_v10 = vpop.f32.mrb[10].mxu0  ;;  %v446_v4 = vld [vmem:[#allocation2 + $0x50] sm:$0xff] }
 0x15e   : > { %1465 = vst [vmem:[#allocation2 + $0x18] sm:$0xff] %v1433_v5  ;;  %v2297_v11 = vadd.f32 %v2296_v9, %v2295_v6  ;;  %v2298_v12 = vpop.f32.mrb[10].mxu1  ;;  %v2187_v13 = vpop.f32.mrb[11].mxu0  ;;  %v447_v9 = vld [vmem:[#allocation2 + $0x58] sm:$0xff] }
 0x15f   : > { %v2188_v15 = vadd.f32 %v2187_v13, %v2186_v10  ;;  %v2299_v16 = vpop.f32.mrb[11].mxu1 }
 0x160   : > { %v1320_v17 = vadd.f32 %v2297_v11, %v2185_v8  ;;  %v2300_v18 = vadd.f32 %v2299_v16, %v2298_v12 }
 0x162   : > { %v1434_v20 = vadd.f32 %v1320_v17, %v440_v14  ;;  %v1323_v21 = vadd.f32 %v2300_v18, %v2188_v15 }
 0x163   : > { %v2189_v22 = vpop.f32.mrb[12].mxu0 }
 0x164   : > { %1466 = vst [vmem:[#allocation2 + $0x20] sm:$0xff] %v1434_v20  ;;  %v1435_v23 = vadd.f32 %v1323_v21, %v441_v19  ;;  %v2301_v24 = vpop.f32.mrb[12].mxu1  ;;  %v2190_v25 = vpop.f32.mrb[13].mxu0 }
 0x165   : > { %v2191_v26 = vadd.f32 %v2190_v25, %v2189_v22  ;;  %v2302_v27 = vpop.f32.mrb[13].mxu1  ;;  %v2192_v28 = vpop.f32.mrb[14].mxu0  ;;  %v448_v22 = vld [vmem:[#allocation2 + $0x60] sm:$0xff] }
 0x166   : > { %1467 = vst [vmem:[#allocation2 + $0x28] sm:$0xff] %v1435_v23  ;;  %v2303_v29 = vadd.f32 %v2302_v27, %v2301_v24  ;;  %v2304_v30 = vpop.f32.mrb[14].mxu1  ;;  %v2193_v31 = vpop.f32.mrb[15].mxu0  ;;  %v449_v27 = vld [vmem:[#allocation2 + $0x68] sm:$0xff] }
 0x167   : > { %v2194_v33 = vadd.f32 %v2193_v31, %v2192_v28  ;;  %v2305_v34 = vpop.f32.mrb[15].mxu1 }
 0x168   : > { %v1328_v35 = vadd.f32 %v2303_v29, %v2191_v26  ;;  %v2306_v36 = vadd.f32 %v2305_v34, %v2304_v30 }
 0x16a   : > { %v1436_v38 = vadd.f32 %v1328_v35, %v442_v32  ;;  %v1331_v39 = vadd.f32 %v2306_v36, %v2194_v33 }
 0x16b   : > { %v2195_v40 = vpop.f32.mrb[16].mxu0 }
 0x16c   : > { %1468 = vst [vmem:[#allocation2 + $0x30] sm:$0xff] %v1436_v38  ;;  %v1437_v41 = vadd.f32 %v1331_v39, %v443_v37  ;;  %v2307_v42 = vpop.f32.mrb[16].mxu1  ;;  %v2196_v43 = vpop.f32.mrb[17].mxu0 }
 0x16d   : > { %v2197_v44 = vadd.f32 %v2196_v43, %v2195_v40  ;;  %v2308_v45 = vpop.f32.mrb[17].mxu1  ;;  %v2198_v46 = vpop.f32.mrb[18].mxu0  ;;  %v450_v40 = vld [vmem:[#allocation2 + $0x70] sm:$0xff] }
 0x16e   : > { %1469 = vst [vmem:[#allocation2 + $0x38] sm:$0xff] %v1437_v41  ;;  %v2309_v47 = vadd.f32 %v2308_v45, %v2307_v42  ;;  %v2310_v48 = vpop.f32.mrb[18].mxu1  ;;  %v2199_v49 = vpop.f32.mrb[19].mxu0  ;;  %v451_v45 = vld [vmem:[#allocation2 + $0x78] sm:$0xff] }
 0x16f   : > { %v2200_v51 = vadd.f32 %v2199_v49, %v2198_v46  ;;  %v2311_v52 = vpop.f32.mrb[19].mxu1 }
 0x170   : > { %v1336_v53 = vadd.f32 %v2309_v47, %v2197_v44  ;;  %v2312_v54 = vadd.f32 %v2311_v52, %v2310_v48 }
 0x172   : > { %v1438_v56 = vadd.f32 %v1336_v53, %v444_v50  ;;  %v1339_v57 = vadd.f32 %v2312_v54, %v2200_v51 }
 0x173   : > { %v2201_v58 = vpop.f32.mrb[20].mxu0 }
 0x174   : > { %1470 = vst [vmem:[#allocation2 + $0x40] sm:$0xff] %v1438_v56  ;;  %v1439_v59 = vadd.f32 %v1339_v57, %v445_v55  ;;  %v2313_v60 = vpop.f32.mrb[20].mxu1  ;;  %v2202_v61 = vpop.f32.mrb[21].mxu0 }
 0x175   : > { %v2203_v62 = vadd.f32 %v2202_v61, %v2201_v58  ;;  %v2314_v63 = vpop.f32.mrb[21].mxu1  ;;  %v2204_v0 = vpop.f32.mrb[22].mxu0  ;;  %v452_v58 = vld [vmem:[#allocation2 + $0x80] sm:$0xff] }
 0x176   : > { %1471 = vst [vmem:[#allocation2 + $0x48] sm:$0xff] %v1439_v59  ;;  %v2315_v1 = vadd.f32 %v2314_v63, %v2313_v60  ;;  %v2316_v2 = vpop.f32.mrb[22].mxu1  ;;  %v2205_v3 = vpop.f32.mrb[23].mxu0  ;;  %v453_v63 = vld [vmem:[#allocation2 + $0x88] sm:$0xff] }
 0x177   : > { %v2206_v5 = vadd.f32 %v2205_v3, %v2204_v0  ;;  %v2317_v6 = vpop.f32.mrb[23].mxu1 }
 0x178   : > { %v1344_v7 = vadd.f32 %v2315_v1, %v2203_v62  ;;  %v2318_v8 = vadd.f32 %v2317_v6, %v2316_v2 }
 0x17a   : > { %v1440_v10 = vadd.f32 %v1344_v7, %v446_v4  ;;  %v1347_v11 = vadd.f32 %v2318_v8, %v2206_v5 }
 0x17b   : > { %v2207_v12 = vpop.f32.mrb[24].mxu0 }
 0x17c   : > { %1472 = vst [vmem:[#allocation2 + $0x50] sm:$0xff] %v1440_v10  ;;  %v1441_v13 = vadd.f32 %v1347_v11, %v447_v9  ;;  %v2319_v14 = vpop.f32.mrb[24].mxu1  ;;  %v2208_v15 = vpop.f32.mrb[25].mxu0 }
 0x17d   : > { %v2209_v16 = vadd.f32 %v2208_v15, %v2207_v12  ;;  %v2320_v17 = vpop.f32.mrb[25].mxu1  ;;  %v2210_v18 = vpop.f32.mrb[26].mxu0  ;;  %v454_v12 = vld [vmem:[#allocation2 + $0x90] sm:$0xff] }
 0x17e   : > { %1473 = vst [vmem:[#allocation2 + $0x58] sm:$0xff] %v1441_v13  ;;  %v2321_v19 = vadd.f32 %v2320_v17, %v2319_v14  ;;  %v2322_v20 = vpop.f32.mrb[26].mxu1  ;;  %v2211_v21 = vpop.f32.mrb[27].mxu0  ;;  %v455_v17 = vld [vmem:[#allocation2 + $0x98] sm:$0xff] }
 0x17f   : > { %v2212_v23 = vadd.f32 %v2211_v21, %v2210_v18  ;;  %v2323_v24 = vpop.f32.mrb[27].mxu1 }
 0x180   : > { %v1352_v25 = vadd.f32 %v2321_v19, %v2209_v16  ;;  %v2324_v26 = vadd.f32 %v2323_v24, %v2322_v20 }
 0x182   : > { %v1442_v28 = vadd.f32 %v1352_v25, %v448_v22  ;;  %v1355_v29 = vadd.f32 %v2324_v26, %v2212_v23 }
 0x183   : > { %v2213_v30 = vpop.f32.mrb[28].mxu0 }
 0x184   : > { %1474 = vst [vmem:[#allocation2 + $0x60] sm:$0xff] %v1442_v28  ;;  %v1443_v31 = vadd.f32 %v1355_v29, %v449_v27  ;;  %v2325_v32 = vpop.f32.mrb[28].mxu1  ;;  %v2214_v33 = vpop.f32.mrb[29].mxu0 }
 0x185   : > { %v2215_v34 = vadd.f32 %v2214_v33, %v2213_v30  ;;  %v2326_v35 = vpop.f32.mrb[29].mxu1  ;;  %v2216_v36 = vpop.f32.mrb[30].mxu0  ;;  %v456_v30 = vld [vmem:[#allocation2 + $0xa0] sm:$0xff] }
 0x186   : > { %1475 = vst [vmem:[#allocation2 + $0x68] sm:$0xff] %v1443_v31  ;;  %v2327_v37 = vadd.f32 %v2326_v35, %v2325_v32  ;;  %v2328_v38 = vpop.f32.mrb[30].mxu1  ;;  %v2217_v39 = vpop.f32.mrb[31].mxu0  ;;  %v457_v35 = vld [vmem:[#allocation2 + $0xa8] sm:$0xff] }
 0x187   : > { %v2218_v41 = vadd.f32 %v2217_v39, %v2216_v36  ;;  %v2329_v42 = vpop.f32.mrb[31].mxu1 }
 0x188   : > { %v1360_v43 = vadd.f32 %v2327_v37, %v2215_v34  ;;  %v2330_v44 = vadd.f32 %v2329_v42, %v2328_v38 }
 0x18a   : > { %v1444_v46 = vadd.f32 %v1360_v43, %v450_v40  ;;  %v1363_v47 = vadd.f32 %v2330_v44, %v2218_v41 }
 0x18b   : > { %v2219_v48 = vpop.f32.mrb[32].mxu0 }
 0x18c   : > { %1476 = vst [vmem:[#allocation2 + $0x70] sm:$0xff] %v1444_v46  ;;  %v1445_v49 = vadd.f32 %v1363_v47, %v451_v45  ;;  %v2331_v50 = vpop.f32.mrb[32].mxu1  ;;  %v2220_v51 = vpop.f32.mrb[33].mxu0 }
 0x18d   : > { %v2221_v52 = vadd.f32 %v2220_v51, %v2219_v48  ;;  %v2332_v53 = vpop.f32.mrb[33].mxu1  ;;  %v2222_v54 = vpop.f32.mrb[34].mxu0  ;;  %v458_v48 = vld [vmem:[#allocation2 + $0xb0] sm:$0xff] }
 0x18e   : > { %1477 = vst [vmem:[#allocation2 + $0x78] sm:$0xff] %v1445_v49  ;;  %v2333_v55 = vadd.f32 %v2332_v53, %v2331_v50  ;;  %v2334_v56 = vpop.f32.mrb[34].mxu1  ;;  %v2223_v57 = vpop.f32.mrb[35].mxu0  ;;  %v459_v53 = vld [vmem:[#allocation2 + $0xb8] sm:$0xff] }
 0x18f   : > { %v2224_v59 = vadd.f32 %v2223_v57, %v2222_v54  ;;  %v2335_v60 = vpop.f32.mrb[35].mxu1 }
 0x190   : > { %v1368_v61 = vadd.f32 %v2333_v55, %v2221_v52  ;;  %v2336_v62 = vadd.f32 %v2335_v60, %v2334_v56 }
 0x192   : > { %v1446_v0 = vadd.f32 %v1368_v61, %v452_v58  ;;  %v1371_v1 = vadd.f32 %v2336_v62, %v2224_v59 }
 0x193   : > { %v2225_v2 = vpop.f32.mrb[36].mxu0 }
 0x194   : > { %1478 = vst [vmem:[#allocation2 + $0x80] sm:$0xff] %v1446_v0  ;;  %v1447_v3 = vadd.f32 %v1371_v1, %v453_v63  ;;  %v2337_v4 = vpop.f32.mrb[36].mxu1  ;;  %v2226_v5 = vpop.f32.mrb[37].mxu0 }
 0x195   : > { %v2227_v6 = vadd.f32 %v2226_v5, %v2225_v2  ;;  %v2338_v7 = vpop.f32.mrb[37].mxu1  ;;  %v2228_v8 = vpop.f32.mrb[38].mxu0  ;;  %v460_v2 = vld [vmem:[#allocation2 + $0xc0] sm:$0xff] }
 0x196   : > { %1479 = vst [vmem:[#allocation2 + $0x88] sm:$0xff] %v1447_v3  ;;  %v2339_v9 = vadd.f32 %v2338_v7, %v2337_v4  ;;  %v2340_v10 = vpop.f32.mrb[38].mxu1  ;;  %v2229_v11 = vpop.f32.mrb[39].mxu0  ;;  %v461_v7 = vld [vmem:[#allocation2 + $0xc8] sm:$0xff] }
 0x197   : > { %v2230_v13 = vadd.f32 %v2229_v11, %v2228_v8  ;;  %v2341_v14 = vpop.f32.mrb[39].mxu1 }
 0x198   : > { %v1376_v15 = vadd.f32 %v2339_v9, %v2227_v6  ;;  %v2342_v16 = vadd.f32 %v2341_v14, %v2340_v10 }
 0x19a   : > { %v1448_v18 = vadd.f32 %v1376_v15, %v454_v12  ;;  %v1379_v19 = vadd.f32 %v2342_v16, %v2230_v13 }
 0x19b   : > { %v2231_v20 = vpop.f32.mrb[40].mxu0 }
 0x19c   : > { %1480 = vst [vmem:[#allocation2 + $0x90] sm:$0xff] %v1448_v18  ;;  %v1449_v21 = vadd.f32 %v1379_v19, %v455_v17  ;;  %v2343_v22 = vpop.f32.mrb[40].mxu1  ;;  %v2232_v23 = vpop.f32.mrb[41].mxu0 }
 0x19d   : > { %v2233_v24 = vadd.f32 %v2232_v23, %v2231_v20  ;;  %v2344_v25 = vpop.f32.mrb[41].mxu1  ;;  %v2234_v26 = vpop.f32.mrb[42].mxu0  ;;  %v462_v20 = vld [vmem:[#allocation2 + $0xd0] sm:$0xff] }
 0x19e   : > { %1481 = vst [vmem:[#allocation2 + $0x98] sm:$0xff] %v1449_v21  ;;  %v2345_v27 = vadd.f32 %v2344_v25, %v2343_v22  ;;  %v2346_v28 = vpop.f32.mrb[42].mxu1  ;;  %v2235_v29 = vpop.f32.mrb[43].mxu0  ;;  %v463_v25 = vld [vmem:[#allocation2 + $0xd8] sm:$0xff] }
 0x19f   : > { %v2236_v31 = vadd.f32 %v2235_v29, %v2234_v26  ;;  %v2347_v32 = vpop.f32.mrb[43].mxu1 }
 0x1a0   : > { %v1384_v33 = vadd.f32 %v2345_v27, %v2233_v24  ;;  %v2348_v34 = vadd.f32 %v2347_v32, %v2346_v28 }
 0x1a2   : > { %v1450_v36 = vadd.f32 %v1384_v33, %v456_v30  ;;  %v1387_v37 = vadd.f32 %v2348_v34, %v2236_v31 }
 0x1a3   : > { %v2237_v38 = vpop.f32.mrb[44].mxu0 }
 0x1a4   : > { %1482 = vst [vmem:[#allocation2 + $0xa0] sm:$0xff] %v1450_v36  ;;  %v1451_v39 = vadd.f32 %v1387_v37, %v457_v35  ;;  %v2349_v40 = vpop.f32.mrb[44].mxu1  ;;  %v2238_v41 = vpop.f32.mrb[45].mxu0 }
 0x1a5   : > { %v2239_v42 = vadd.f32 %v2238_v41, %v2237_v38  ;;  %v2350_v43 = vpop.f32.mrb[45].mxu1  ;;  %v2240_v44 = vpop.f32.mrb[46].mxu0  ;;  %v464_v38 = vld [vmem:[#allocation2 + $0xe0] sm:$0xff] }
 0x1a6   : > { %1483 = vst [vmem:[#allocation2 + $0xa8] sm:$0xff] %v1451_v39  ;;  %v2351_v45 = vadd.f32 %v2350_v43, %v2349_v40  ;;  %v2352_v46 = vpop.f32.mrb[46].mxu1  ;;  %v2241_v47 = vpop.f32.mrb[47].mxu0  ;;  %v465_v43 = vld [vmem:[#allocation2 + $0xe8] sm:$0xff] }
 0x1a7   : > { %v2242_v49 = vadd.f32 %v2241_v47, %v2240_v44  ;;  %v2353_v50 = vpop.f32.mrb[47].mxu1 }
 0x1a8   : > { %v1392_v51 = vadd.f32 %v2351_v45, %v2239_v42  ;;  %v2354_v52 = vadd.f32 %v2353_v50, %v2352_v46 }
 0x1aa   : > { %v1452_v54 = vadd.f32 %v1392_v51, %v458_v48  ;;  %v1395_v55 = vadd.f32 %v2354_v52, %v2242_v49 }
 0x1ab   : > { %v2243_v56 = vpop.f32.mrb[48].mxu0 }
 0x1ac   : > { %1484 = vst [vmem:[#allocation2 + $0xb0] sm:$0xff] %v1452_v54  ;;  %v1453_v57 = vadd.f32 %v1395_v55, %v459_v53  ;;  %v2355_v58 = vpop.f32.mrb[48].mxu1  ;;  %v2244_v59 = vpop.f32.mrb[49].mxu0 }
 0x1ad   : > { %v2245_v60 = vadd.f32 %v2244_v59, %v2243_v56  ;;  %v2356_v61 = vpop.f32.mrb[49].mxu1  ;;  %v2246_v62 = vpop.f32.mrb[50].mxu0  ;;  %v466_v56 = vld [vmem:[#allocation2 + $0xf0] sm:$0xff] }
 0x1ae   : > { %1485 = vst [vmem:[#allocation2 + $0xb8] sm:$0xff] %v1453_v57  ;;  %v2357_v63 = vadd.f32 %v2356_v61, %v2355_v58  ;;  %v2358_v0 = vpop.f32.mrb[50].mxu1  ;;  %v2247_v1 = vpop.f32.mrb[51].mxu0  ;;  %v467_v61 = vld [vmem:[#allocation2 + $0xf8] sm:$0xff] }
 0x1af   : > { %v2248_v3 = vadd.f32 %v2247_v1, %v2246_v62  ;;  %v2359_v4 = vpop.f32.mrb[51].mxu1  ;;  %v1498_v1 = vld [vmem:[#allocation2] sm:$0xff] (!%p1991_p13) }
 0x1b0   : > { %v1400_v5 = vadd.f32 %v2357_v63, %v2245_v60  ;;  %v2360_v6 = vadd.f32 %v2359_v4, %v2358_v0 }
 0x1b2   : > { %v1454_v8 = vadd.f32 %v1400_v5, %v460_v2  ;;  %v1403_v9 = vadd.f32 %v2360_v6, %v2248_v3  ;;  %v1499_v2 = vld [vmem:[#allocation2 + $0x8] sm:$0xff] (!%p1991_p13)  ;;  %v2951_v3 = vld [vmem:[%s3024_s2] ss:$0 sm:$0xff] (!%p1991_p13)  ;;  %v1500_v6 = vld [vmem:[#allocation2 + $0x10] sm:$0xff] (!%p1991_p13) }
 0x1b3   : > { %v2249_v10 = vpop.f32.mrb[52].mxu0  ;;  %v1537_v4 = vadd.f32 (!%p1991_p13), %v2951_v3, %v1498_v1  ;;  %v1538_v5 = vadd.f32 (!%p1991_p13), %v2951_v3, %v1499_v2  ;;  %v1520_v1 = vld [vmem:[#allocation2 + $0xb0] sm:$0xff] (!%p1991_p13) }
 0x1b4   : > { %1486 = vst [vmem:[#allocation2 + $0xc0] sm:$0xff] %v1454_v8  ;;  %v1455_v11 = vadd.f32 %v1403_v9, %v461_v7  ;;  %v2361_v12 = vpop.f32.mrb[52].mxu1  ;;  %v2250_v13 = vpop.f32.mrb[53].mxu0  ;;  %v1501_v7 = vld [vmem:[#allocation2 + $0x18] sm:$0xff] (!%p1991_p13)  ;;  %v1502_v8 = vld [vmem:[#allocation2 + $0x20] sm:$0xff] (!%p1991_p13)  ;;  %v1539_v9 = vadd.f32 (!%p1991_p13), %v2951_v3, %v1500_v6 }
 0x1b5   : > { %v2251_v14 = vadd.f32 %v2250_v13, %v2249_v10  ;;  %v2362_v15 = vpop.f32.mrb[53].mxu1  ;;  %v2252_v16 = vpop.f32.mrb[54].mxu0  ;;  %v1540_v10 = vadd.f32 (!%p1991_p13), %v2951_v3, %v1501_v7  ;;  %v1504_v13 = vld [vmem:[#allocation2 + $0x30] sm:$0xff] (!%p1991_p13)  ;;  %v1521_v2 = vld [vmem:[#allocation2 + $0xb8] sm:$0xff] (!%p1991_p13) }
 0x1b6   : > { %1487 = vst [vmem:[#allocation2 + $0xc8] sm:$0xff] %v1455_v11  ;;  %v2363_v17 = vadd.f32 %v2362_v15, %v2361_v12  ;;  %v2364_v18 = vpop.f32.mrb[54].mxu1  ;;  %v2253_v19 = vpop.f32.mrb[55].mxu0  ;;  %v1503_v11 = vld [vmem:[#allocation2 + $0x28] sm:$0xff] (!%p1991_p13)  ;;  %v1541_v12 = vadd.f32 (!%p1991_p13), %v2951_v3, %v1502_v8  ;;  %v1569_v15 = vmax.f32 (!%p1991_p13), %v1537_v4, 0.0 }
 0x1b7   : > { %v2254_v21 = vadd.f32 %v2253_v19, %v2252_v16  ;;  %v2365_v22 = vpop.f32.mrb[55].mxu1  ;;  %v1570_v16 = vmax.f32 (!%p1991_p13), %v1538_v5, 0.0  ;;  %v1506_v19 = vld [vmem:[#allocation2 + $0x40] sm:$0xff] (!%p1991_p13) }
 0x1b8   : > { %v1408_v23 = vadd.f32 %v2363_v17, %v2251_v14  ;;  %v2366_v24 = vadd.f32 %v2365_v22, %v2364_v18  ;;  %v1505_v14 = vld [vmem:[#allocation2 + $0x38] sm:$0xff] (!%p1991_p13)  ;;  %v1542_v17 = vadd.f32 (!%p1991_p13), %v2951_v3, %v1503_v11  ;;  %v1543_v18 = vadd.f32 (!%p1991_p13), %v2951_v3, %v1504_v13 }
 0x1b9   : > { %v1571_v22 = vmax.f32 (!%p1991_p13), %v1539_v9, 0.0 }
 0x1ba   : > { %v1456_v26 = vadd.f32 %v1408_v23, %v462_v20  ;;  %v1411_v27 = vadd.f32 %v2366_v24, %v2254_v21  ;;  %v1507_v20 = vld [vmem:[#allocation2 + $0x48] sm:$0xff] (!%p1991_p13)  ;;  %v1508_v21 = vld [vmem:[#allocation2 + $0x50] sm:$0xff] (!%p1991_p13)  ;;  %v1572_v23 = vmax.f32 (!%p1991_p13), %v1540_v10, 0.0  ;;  %v1573_v24 = vmax.f32 (!%p1991_p13), %v1541_v12, 0.0 }
 0x1bb   : > { %v2255_v28 = vpop.f32.mrb[56].mxu0  ;;  %v1522_v8 = vld [vmem:[#allocation2 + $0xc0] sm:$0xff] (!%p1991_p13) }
 0x1bc   : > { %1488 = vst [vmem:[#allocation2 + $0xd0] sm:$0xff] %v1456_v26  ;;  %v1457_v29 = vadd.f32 %v1411_v27, %v463_v25  ;;  %v2367_v30 = vpop.f32.mrb[56].mxu1  ;;  %v2256_v31 = vpop.f32.mrb[57].mxu0  ;;  %v1544_v25 = vadd.f32 (!%p1991_p13), %v2951_v3, %v1505_v14  ;;  %v1509_v26 = vld [vmem:[#allocation2 + $0x58] sm:$0xff] (!%p1991_p13)  ;;  %v1510_v27 = vld [vmem:[#allocation2 + $0x60] sm:$0xff] (!%p1991_p13) }
 0x1bd   : > { %v2257_v32 = vadd.f32 %v2256_v31, %v2255_v28  ;;  %v2368_v33 = vpop.f32.mrb[57].mxu1  ;;  %v2258_v34 = vpop.f32.mrb[58].mxu0  ;;  %v2063_v28 = vpack.c.bf16 (!%p1991_p13), %v1570_v16, %v1569_v15  ;;  %v1545_v31 = vadd.f32 (!%p1991_p13), %v2951_v3, %v1506_v19  ;;  %v1523_v9 = vld [vmem:[#allocation2 + $0xc8] sm:$0xff] (!%p1991_p13) }
 0x1be   : > { %1489 = vst [vmem:[#allocation2 + $0xd8] sm:$0xff] %v1457_v29  ;;  %v2369_v35 = vadd.f32 %v2368_v33, %v2367_v30  ;;  %v2370_v36 = vpop.f32.mrb[58].mxu1  ;;  %v2259_v37 = vpop.f32.mrb[59].mxu0  ;;  %v1574_v29 = vmax.f32 (!%p1991_p13), %v1542_v17, 0.0  ;;  %v1575_v30 = vmax.f32 (!%p1991_p13), %v1543_v18, 0.0  ;;  %v2068_v33 = vpack.c.bf16 (!%p1991_p13), %v1572_v23, %v1571_v22 }
 0x1bf   : > { %v2260_v39 = vadd.f32 %v2259_v37, %v2258_v34  ;;  %v2371_v40 = vpop.f32.mrb[59].mxu1  ;;  %v1576_v34 = vmax.f32 (!%p1991_p13), %v1544_v25, 0.0  ;;  %v1512_v37 = vld [vmem:[#allocation2 + $0x70] sm:$0xff] (!%p1991_p13)  ;;  %2064 = vst [vmem:[%s2846_s30] sm:$0xff] (!%p1991_p13), %v2063_v28   ;;  %v1559_v17 = vadd.f32 (!%p1991_p13), %v2951_v3, %v1520_v1  ;;  %v1560_v18 = vadd.f32 (!%p1991_p13), %v2951_v3, %v1521_v2 }
 0x1c0   : > { %v1416_v41 = vadd.f32 %v2369_v35, %v2257_v32  ;;  %v2372_v42 = vadd.f32 %v2371_v40, %v2370_v36  ;;  %v1511_v32 = vld [vmem:[#allocation2 + $0x68] sm:$0xff] (!%p1991_p13)  ;;  %v1546_v35 = vadd.f32 (!%p1991_p13), %v2951_v3, %v1507_v20  ;;  %v1547_v36 = vadd.f32 (!%p1991_p13), %v2951_v3, %v1508_v21  ;;  %2140 = vst [vmem:[%s2846_s30 + $0x8] sm:$0xff] (!%p1991_p13), %v2068_v33  }
 0x1c1   : > { %v1577_v40 = vmax.f32 (!%p1991_p13), %v1545_v31, 0.0  ;;  %v1561_v22 = vadd.f32 (!%p1991_p13), %v2951_v3, %v1522_v8  ;;  %v1562_v23 = vadd.f32 (!%p1991_p13), %v2951_v3, %v1523_v9  ;;  %v1592_v28 = vmax.f32 (!%p1991_p13), %v1560_v18, 0.0 }
 0x1c2   : > { %v1458_v44 = vadd.f32 %v1416_v41, %v464_v38  ;;  %v1419_v45 = vadd.f32 %v2372_v42, %v2260_v39  ;;  %v1513_v38 = vld [vmem:[#allocation2 + $0x78] sm:$0xff] (!%p1991_p13)  ;;  %v2073_v39 = vpack.c.bf16 (!%p1991_p13), %v1574_v29, %v1573_v24  ;;  %v1548_v41 = vadd.f32 (!%p1991_p13), %v2951_v3, %v1509_v26 }
 0x1c3   : > { %v2261_v46 = vpop.f32.mrb[60].mxu0  ;;  %v1549_v42 = vadd.f32 (!%p1991_p13), %v2951_v3, %v1510_v27  ;;  %v1524_v14 = vld [vmem:[#allocation2 + $0xd0] sm:$0xff] (!%p1991_p13)  ;;  %v1591_v27 = vmax.f32 (!%p1991_p13), %v1559_v17, 0.0  ;;  %v1593_v33 = vmax.f32 (!%p1991_p13), %v1561_v22, 0.0 }
 0x1c4   : > { %1490 = vst [vmem:[#allocation2 + $0xe0] sm:$0xff] %v1458_v44  ;;  %v1459_v47 = vadd.f32 %v1419_v45, %v465_v43  ;;  %v2373_v48 = vpop.f32.mrb[60].mxu1  ;;  %v2262_v49 = vpop.f32.mrb[61].mxu0  ;;  %v1514_v43 = vld [vmem:[#allocation2 + $0x80] sm:$0xff] (!%p1991_p13)  ;;  %v1515_v44 = vld [vmem:[#allocation2 + $0x88] sm:$0xff] (!%p1991_p13)  ;;  %v2078_v45 = vpack.c.bf16 (!%p1991_p13), %v1576_v34, %v1575_v30  ;;  %2141 = vst [vmem:[%s2846_s30 + $0x10] sm:$0xff] (!%p1991_p13), %v2073_v39   ;;  %v1563_v29 = vadd.f32 (!%p1991_p13), %v2951_v3, %v1524_v14 }
 0x1c5   : > { %v2263_v50 = vadd.f32 %v2262_v49, %v2261_v46  ;;  %v2374_v51 = vpop.f32.mrb[61].mxu1  ;;  %v2264_v52 = vpop.f32.mrb[62].mxu0  ;;  %v1578_v46 = vmax.f32 (!%p1991_p13), %v1546_v35, 0.0  ;;  %v1516_v49 = vld [vmem:[#allocation2 + $0x90] sm:$0xff] (!%p1991_p13)  ;;  %v1525_v19 = vld [vmem:[#allocation2 + $0xd8] sm:$0xff] (!%p1991_p13)  ;;  %v1594_v34 = vmax.f32 (!%p1991_p13), %v1562_v23, 0.0 }
 0x1c6   : > { %1491 = vst [vmem:[#allocation2 + $0xe8] sm:$0xff] %v1459_v47  ;;  %v2375_v53 = vadd.f32 %v2374_v51, %v2373_v48  ;;  %v2376_v54 = vpop.f32.mrb[62].mxu1  ;;  %v2265_v55 = vpop.f32.mrb[63].mxu0  ;;  %v1579_v47 = vmax.f32 (!%p1991_p13), %v1547_v36, 0.0  ;;  %v1550_v48 = vadd.f32 (!%p1991_p13), %v2951_v3, %v1511_v32  ;;  %v1581_v51 = vmax.f32 (!%p1991_p13), %v1549_v42, 0.0  ;;  %2142 = vst [vmem:[%s2846_s30 + $0x18] sm:$0xff] (!%p1991_p13), %v2078_v45  }
 0x1c7   : > { %v2266_v57 = vadd.f32 %v2265_v55, %v2264_v52  ;;  %v2377_v58 = vpop.f32.mrb[63].mxu1  ;;  %v1551_v52 = vadd.f32 (!%p1991_p13), %v2951_v3, %v1512_v37  ;;  %v2083_v55 = vpack.c.bf16 (!%p1991_p13), %v1578_v46, %v1577_v40  ;;  %v1564_v35 = vadd.f32 (!%p1991_p13), %v2951_v3, %v1525_v19 }
 0x1c8   : > { %v1424_v59 = vadd.f32 %v2375_v53, %v2263_v50  ;;  %v2378_v60 = vadd.f32 %v2377_v58, %v2376_v54  ;;  %1497 = sbr.rel (%p1991_p13) target bundleno = 477 (0x1dd), region = 63  ;;  %v1580_v50 = vmax.f32 (!%p1991_p13), %v1548_v41, 0.0  ;;  %v1552_v53 = vadd.f32 (!%p1991_p13), %v2951_v3, %v1513_v38  ;;  %v1517_v54 = vld [vmem:[#allocation2 + $0x98] sm:$0xff] (!%p1991_p13) }
 0x1c9   : > { %v1554_v58 = vadd.f32 (!%p1991_p13), %v2951_v3, %v1515_v44  ;;  %2143 = vst [vmem:[%s2846_s30 + $0x20] sm:$0xff] (!%p1991_p13), %v2083_v55   ;;  %v1556_v7 = vadd.f32 (!%p1991_p13), %v2951_v3, %v1517_v54  ;;  %v2118_v36 = vpack.c.bf16 (!%p1991_p13), %v1592_v28, %v1591_v27  ;;  %v1595_v37 = vmax.f32 (!%p1991_p13), %v1563_v29, 0.0 }
 0x1ca   : > { %v1460_v62 = vadd.f32 %v1424_v59, %v466_v56  ;;  %v1427_v63 = vadd.f32 %v2378_v60, %v2266_v57  ;;  %v1582_v56 = vmax.f32 (!%p1991_p13), %v1550_v48, 0.0  ;;  %v1553_v57 = vadd.f32 (!%p1991_p13), %v2951_v3, %v1514_v43  ;;  %v1518_v59 = vld [vmem:[#allocation2 + $0xa0] sm:$0xff] (!%p1991_p13)  ;;  %v1519_v60 = vld [vmem:[#allocation2 + $0xa8] sm:$0xff] (!%p1991_p13) }
 0x1cb   : > { %v1586_v6 = vmax.f32 (!%p1991_p13), %v1554_v58, 0.0  ;;  %v1557_v12 = vadd.f32 (!%p1991_p13), %v2951_v3, %v1518_v59  ;;  %v1558_v13 = vadd.f32 (!%p1991_p13), %v2951_v3, %v1519_v60  ;;  %v1588_v16 = vmax.f32 (!%p1991_p13), %v1556_v7, 0.0  ;;  %v1526_v24 = vld [vmem:[#allocation2 + $0xe0] sm:$0xff] (!%p1991_p13)  ;;  %2150 = vst [vmem:[%s2846_s30 + $0x58] sm:$0xff] (!%p1991_p13), %v2118_v36  }
 0x1cc   : > { %1492 = vst [vmem:[#allocation2 + $0xf0] sm:$0xff] %v1460_v62  ;;  %v1461_v0 = vadd.f32 %v1427_v63, %v467_v61  ;;  %v2088_v61 = vpack.c.bf16 (!%p1991_p13), %v1580_v50, %v1579_v47  ;;  %v1583_v62 = vmax.f32 (!%p1991_p13), %v1551_v52, 0.0  ;;  %v1584_v63 = vmax.f32 (!%p1991_p13), %v1552_v53, 0.0 }
 0x1cd   : > { %v2093_v4 = vpack.c.bf16 (!%p1991_p13), %v1582_v56, %v1581_v51  ;;  %v1585_v5 = vmax.f32 (!%p1991_p13), %v1553_v57, 0.0  ;;  %v1589_v20 = vmax.f32 (!%p1991_p13), %v1557_v12, 0.0  ;;  %v1590_v21 = vmax.f32 (!%p1991_p13), %v1558_v13, 0.0  ;;  %v1527_v25 = vld [vmem:[#allocation2 + $0xe8] sm:$0xff] (!%p1991_p13) }
 0x1ce   : > { %1493 = vst [vmem:[#allocation2 + $0xf8] sm:$0xff] %v1461_v0  ;;  %v1555_v0 = vadd.f32 (!%p1991_p13), %v2951_v3, %v1516_v49  ;;  %2144 = vst [vmem:[%s2846_s30 + $0x28] sm:$0xff] (!%p1991_p13), %v2088_v61   ;;  %v2098_v10 = vpack.c.bf16 (!%p1991_p13), %v1584_v63, %v1583_v62  ;;  %v1565_v38 = vadd.f32 (!%p1991_p13), %v2951_v3, %v1526_v24  ;;  %v1596_v41 = vmax.f32 (!%p1991_p13), %v1564_v35, 0.0 }
 0x1cf   : > { %2145 = vst [vmem:[%s2846_s30 + $0x30] sm:$0xff] %v2093_v4   ;;  %v2103_v15 = vpack.c.bf16 %v1586_v6, %v1585_v5  ;;  %v2113_v32 = vpack.c.bf16 %v1590_v21, %v1589_v20  ;;  %v1566_v39 = vadd.f32 %v2951_v3, %v1527_v25  ;;  %v2123_v40 = vpack.c.bf16 %v1594_v34, %v1593_v33 }
 0x1d0   : > { %v1587_v11 = vmax.f32 %v1555_v0, 0.0  ;;  %2146 = vst [vmem:[%s2846_s30 + $0x38] sm:$0xff] %v2098_v10   ;;  %v1597_v44 = vmax.f32 %v1565_v38, 0.0  ;;  %v2128_v46 = vpack.c.bf16 %v1596_v41, %v1595_v37 }
 0x1d1   : > { %2147 = vst [vmem:[%s2846_s30 + $0x40] sm:$0xff] %v2103_v15   ;;  %2149 = vst [vmem:[%s2846_s30 + $0x50] sm:$0xff] %v2113_v32   ;;  %v1598_v45 = vmax.f32 %v1566_v39, 0.0 }
 0x1d2   : > { %v2108_v26 = vpack.c.bf16 %v1588_v16, %v1587_v11  ;;  %2151 = vst [vmem:[%s2846_s30 + $0x60] sm:$0xff] %v2123_v40   ;;  %2152 = vst [vmem:[%s2846_s30 + $0x68] sm:$0xff] %v2128_v46  }
 0x1d3   : > { %v1528_v30 = vld [vmem:[#allocation2 + $0xf0] sm:$0xff]  ;;  %v2133_v49 = vpack.c.bf16 %v1598_v45, %v1597_v44 }
 0x1d4   : > { %2148 = vst [vmem:[%s2846_s30 + $0x48] sm:$0xff] %v2108_v26   ;;  %v1567_v42 = vadd.f32 %v2951_v3, %v1528_v30 }
 0x1d5   : > { %v1529_v31 = vld [vmem:[#allocation2 + $0xf8] sm:$0xff]  ;;  %2153 = vst [vmem:[%s2846_s30 + $0x70] sm:$0xff] %v2133_v49  }
 0x1d6   : > { %v1568_v43 = vadd.f32 %v2951_v3, %v1529_v31  ;;  %v1599_v47 = vmax.f32 %v1567_v42, 0.0 }
 0x1d8   : > { %v1600_v48 = vmax.f32 %v1568_v43, 0.0 }
 0x1da   : > { %v2138_v50 = vpack.c.bf16 %v1600_v48, %v1599_v47 }
 0x1dc   : > { %2154 = vst [vmem:[%s2846_s30 + $0x78] sm:$0xff] %v2138_v50  }
 0x1dd PF: > { %s13_s18 = sadd.s32 1, %s2618_s18   ;;  %s3026_s12 = smov %s2598_s13 }
 0x1de   : > { %p10_p0 = scmp.ge.s32.totalorder %s13_s18, 34   ;;  %s3027_s13 = smov %s2692_s25 }
 0x1df   : > { %s3028_s14 = smov %s2610_s16  ;;  %s3029_s15 = smov %s2614_s17 }
 0x1e0   : > { %s3030_s16 = smov %s3033_s19  ;;  %s3031_s17 = smov %s3037_s20 }
 0x1e1   :  { %12 = sbr.rel (!%p10_p0) target bundleno = 4 (0x4), region = 104 }

// kernel: _lambda_.3
= control target key start
LH: loop header
LB: loop body
LE: loop exit
PB: predicated region body
PF: predicated region fallthrough
CT: control target
= control target key end

     0   :  { %s3486_s0 = inlined_call_operand.vmem [shape: bf16[4096,1024], index: 0, kind: input, shape index: {}]   ;;  %s3487_s1 = inlined_call_operand.vmem [shape: bf16[1024,128], index: 1, kind: input, shape index: {}]   ;;  %s3488_s2 = inlined_call_operand.vmem [shape: f32[1,128], index: 2, kind: input, shape index: {}]   ;;  %s3489_s3 = inlined_call_operand.vmem [shape: bf16[4096,128], index: 3, kind: input, shape index: {}]   ;;  %s3490_s4 = inlined_call_operand.hbm [shape: bf16[4096,128], index: 4, kind: output, shape index: {}]  }
   0x1   :  { %3494 = sst [smem:[#allocation9_spill]] %s3486_s0 }
   0x2   :  { %9 = vsyncpa [#allocation5], 0 }
   0x3   :  { %11 = vsyncpa [#allocation5 + $0x1], 0  ;;  %s2997_s15 = smov 0   ;;  %s2999_s16 = smov 0  }
   0x4   :  { %s3001_s17 = smov 0   ;;  %s3003_s18 = smov 0  }
   0x5   :  { %s3005_s19 = smov 0   ;;  %s3007_s20 = smov 0  }
   0x6   :  { %s3009_s21 = smov 0   ;;  %s3011_s22 = smov 0  }
   0x7   :  { %s3013_s23 = smov 0   ;;  %s3015_s24 = smov 0  }
   0x8 LB: > { %s2053_s25 = sadd.s32 4294967295, %s2966_s24   ;;  %s2054_s26 = sadd.s32 4294967294, %s2966_s24   ;;  %s2966_s24 = sphi %s3015_s24, %s17_s24   ;;  %s2962_s23 = sphi %s3013_s23, %s3512_s23   ;;  %s2958_s22 = sphi %s3011_s22, %s3511_s22   ;;  %s2954_s21 = sphi %s3009_s21, %s3510_s21   ;;  %s2950_s20 = sphi %s3007_s20, %s3509_s20   ;;  %s2946_s19 = sphi %s3005_s19, %s3508_s19   ;;  %s2942_s18 = sphi %s3003_s18, %s3507_s18   ;;  %s2938_s17 = sphi %s3001_s17, %s3506_s17   ;;  %s2934_s16 = sphi %s2999_s16, %s3505_s16   ;;  %s2930_s15 = sphi %s2997_s15, %s3504_s15  }
   0x9   : > { %s29_s27 = sadd.s32 1, %s2958_s22  ;;  %s36_s28 = sadd.s32 1, %s2962_s23 }
   0xa   : > { %p30_p0 = scmp.ge.s32.totalorder %s29_s27, 2  ;;  %s45_s29 = sadd.s32 1, %s2946_s19 }
   0xb   : > { %p52_p1 = scmp.ne.s32.totalorder %s2946_s19, %s2942_s18  ;;  %p53_p2 = scmp.eq.s32.totalorder %s2966_s24, 0 }
   0xc   : > { %s3514_s27 = smov (%p30_p0, %s29_s27), 0  ;;  %s3516_s28 = smov (!%p30_p0, %s36_s28), %s2962_s23 }
   0xd   : > { %3495 = sst [smem:[#allocation7_spill]] %s3514_s27  ;;  %s41_s30 = ssub.s32 %s2958_s22, %s3514_s27 }
   0xe   : > { %p3060_p3 = por %p53_p2, %p52_p1  ;;  %p38_p4 = scmp.ge.s32.totalorder %s3516_s28, 16 }
   0xf   : > { %s155_s6 = sadd.s32 1, %s2938_s17  ;;  %p165_p5 = scmp.ne.s32.totalorder %s2938_s17, %s2934_s16 }
  0x10   : > { %p166_p6 = scmp.eq.s32.totalorder %s2053_s25, 31  ;;  %s3518_s28 = smov (%p38_p4, %s3516_s28), 0 }
  0x11   : > { %3497 = sst [smem:[#allocation8_spill]] %s3518_s28  ;;  %p171_p8 = scmp.ne.s32.totalorder %s2934_s16, %s2930_s15 }
  0x12   : > { %p3069_p7 = por %p166_p6, %p165_p5  ;;  %s40_s8 = ssub.s32 %s2962_s23, %s3518_s28 }
  0x13   : > { %p172_p9 = scmp.eq.s32.totalorder %s2054_s26, 31  ;;  %s42_s9 = sor.u32 %s41_s30, %s40_s8 }
  0x14   : > { %p153_p10 = scmp.eq.s32.totalorder %s40_s8, 0  ;;  %p43_p11 = scmp.eq.s32.totalorder %s42_s9, 0 }
  0x15   : > { %p3077_p12 = por %p172_p9, %p171_p8  ;;  %p2057_p13 = scmp.ge.s32.totalorder %s2966_s24, 32 }
  0x16   : > { %s3082_s11 = scalar_select %p153_p10, %s2938_s17, %s155_s6  }
  0x17   : > { %s3085_s12 = scalar_select %p43_p11, %s2946_s19, %s45_s29  }
  0x18   : > { %194 = sbr.rel (%p2057_p13) target bundleno = 73 (0x49), region = 20 }
  0x1f   : > { %197 = sbr.rel (!%p3060_p3) target bundleno = 73 (0x49), region = 24  ;;  %s199_s13 = sand.u32 (%p3060_p3), 1, %s2946_s19  }
  0x20   : > { %s2060_s14 = sshll.u32 (%p3060_p3), %s2958_s22, 2  ;;  %s2058_s25 = sshll.u32 (%p3060_p3), %s199_s13, 9 }
  0x21   : > { %s2206_s26 = sshll.u32 (%p3060_p3), %s2962_s23, 8  ;;  %s3500_s0 = sld [smem:[#allocation9_spill]] (%p3060_p3) }
  0x22   : > { %s205_s30 = sadd.s32 (%p3060_p3), %s2206_s26, %s2060_s14  ;;  %s3101_s5 = scalar_lea.vmem (%p3060_p3), [#allocation3], %s2058_s25 }
  0x23   : > { %s2062_s8 = sshll.u32 (%p3060_p3), %s205_s30, 2 }
  0x27   : > { %s3096_s29 = scalar_lea.vmem %s3500_s0, %s2062_s8 }
  0x28   : > { %v220_v0 = vld [vmem:[%s3096_s29] sm:$0xff]  ;;  %v222_v1 = vld [vmem:[%s3096_s29 + $0x8] sm:$0xff] }
  0x29   : > { %v224_v2 = vld [vmem:[%s3096_s29 + $0x20] sm:$0xff]  ;;  %221 = vst [vmem:[%s3101_s5] sm:$0xff] %v220_v0  ;;  %223 = vst [vmem:[%s3101_s5 + $0x8] sm:$0xff] %v222_v1  ;;  %v226_v3 = vld [vmem:[%s3096_s29 + $0x28] sm:$0xff] }
  0x2a   : > { %225 = vst [vmem:[%s3101_s5 + $0x10] sm:$0xff] %v224_v2  ;;  %v228_v4 = vld [vmem:[%s3096_s29 + $0x40] sm:$0xff]  ;;  %v230_v5 = vld [vmem:[%s3096_s29 + $0x48] sm:$0xff]  ;;  %227 = vst [vmem:[%s3101_s5 + $0x18] sm:$0xff] %v226_v3 }
  0x2b   : > { %229 = vst [vmem:[%s3101_s5 + $0x20] sm:$0xff] %v228_v4  ;;  %231 = vst [vmem:[%s3101_s5 + $0x28] sm:$0xff] %v230_v5  ;;  %v232_v6 = vld [vmem:[%s3096_s29 + $0x60] sm:$0xff]  ;;  %v234_v7 = vld [vmem:[%s3096_s29 + $0x68] sm:$0xff] }
  0x2c   : > { %v236_v8 = vld [vmem:[%s3096_s29 + $0x80] sm:$0xff]  ;;  %233 = vst [vmem:[%s3101_s5 + $0x30] sm:$0xff] %v232_v6  ;;  %235 = vst [vmem:[%s3101_s5 + $0x38] sm:$0xff] %v234_v7  ;;  %v238_v9 = vld [vmem:[%s3096_s29 + $0x88] sm:$0xff] }
  0x2d   : > { %237 = vst [vmem:[%s3101_s5 + $0x40] sm:$0xff] %v236_v8  ;;  %v240_v10 = vld [vmem:[%s3096_s29 + $0xa0] sm:$0xff]  ;;  %v242_v11 = vld [vmem:[%s3096_s29 + $0xa8] sm:$0xff]  ;;  %239 = vst [vmem:[%s3101_s5 + $0x48] sm:$0xff] %v238_v9 }
  0x2e   : > { %241 = vst [vmem:[%s3101_s5 + $0x50] sm:$0xff] %v240_v10  ;;  %243 = vst [vmem:[%s3101_s5 + $0x58] sm:$0xff] %v242_v11  ;;  %v244_v12 = vld [vmem:[%s3096_s29 + $0xc0] sm:$0xff]  ;;  %v246_v13 = vld [vmem:[%s3096_s29 + $0xc8] sm:$0xff] }
  0x2f   : > { %v248_v14 = vld [vmem:[%s3096_s29 + $0xe0] sm:$0xff]  ;;  %245 = vst [vmem:[%s3101_s5 + $0x60] sm:$0xff] %v244_v12  ;;  %247 = vst [vmem:[%s3101_s5 + $0x68] sm:$0xff] %v246_v13  ;;  %v250_v15 = vld [vmem:[%s3096_s29 + $0xe8] sm:$0xff] }
  0x30   : > { %249 = vst [vmem:[%s3101_s5 + $0x70] sm:$0xff] %v248_v14  ;;  %v252_v16 = vld [vmem:[%s3096_s29 + $0x100] sm:$0xff]  ;;  %v254_v17 = vld [vmem:[%s3096_s29 + $0x108] sm:$0xff]  ;;  %251 = vst [vmem:[%s3101_s5 + $0x78] sm:$0xff] %v250_v15 }
  0x31   : > { %253 = vst [vmem:[%s3101_s5 + $0x80] sm:$0xff] %v252_v16  ;;  %255 = vst [vmem:[%s3101_s5 + $0x88] sm:$0xff] %v254_v17  ;;  %v256_v18 = vld [vmem:[%s3096_s29 + $0x120] sm:$0xff]  ;;  %v258_v19 = vld [vmem:[%s3096_s29 + $0x128] sm:$0xff] }
  0x32   : > { %v260_v20 = vld [vmem:[%s3096_s29 + $0x140] sm:$0xff]  ;;  %257 = vst [vmem:[%s3101_s5 + $0x90] sm:$0xff] %v256_v18  ;;  %259 = vst [vmem:[%s3101_s5 + $0x98] sm:$0xff] %v258_v19  ;;  %v262_v21 = vld [vmem:[%s3096_s29 + $0x148] sm:$0xff] }
  0x33   : > { %261 = vst [vmem:[%s3101_s5 + $0xa0] sm:$0xff] %v260_v20  ;;  %v264_v22 = vld [vmem:[%s3096_s29 + $0x160] sm:$0xff]  ;;  %v266_v23 = vld [vmem:[%s3096_s29 + $0x168] sm:$0xff]  ;;  %263 = vst [vmem:[%s3101_s5 + $0xa8] sm:$0xff] %v262_v21 }
  0x34   : > { %265 = vst [vmem:[%s3101_s5 + $0xb0] sm:$0xff] %v264_v22  ;;  %267 = vst [vmem:[%s3101_s5 + $0xb8] sm:$0xff] %v266_v23  ;;  %v268_v24 = vld [vmem:[%s3096_s29 + $0x180] sm:$0xff]  ;;  %v270_v25 = vld [vmem:[%s3096_s29 + $0x188] sm:$0xff] }
  0x35   : > { %v272_v26 = vld [vmem:[%s3096_s29 + $0x1a0] sm:$0xff]  ;;  %269 = vst [vmem:[%s3101_s5 + $0xc0] sm:$0xff] %v268_v24  ;;  %271 = vst [vmem:[%s3101_s5 + $0xc8] sm:$0xff] %v270_v25  ;;  %v274_v27 = vld [vmem:[%s3096_s29 + $0x1a8] sm:$0xff] }
  0x36   : > { %273 = vst [vmem:[%s3101_s5 + $0xd0] sm:$0xff] %v272_v26  ;;  %v276_v28 = vld [vmem:[%s3096_s29 + $0x1c0] sm:$0xff]  ;;  %v278_v29 = vld [vmem:[%s3096_s29 + $0x1c8] sm:$0xff]  ;;  %275 = vst [vmem:[%s3101_s5 + $0xd8] sm:$0xff] %v274_v27 }
  0x37   : > { %277 = vst [vmem:[%s3101_s5 + $0xe0] sm:$0xff] %v276_v28  ;;  %279 = vst [vmem:[%s3101_s5 + $0xe8] sm:$0xff] %v278_v29  ;;  %v280_v30 = vld [vmem:[%s3096_s29 + $0x1e0] sm:$0xff]  ;;  %v282_v31 = vld [vmem:[%s3096_s29 + $0x1e8] sm:$0xff] }
  0x38   : > { %v284_v32 = vld [vmem:[%s3096_s29 + $0x200] sm:$0xff]  ;;  %281 = vst [vmem:[%s3101_s5 + $0xf0] sm:$0xff] %v280_v30  ;;  %283 = vst [vmem:[%s3101_s5 + $0xf8] sm:$0xff] %v282_v31  ;;  %v286_v33 = vld [vmem:[%s3096_s29 + $0x208] sm:$0xff] }
  0x39   : > { %285 = vst [vmem:[%s3101_s5 + $0x100] sm:$0xff] %v284_v32  ;;  %v288_v34 = vld [vmem:[%s3096_s29 + $0x220] sm:$0xff]  ;;  %v290_v35 = vld [vmem:[%s3096_s29 + $0x228] sm:$0xff]  ;;  %287 = vst [vmem:[%s3101_s5 + $0x108] sm:$0xff] %v286_v33 }
  0x3a   : > { %289 = vst [vmem:[%s3101_s5 + $0x110] sm:$0xff] %v288_v34  ;;  %291 = vst [vmem:[%s3101_s5 + $0x118] sm:$0xff] %v290_v35  ;;  %v292_v36 = vld [vmem:[%s3096_s29 + $0x240] sm:$0xff]  ;;  %v294_v37 = vld [vmem:[%s3096_s29 + $0x248] sm:$0xff] }
  0x3b   : > { %v296_v38 = vld [vmem:[%s3096_s29 + $0x260] sm:$0xff]  ;;  %293 = vst [vmem:[%s3101_s5 + $0x120] sm:$0xff] %v292_v36  ;;  %295 = vst [vmem:[%s3101_s5 + $0x128] sm:$0xff] %v294_v37  ;;  %v298_v39 = vld [vmem:[%s3096_s29 + $0x268] sm:$0xff] }
  0x3c   : > { %297 = vst [vmem:[%s3101_s5 + $0x130] sm:$0xff] %v296_v38  ;;  %v300_v40 = vld [vmem:[%s3096_s29 + $0x280] sm:$0xff]  ;;  %v302_v41 = vld [vmem:[%s3096_s29 + $0x288] sm:$0xff]  ;;  %299 = vst [vmem:[%s3101_s5 + $0x138] sm:$0xff] %v298_v39 }
  0x3d   : > { %301 = vst [vmem:[%s3101_s5 + $0x140] sm:$0xff] %v300_v40  ;;  %303 = vst [vmem:[%s3101_s5 + $0x148] sm:$0xff] %v302_v41  ;;  %v304_v42 = vld [vmem:[%s3096_s29 + $0x2a0] sm:$0xff]  ;;  %v306_v43 = vld [vmem:[%s3096_s29 + $0x2a8] sm:$0xff] }
  0x3e   : > { %v308_v44 = vld [vmem:[%s3096_s29 + $0x2c0] sm:$0xff]  ;;  %305 = vst [vmem:[%s3101_s5 + $0x150] sm:$0xff] %v304_v42  ;;  %307 = vst [vmem:[%s3101_s5 + $0x158] sm:$0xff] %v306_v43  ;;  %v310_v45 = vld [vmem:[%s3096_s29 + $0x2c8] sm:$0xff] }
  0x3f   : > { %309 = vst [vmem:[%s3101_s5 + $0x160] sm:$0xff] %v308_v44  ;;  %v312_v46 = vld [vmem:[%s3096_s29 + $0x2e0] sm:$0xff]  ;;  %v314_v47 = vld [vmem:[%s3096_s29 + $0x2e8] sm:$0xff]  ;;  %311 = vst [vmem:[%s3101_s5 + $0x168] sm:$0xff] %v310_v45 }
  0x40   : > { %313 = vst [vmem:[%s3101_s5 + $0x170] sm:$0xff] %v312_v46  ;;  %315 = vst [vmem:[%s3101_s5 + $0x178] sm:$0xff] %v314_v47  ;;  %v316_v48 = vld [vmem:[%s3096_s29 + $0x300] sm:$0xff]  ;;  %v318_v49 = vld [vmem:[%s3096_s29 + $0x308] sm:$0xff] }
  0x41   : > { %v320_v50 = vld [vmem:[%s3096_s29 + $0x320] sm:$0xff]  ;;  %317 = vst [vmem:[%s3101_s5 + $0x180] sm:$0xff] %v316_v48  ;;  %319 = vst [vmem:[%s3101_s5 + $0x188] sm:$0xff] %v318_v49  ;;  %v322_v51 = vld [vmem:[%s3096_s29 + $0x328] sm:$0xff] }
  0x42   : > { %321 = vst [vmem:[%s3101_s5 + $0x190] sm:$0xff] %v320_v50  ;;  %v324_v52 = vld [vmem:[%s3096_s29 + $0x340] sm:$0xff]  ;;  %v326_v53 = vld [vmem:[%s3096_s29 + $0x348] sm:$0xff]  ;;  %323 = vst [vmem:[%s3101_s5 + $0x198] sm:$0xff] %v322_v51 }
  0x43   : > { %325 = vst [vmem:[%s3101_s5 + $0x1a0] sm:$0xff] %v324_v52  ;;  %327 = vst [vmem:[%s3101_s5 + $0x1a8] sm:$0xff] %v326_v53  ;;  %v328_v54 = vld [vmem:[%s3096_s29 + $0x360] sm:$0xff]  ;;  %v330_v55 = vld [vmem:[%s3096_s29 + $0x368] sm:$0xff] }
  0x44   : > { %v332_v56 = vld [vmem:[%s3096_s29 + $0x380] sm:$0xff]  ;;  %329 = vst [vmem:[%s3101_s5 + $0x1b0] sm:$0xff] %v328_v54  ;;  %331 = vst [vmem:[%s3101_s5 + $0x1b8] sm:$0xff] %v330_v55  ;;  %v334_v57 = vld [vmem:[%s3096_s29 + $0x388] sm:$0xff] }
  0x45   : > { %333 = vst [vmem:[%s3101_s5 + $0x1c0] sm:$0xff] %v332_v56  ;;  %v336_v58 = vld [vmem:[%s3096_s29 + $0x3a0] sm:$0xff]  ;;  %v338_v59 = vld [vmem:[%s3096_s29 + $0x3a8] sm:$0xff]  ;;  %335 = vst [vmem:[%s3101_s5 + $0x1c8] sm:$0xff] %v334_v57 }
  0x46   : > { %337 = vst [vmem:[%s3101_s5 + $0x1d0] sm:$0xff] %v336_v58  ;;  %339 = vst [vmem:[%s3101_s5 + $0x1d8] sm:$0xff] %v338_v59  ;;  %v340_v60 = vld [vmem:[%s3096_s29 + $0x3c0] sm:$0xff]  ;;  %v342_v61 = vld [vmem:[%s3096_s29 + $0x3c8] sm:$0xff] }
  0x47   : > { %v344_v62 = vld [vmem:[%s3096_s29 + $0x3e0] sm:$0xff]  ;;  %341 = vst [vmem:[%s3101_s5 + $0x1e0] sm:$0xff] %v340_v60  ;;  %343 = vst [vmem:[%s3101_s5 + $0x1e8] sm:$0xff] %v342_v61  ;;  %v346_v63 = vld [vmem:[%s3096_s29 + $0x3e8] sm:$0xff] }
  0x48   : > { %345 = vst [vmem:[%s3101_s5 + $0x1f0] sm:$0xff] %v344_v62  ;;  %347 = vst [vmem:[%s3101_s5 + $0x1f8] sm:$0xff] %v346_v63 }
  0x49 PF: > { %p2063_p0 = scmp.ge.s32.totalorder %s2966_s24, 1  ;;  %p376_p1 = scmp.lt.s32.totalorder %s2966_s24, 33 }
  0x4b   : > { %p377_p2 = pnand %p2063_p0, %p376_p1 }
  0x4c   : > { %s383_s13 = sand.u32 (!%p377_p2), 1, %s2942_s18   ;;  %s3493_s14 = sand.u32 (!%p377_p2), 1, %s2934_s16  }
  0x4d   : > { %380 = sbr.rel (%p377_p2) target bundleno = 532 (0x214), region = 55  ;;  %s2064_s25 = sshll.u32 (!%p377_p2), %s383_s13, 9 }
  0x4e   : > { %s2065_s26 = sshll.u32 (!%p377_p2), %s3493_s14, 7  ;;  %s2066_s30 = sshll.u32 (!%p377_p2), %s2950_s20, 6 }
  0x4f   : > { %s2068_s8 = sshll.u32 (!%p377_p2), %s2954_s21, 5  ;;  %p430_p3 = scmp.lt.s32.totalorder (!%p377_p2), %s2066_s30, 127 }
  0x50   : > { %p442_p4 = scmp.lt.s32.totalorder (!%p377_p2), %s2068_s8, 511  ;;  %s3246_s13 = scalar_lea.vmem (!%p377_p2), [#allocation3], %s2064_s25 }
  0x51   : > { %s3248_s14 = scalar_lea.vmem (!%p377_p2), [#allocation4], %s2065_s26  ;;  %p2070_p5 = scmp.ne.s32.totalorder (!%p377_p2), %s2950_s20, 0 }
  0x54   : > { %s3520_s30 = smov (!%p430_p3, %s2066_s30), 127  ;;  %s3522_s8 = smov (!%p442_p4, %s2068_s8), 511 }
  0x55   : > { %s2067_s9 = sshll.u32 %s3520_s30, 2  ;;  %s2069_s0 = sshll.u32 %s3522_s8, 2  ;;  %v2968_v0 = vmov (!%p2070_p5), 0.0  }
  0x56   : > { %s3239_s5 = scalar_lea.vmem %s3487_s1, %s2067_s9  ;;  %s3244_s18 = scalar_lea.vmem %s3489_s3, %s2069_s0  ;;  %456 = vst [vmem:[#allocation2] sm:$0xff] (!%p2070_p5), %v2968_v0  ;;  %457 = vst [vmem:[#allocation2 + $0x8] sm:$0xff] (!%p2070_p5), %v2968_v0 }
  0x57   : > { %455 = sbr.rel (%p2070_p5) target bundleno = 102 (0x66), region = 63  ;;  %458 = vst [vmem:[#allocation2 + $0x10] sm:$0xff] (!%p2070_p5), %v2968_v0  ;;  %459 = vst [vmem:[#allocation2 + $0x18] sm:$0xff] (!%p2070_p5), %v2968_v0 }
  0x58   : > { %460 = vst [vmem:[#allocation2 + $0x20] sm:$0xff] (!%p2070_p5), %v2968_v0  ;;  %461 = vst [vmem:[#allocation2 + $0x28] sm:$0xff] (!%p2070_p5), %v2968_v0 }
  0x59   : > { %462 = vst [vmem:[#allocation2 + $0x30] sm:$0xff] (!%p2070_p5), %v2968_v0  ;;  %463 = vst [vmem:[#allocation2 + $0x38] sm:$0xff] (!%p2070_p5), %v2968_v0 }
  0x5a   : > { %464 = vst [vmem:[#allocation2 + $0x40] sm:$0xff] (!%p2070_p5), %v2968_v0  ;;  %465 = vst [vmem:[#allocation2 + $0x48] sm:$0xff] (!%p2070_p5), %v2968_v0 }
  0x5b   : > { %466 = vst [vmem:[#allocation2 + $0x50] sm:$0xff] (!%p2070_p5), %v2968_v0  ;;  %467 = vst [vmem:[#allocation2 + $0x58] sm:$0xff] (!%p2070_p5), %v2968_v0 }
  0x5c   : > { %468 = vst [vmem:[#allocation2 + $0x60] sm:$0xff] (!%p2070_p5), %v2968_v0  ;;  %469 = vst [vmem:[#allocation2 + $0x68] sm:$0xff] (!%p2070_p5), %v2968_v0 }
  0x5d   : > { %470 = vst [vmem:[#allocation2 + $0x70] sm:$0xff] (!%p2070_p5), %v2968_v0  ;;  %471 = vst [vmem:[#allocation2 + $0x78] sm:$0xff] (!%p2070_p5), %v2968_v0 }
  0x5e   : > { %472 = vst [vmem:[#allocation2 + $0x80] sm:$0xff] %v2968_v0  ;;  %473 = vst [vmem:[#allocation2 + $0x88] sm:$0xff] %v2968_v0 }
  0x5f   : > { %474 = vst [vmem:[#allocation2 + $0x90] sm:$0xff] %v2968_v0  ;;  %475 = vst [vmem:[#allocation2 + $0x98] sm:$0xff] %v2968_v0 }
  0x60   : > { %476 = vst [vmem:[#allocation2 + $0xa0] sm:$0xff] %v2968_v0  ;;  %477 = vst [vmem:[#allocation2 + $0xa8] sm:$0xff] %v2968_v0 }
  0x61   : > { %478 = vst [vmem:[#allocation2 + $0xb0] sm:$0xff] %v2968_v0  ;;  %479 = vst [vmem:[#allocation2 + $0xb8] sm:$0xff] %v2968_v0 }
  0x62   : > { %480 = vst [vmem:[#allocation2 + $0xc0] sm:$0xff] %v2968_v0  ;;  %481 = vst [vmem:[#allocation2 + $0xc8] sm:$0xff] %v2968_v0 }
  0x63   : > { %482 = vst [vmem:[#allocation2 + $0xd0] sm:$0xff] %v2968_v0  ;;  %483 = vst [vmem:[#allocation2 + $0xd8] sm:$0xff] %v2968_v0 }
  0x64   : > { %484 = vst [vmem:[#allocation2 + $0xe0] sm:$0xff] %v2968_v0  ;;  %485 = vst [vmem:[#allocation2 + $0xe8] sm:$0xff] %v2968_v0 }
  0x65   : > { %486 = vst [vmem:[#allocation2 + $0xf0] sm:$0xff] %v2968_v0  ;;  %487 = vst [vmem:[#allocation2 + $0xf8] sm:$0xff] %v2968_v0 }
  0x66 PF: > { %v2728_v1 = vld [vmem:[%s3239_s5 + $0x40] sm:$0xff]   ;;  %v2732_v5 = vld [vmem:[%s3239_s5 + $0x48] sm:$0xff]   ;;  %v2736_v9 = vld [vmem:[%s3239_s5 + $0x50] sm:$0xff]   ;;  %p2167_p6 = scmp.ne.s32.totalorder %s2950_s20, 1 }
  0x67   : > { %v2729_v2 = vld [vmem:[%s3239_s5 + $0xc0] sm:$0xff]   ;;  %2414 = vmatprep.subr.bf16.mxu0 %v2728_v1  ;;  %v2733_v6 = vld [vmem:[%s3239_s5 + $0xc8] sm:$0xff]   ;;  %v2737_v10 = vld [vmem:[%s3239_s5 + $0xd0] sm:$0xff]  }
  0x68   : > { %v2730_v3 = vld [vmem:[%s3239_s5] sm:$0xff]   ;;  %2526 = vmatprep.subr.bf16.mxu1 %v2729_v2  ;;  %v2734_v7 = vld [vmem:[%s3239_s5 + $0x8] sm:$0xff]   ;;  %v2738_v11 = vld [vmem:[%s3239_s5 + $0x10] sm:$0xff]  }
  0x69   : > { %v2731_v4 = vld [vmem:[%s3239_s5 + $0x80] sm:$0xff]   ;;  %2415 = vmatpush3.bf16.msra.mxu0 %v2730_v3  ;;  %v2735_v8 = vld [vmem:[%s3239_s5 + $0x88] sm:$0xff]   ;;  %v2739_v12 = vld [vmem:[%s3239_s5 + $0x90] sm:$0xff]  }
  0x6a   : > { %2527 = vmatpush3.bf16.msra.mxu1 %v2731_v4  ;;  %2416 = vmatprep.subr.bf16.mxu0 %v2732_v5  ;;  %v2740_v13 = vld [vmem:[%s3239_s5 + $0x58] sm:$0xff]   ;;  %v2744_v17 = vld [vmem:[%s3239_s5 + $0x60] sm:$0xff]   ;;  %v2748_v21 = vld [vmem:[%s3239_s5 + $0x68] sm:$0xff]  }
  0x6b   : > { %2528 = vmatprep.subr.bf16.mxu1 %v2733_v6  ;;  %v2741_v14 = vld [vmem:[%s3239_s5 + $0xd8] sm:$0xff]   ;;  %v2745_v18 = vld [vmem:[%s3239_s5 + $0xe0] sm:$0xff]   ;;  %v2749_v22 = vld [vmem:[%s3239_s5 + $0xe8] sm:$0xff]  }
  0x6c   : > { %v2742_v15 = vld [vmem:[%s3239_s5 + $0x18] sm:$0xff]   ;;  %v2746_v19 = vld [vmem:[%s3239_s5 + $0x20] sm:$0xff]   ;;  %v2750_v23 = vld [vmem:[%s3239_s5 + $0x28] sm:$0xff]  }
  0x6d   : > { %2417 = vmatpush3.bf16.msra.mxu0 %v2734_v7  ;;  %v2743_v16 = vld [vmem:[%s3239_s5 + $0x98] sm:$0xff]   ;;  %v2747_v20 = vld [vmem:[%s3239_s5 + $0xa0] sm:$0xff]   ;;  %v2751_v24 = vld [vmem:[%s3239_s5 + $0xa8] sm:$0xff]  }
  0x6e   : > { %2529 = vmatpush3.bf16.msra.mxu1 %v2735_v8  ;;  %2418 = vmatprep.subr.bf16.mxu0 %v2736_v9  ;;  %v2752_v25 = vld [vmem:[%s3239_s5 + $0x70] sm:$0xff]   ;;  %v2756_v29 = vld [vmem:[%s3239_s5 + $0x78] sm:$0xff]  }
  0x6f   : > { %2530 = vmatprep.subr.bf16.mxu1 %v2737_v10  ;;  %v2753_v26 = vld [vmem:[%s3239_s5 + $0xf0] sm:$0xff]   ;;  %v2757_v30 = vld [vmem:[%s3239_s5 + $0xf8] sm:$0xff]  }
  0x70   : > { %v2754_v27 = vld [vmem:[%s3239_s5 + $0x30] sm:$0xff]   ;;  %v2758_v31 = vld [vmem:[%s3239_s5 + $0x38] sm:$0xff]  }
  0x71   : > { %2419 = vmatpush3.bf16.msra.mxu0 %v2738_v11  ;;  %v2755_v28 = vld [vmem:[%s3239_s5 + $0xb0] sm:$0xff]   ;;  %v2759_v32 = vld [vmem:[%s3239_s5 + $0xb8] sm:$0xff]  }
  0x72   : > { %2531 = vmatpush3.bf16.msra.mxu1 %v2739_v12  ;;  %2420 = vmatprep.subr.bf16.mxu0 %v2740_v13  ;;  %v2760_v33 = vld [vmem:[%s3246_s13] ss:$16 sps:$4 sm:$0xff]   ;;  %v2762_v34 = vld [vmem:[%s3246_s13 + $0x4] ss:$16 sps:$4 sm:$0xff]   ;;  %v2763_v35 = vld [vmem:[%s3246_s13 + $0x8] ss:$16 sps:$4 sm:$0xff]  }
  0x73   : > { %2532 = vmatprep.subr.bf16.mxu1 %v2741_v14  ;;  %v2765_v36 = vld [vmem:[%s3246_s13 + $0xc] ss:$16 sps:$4 sm:$0xff]   ;;  %1192 = vmatprep.mubr.bf16.mxu0 %v2762_v34  ;;  %v2766_v37 = vld [vmem:[%s3246_s13 + $0x24] ss:$16 sps:$4 sm:$0xff]   ;;  %v2770_v39 = vld [vmem:[%s3246_s13 + $0x20] ss:$16 sps:$4 sm:$0xff]  }
  0x74   : > { %1353 = vmatprep.mubr.bf16.mxu1 %v2765_v36  ;;  %v2768_v38 = vld [vmem:[%s3246_s13 + $0x2c] ss:$16 sps:$4 sm:$0xff]   ;;  %v2771_v40 = vld [vmem:[%s3246_s13 + $0x28] ss:$16 sps:$4 sm:$0xff]   ;;  %v2772_v41 = vld [vmem:[%s3246_s13 + $0x44] ss:$16 sps:$4 sm:$0xff]  }
  0x75   : > { %2421 = vmatpush3.bf16.msra.mxu0 %v2742_v15  ;;  %v2774_v42 = vld [vmem:[%s3246_s13 + $0x4c] ss:$16 sps:$4 sm:$0xff]   ;;  %v2776_v43 = vld [vmem:[%s3246_s13 + $0x40] ss:$16 sps:$4 sm:$0xff]   ;;  %v2777_v44 = vld [vmem:[%s3246_s13 + $0x48] ss:$16 sps:$4 sm:$0xff]  }
  0x76   : > { %2533 = vmatpush3.bf16.msra.mxu1 %v2743_v16  ;;  %2422 = vmatprep.subr.bf16.mxu0 %v2744_v17  ;;  %v2778_v45 = vld [vmem:[%s3246_s13 + $0x64] ss:$16 sps:$4 sm:$0xff]   ;;  %v2780_v46 = vld [vmem:[%s3246_s13 + $0x6c] ss:$16 sps:$4 sm:$0xff]   ;;  %v2782_v47 = vld [vmem:[%s3246_s13 + $0x60] ss:$16 sps:$4 sm:$0xff]  }
  0x77   : > { %2534 = vmatprep.subr.bf16.mxu1 %v2745_v18  ;;  %v2783_v48 = vld [vmem:[%s3246_s13 + $0x68] ss:$16 sps:$4 sm:$0xff]   ;;  %v2784_v49 = vld [vmem:[%s3246_s13 + $0x84] ss:$16 sps:$4 sm:$0xff]   ;;  %v2786_v50 = vld [vmem:[%s3246_s13 + $0x8c] ss:$16 sps:$4 sm:$0xff]  }
  0x78   : > { %v2788_v51 = vld [vmem:[%s3246_s13 + $0x80] ss:$16 sps:$4 sm:$0xff]   ;;  %v2789_v52 = vld [vmem:[%s3246_s13 + $0x88] ss:$16 sps:$4 sm:$0xff]   ;;  %v2790_v53 = vld [vmem:[%s3246_s13 + $0xa4] ss:$16 sps:$4 sm:$0xff]  }
  0x79   : > { %2423 = vmatpush3.bf16.msra.mxu0 %v2746_v19  ;;  %v2792_v54 = vld [vmem:[%s3246_s13 + $0xac] ss:$16 sps:$4 sm:$0xff]   ;;  %v2794_v55 = vld [vmem:[%s3246_s13 + $0xa0] ss:$16 sps:$4 sm:$0xff]   ;;  %v2795_v56 = vld [vmem:[%s3246_s13 + $0xa8] ss:$16 sps:$4 sm:$0xff]  }
  0x7a   : > { %2535 = vmatpush3.bf16.msra.mxu1 %v2747_v20  ;;  %2424 = vmatprep.subr.bf16.mxu0 %v2748_v21  ;;  %v2796_v57 = vld [vmem:[%s3246_s13 + $0xc4] ss:$16 sps:$4 sm:$0xff]   ;;  %v2798_v58 = vld [vmem:[%s3246_s13 + $0xcc] ss:$16 sps:$4 sm:$0xff]   ;;  %v2800_v59 = vld [vmem:[%s3246_s13 + $0xc0] ss:$16 sps:$4 sm:$0xff]  }
  0x7b   : > { %2536 = vmatprep.subr.bf16.mxu1 %v2749_v22  ;;  %v2801_v60 = vld [vmem:[%s3246_s13 + $0xc8] ss:$16 sps:$4 sm:$0xff]   ;;  %v2802_v61 = vld [vmem:[%s3246_s13 + $0xe4] ss:$16 sps:$4 sm:$0xff]   ;;  %v2804_v62 = vld [vmem:[%s3246_s13 + $0xec] ss:$16 sps:$4 sm:$0xff]  }
  0x7c   : > { %v2806_v63 = vld [vmem:[%s3246_s13 + $0xe0] ss:$16 sps:$4 sm:$0xff]   ;;  %v2807_v0 = vld [vmem:[%s3246_s13 + $0xe8] ss:$16 sps:$4 sm:$0xff]   ;;  %v2808_v1 = vld [vmem:[%s3246_s13 + $0x104] ss:$16 sps:$4 sm:$0xff]  }
  0x7d   : > { %2425 = vmatpush3.bf16.msra.mxu0 %v2750_v23  ;;  %v2810_v2 = vld [vmem:[%s3246_s13 + $0x10c] ss:$16 sps:$4 sm:$0xff]   ;;  %v2812_v3 = vld [vmem:[%s3246_s13 + $0x100] ss:$16 sps:$4 sm:$0xff]   ;;  %v2813_v4 = vld [vmem:[%s3246_s13 + $0x108] ss:$16 sps:$4 sm:$0xff]  }
  0x7e   : > { %2537 = vmatpush3.bf16.msra.mxu1 %v2751_v24  ;;  %2426 = vmatprep.subr.bf16.mxu0 %v2752_v25  ;;  %v2814_v5 = vld [vmem:[%s3246_s13 + $0x124] ss:$16 sps:$4 sm:$0xff]   ;;  %v2816_v6 = vld [vmem:[%s3246_s13 + $0x12c] ss:$16 sps:$4 sm:$0xff]   ;;  %v2818_v7 = vld [vmem:[%s3246_s13 + $0x120] ss:$16 sps:$4 sm:$0xff]  }
  0x7f   : > { %2538 = vmatprep.subr.bf16.mxu1 %v2753_v26  ;;  %v2819_v8 = vld [vmem:[%s3246_s13 + $0x128] ss:$16 sps:$4 sm:$0xff]   ;;  %v2820_v9 = vld [vmem:[%s3246_s13 + $0x144] ss:$16 sps:$4 sm:$0xff]   ;;  %v2822_v10 = vld [vmem:[%s3246_s13 + $0x14c] ss:$16 sps:$4 sm:$0xff]  }
  0x80   : > { %v2824_v11 = vld [vmem:[%s3246_s13 + $0x140] ss:$16 sps:$4 sm:$0xff]   ;;  %v2825_v12 = vld [vmem:[%s3246_s13 + $0x148] ss:$16 sps:$4 sm:$0xff]   ;;  %v2826_v13 = vld [vmem:[%s3246_s13 + $0x164] ss:$16 sps:$4 sm:$0xff]  }
  0x81   : > { %2427 = vmatpush3.bf16.msra.mxu0 %v2754_v27  ;;  %v2828_v14 = vld [vmem:[%s3246_s13 + $0x16c] ss:$16 sps:$4 sm:$0xff]   ;;  %v2830_v15 = vld [vmem:[%s3246_s13 + $0x160] ss:$16 sps:$4 sm:$0xff]   ;;  %v2831_v16 = vld [vmem:[%s3246_s13 + $0x168] ss:$16 sps:$4 sm:$0xff]  }
  0x82   : > { %2539 = vmatpush3.bf16.msra.mxu1 %v2755_v28  ;;  %2428 = vmatprep.subr.bf16.mxu0 %v2756_v29  ;;  %v2832_v17 = vld [vmem:[%s3246_s13 + $0x184] ss:$16 sps:$4 sm:$0xff]   ;;  %v2834_v18 = vld [vmem:[%s3246_s13 + $0x18c] ss:$16 sps:$4 sm:$0xff]   ;;  %v2836_v19 = vld [vmem:[%s3246_s13 + $0x180] ss:$16 sps:$4 sm:$0xff]  }
  0x83   : > { %2540 = vmatprep.subr.bf16.mxu1 %v2757_v30  ;;  %v2837_v20 = vld [vmem:[%s3246_s13 + $0x188] ss:$16 sps:$4 sm:$0xff]   ;;  %v2838_v21 = vld [vmem:[%s3246_s13 + $0x1a4] ss:$16 sps:$4 sm:$0xff]   ;;  %v2840_v22 = vld [vmem:[%s3246_s13 + $0x1ac] ss:$16 sps:$4 sm:$0xff]  }
  0x84   : > { %v2842_v23 = vld [vmem:[%s3246_s13 + $0x1a0] ss:$16 sps:$4 sm:$0xff]   ;;  %v2843_v24 = vld [vmem:[%s3246_s13 + $0x1a8] ss:$16 sps:$4 sm:$0xff]   ;;  %v2844_v25 = vld [vmem:[%s3246_s13 + $0x1c4] ss:$16 sps:$4 sm:$0xff]  }
  0x85   : > { %2429 = vmatpush3.bf16.msra.mxu0 %v2758_v31  ;;  %v2846_v26 = vld [vmem:[%s3246_s13 + $0x1cc] ss:$16 sps:$4 sm:$0xff]   ;;  %v2848_v27 = vld [vmem:[%s3246_s13 + $0x1c0] ss:$16 sps:$4 sm:$0xff]   ;;  %v2849_v28 = vld [vmem:[%s3246_s13 + $0x1c8] ss:$16 sps:$4 sm:$0xff]  }
  0x86   : > { %2541 = vmatpush3.bf16.msra.mxu1 %v2759_v32  ;;  %v2850_v29 = vld [vmem:[%s3246_s13 + $0x1e4] ss:$16 sps:$4 sm:$0xff]   ;;  %v2852_v30 = vld [vmem:[%s3246_s13 + $0x1ec] ss:$16 sps:$4 sm:$0xff]   ;;  %v2854_v31 = vld [vmem:[%s3246_s13 + $0x1e0] ss:$16 sps:$4 sm:$0xff]  }
  0x87   : > { %v2855_v32 = vld [vmem:[%s3246_s13 + $0x1e8] ss:$16 sps:$4 sm:$0xff]  }
  0x88   : > { %1193 = vmatmul.mubr.bf16.vlgmr.msra.gmra.mrb[0].mxu0 %v2760_v33 }
  0x89   : > { %1354 = vmatmul.mubr.bf16.vlgmr.msra.gmra.mrb[0].mxu1 %v2763_v35  ;;  %1200 = vmatprep.mubr.bf16.mxu0 %v2766_v37 }
  0x8a   : > { %1361 = vmatprep.mubr.bf16.mxu1 %v2768_v38 }
  0x90   : > { %1201 = vmatmul.mubr.bf16.gmra.mrb[4].mxu0 %v2770_v39 }
  0x91   : > { %1362 = vmatmul.mubr.bf16.gmra.mrb[4].mxu1 %v2771_v40  ;;  %1208 = vmatprep.mubr.bf16.mxu0 %v2772_v41 }
  0x92   : > { %1369 = vmatprep.mubr.bf16.mxu1 %v2774_v42  ;;  %v488_v42 = vld [vmem:[#allocation2] sm:$0xff] }
  0x98   : > { %1209 = vmatmul.mubr.bf16.gmra.mrb[8].mxu0 %v2776_v43 }
  0x99   : > { %1370 = vmatmul.mubr.bf16.gmra.mrb[8].mxu1 %v2777_v44  ;;  %1216 = vmatprep.mubr.bf16.mxu0 %v2778_v45 }
  0x9a   : > { %1377 = vmatprep.mubr.bf16.mxu1 %v2780_v46 }
  0xa0   : > { %1217 = vmatmul.mubr.bf16.gmra.mrb[12].mxu0 %v2782_v47  ;;  %v489_v47 = vld [vmem:[#allocation2 + $0x8] sm:$0xff] }
  0xa1   : > { %1378 = vmatmul.mubr.bf16.gmra.mrb[12].mxu1 %v2783_v48  ;;  %1224 = vmatprep.mubr.bf16.mxu0 %v2784_v49 }
  0xa2   : > { %1385 = vmatprep.mubr.bf16.mxu1 %v2786_v50 }
  0xa8   : > { %1225 = vmatmul.mubr.bf16.gmra.mrb[16].mxu0 %v2788_v51 }
  0xa9   : > { %1386 = vmatmul.mubr.bf16.gmra.mrb[16].mxu1 %v2789_v52  ;;  %1232 = vmatprep.mubr.bf16.mxu0 %v2790_v53 }
  0xaa   : > { %1393 = vmatprep.mubr.bf16.mxu1 %v2792_v54 }
  0xb0   : > { %1233 = vmatmul.mubr.bf16.gmra.mrb[20].mxu0 %v2794_v55 }
  0xb1   : > { %1394 = vmatmul.mubr.bf16.gmra.mrb[20].mxu1 %v2795_v56  ;;  %1240 = vmatprep.mubr.bf16.mxu0 %v2796_v57 }
  0xb2   : > { %1401 = vmatprep.mubr.bf16.mxu1 %v2798_v58 }
  0xb8   : > { %1241 = vmatmul.mubr.bf16.gmra.mrb[24].mxu0 %v2800_v59 }
  0xb9   : > { %1402 = vmatmul.mubr.bf16.gmra.mrb[24].mxu1 %v2801_v60  ;;  %1248 = vmatprep.mubr.bf16.mxu0 %v2802_v61  ;;  %v490_v60 = vld [vmem:[#allocation2 + $0x10] sm:$0xff] }
  0xba   : > { %1409 = vmatprep.mubr.bf16.mxu1 %v2804_v62 }
  0xc0   : > { %1249 = vmatmul.mubr.bf16.gmra.mrb[28].mxu0 %v2806_v63 }
  0xc1   : > { %1410 = vmatmul.mubr.bf16.gmra.mrb[28].mxu1 %v2807_v0  ;;  %1256 = vmatprep.mubr.bf16.mxu0 %v2808_v1  ;;  %v491_v1 = vld [vmem:[#allocation2 + $0x18] sm:$0xff] }
  0xc2   : > { %1417 = vmatprep.mubr.bf16.mxu1 %v2810_v2 }
  0xc8   : > { %1257 = vmatmul.mubr.bf16.gmra.mrb[32].mxu0 %v2812_v3 }
  0xc9   : > { %1418 = vmatmul.mubr.bf16.gmra.mrb[32].mxu1 %v2813_v4  ;;  %1264 = vmatprep.mubr.bf16.mxu0 %v2814_v5 }
  0xca   : > { %1425 = vmatprep.mubr.bf16.mxu1 %v2816_v6 }
  0xd0   : > { %1265 = vmatmul.mubr.bf16.gmra.mrb[36].mxu0 %v2818_v7 }
  0xd1   : > { %1426 = vmatmul.mubr.bf16.gmra.mrb[36].mxu1 %v2819_v8  ;;  %1272 = vmatprep.mubr.bf16.mxu0 %v2820_v9 }
  0xd2   : > { %1433 = vmatprep.mubr.bf16.mxu1 %v2822_v10 }
  0xd8   : > { %1273 = vmatmul.mubr.bf16.gmra.mrb[40].mxu0 %v2824_v11 }
  0xd9   : > { %1434 = vmatmul.mubr.bf16.gmra.mrb[40].mxu1 %v2825_v12  ;;  %1280 = vmatprep.mubr.bf16.mxu0 %v2826_v13 }
  0xda   : > { %1441 = vmatprep.mubr.bf16.mxu1 %v2828_v14  ;;  %v492_v14 = vld [vmem:[#allocation2 + $0x20] sm:$0xff] }
  0xe0   : > { %1281 = vmatmul.mubr.bf16.gmra.mrb[44].mxu0 %v2830_v15 }
  0xe1   : > { %1442 = vmatmul.mubr.bf16.gmra.mrb[44].mxu1 %v2831_v16  ;;  %1288 = vmatprep.mubr.bf16.mxu0 %v2832_v17 }
  0xe2   : > { %1449 = vmatprep.mubr.bf16.mxu1 %v2834_v18 }
  0xe8   : > { %1289 = vmatmul.mubr.bf16.gmra.mrb[48].mxu0 %v2836_v19  ;;  %v493_v19 = vld [vmem:[#allocation2 + $0x28] sm:$0xff] }
  0xe9   : > { %1450 = vmatmul.mubr.bf16.gmra.mrb[48].mxu1 %v2837_v20  ;;  %1296 = vmatprep.mubr.bf16.mxu0 %v2838_v21 }
  0xea   : > { %1457 = vmatprep.mubr.bf16.mxu1 %v2840_v22 }
  0xf0   : > { %1297 = vmatmul.mubr.bf16.gmra.mrb[52].mxu0 %v2842_v23 }
  0xf1   : > { %1458 = vmatmul.mubr.bf16.gmra.mrb[52].mxu1 %v2843_v24  ;;  %1304 = vmatprep.mubr.bf16.mxu0 %v2844_v25 }
  0xf2   : > { %1465 = vmatprep.mubr.bf16.mxu1 %v2846_v26 }
  0xf8   : > { %1305 = vmatmul.mubr.bf16.gmra.mrb[56].mxu0 %v2848_v27 }
  0xf9   : > { %1466 = vmatmul.mubr.bf16.gmra.mrb[56].mxu1 %v2849_v28  ;;  %1312 = vmatprep.mubr.bf16.mxu0 %v2850_v29 }
  0xfa   : > { %1473 = vmatprep.mubr.bf16.mxu1 %v2852_v30 }
 0x100   : > { %1313 = vmatmul.mubr.bf16.gmra.mrb[60].mxu0 %v2854_v31 }
 0x101   : > { %1474 = vmatmul.mubr.bf16.gmra.mrb[60].mxu1 %v2855_v32  ;;  %v494_v32 = vld [vmem:[#allocation2 + $0x30] sm:$0xff] }
 0x15b   : > { %v2430_v33 = vpop.f32.mrb[0].mxu0 }
 0x15c   : > { %v2542_v34 = vpop.f32.mrb[0].mxu1  ;;  %v2431_v35 = vpop.f32.mrb[1].mxu0 }
 0x15d   : > { %v2432_v36 = vadd.f32 %v2431_v35, %v2430_v33  ;;  %v2543_v37 = vpop.f32.mrb[1].mxu1  ;;  %v2433_v38 = vpop.f32.mrb[2].mxu0 }
 0x15e   : > { %v2544_v39 = vadd.f32 %v2543_v37, %v2542_v34  ;;  %v2545_v40 = vpop.f32.mrb[2].mxu1  ;;  %v2434_v41 = vpop.f32.mrb[3].mxu0  ;;  %v495_v37 = vld [vmem:[#allocation2 + $0x38] sm:$0xff] }
 0x15f   : > { %v2435_v43 = vadd.f32 %v2434_v41, %v2433_v38  ;;  %v2546_v44 = vpop.f32.mrb[3].mxu1 }
 0x160   : > { %v1356_v45 = vadd.f32 %v2544_v39, %v2432_v36  ;;  %v2547_v46 = vadd.f32 %v2546_v44, %v2545_v40 }
 0x162   : > { %v1482_v48 = vadd.f32 %v1356_v45, %v488_v42  ;;  %v1359_v49 = vadd.f32 %v2547_v46, %v2435_v43 }
 0x163   : > { %v2436_v50 = vpop.f32.mrb[4].mxu0 }
 0x164   : > { %1514 = vst [vmem:[#allocation2] sm:$0xff] %v1482_v48  ;;  %v1483_v51 = vadd.f32 %v1359_v49, %v489_v47  ;;  %v2548_v52 = vpop.f32.mrb[4].mxu1  ;;  %v2437_v53 = vpop.f32.mrb[5].mxu0 }
 0x165   : > { %v2438_v54 = vadd.f32 %v2437_v53, %v2436_v50  ;;  %v2549_v55 = vpop.f32.mrb[5].mxu1  ;;  %v2439_v56 = vpop.f32.mrb[6].mxu0  ;;  %v496_v50 = vld [vmem:[#allocation2 + $0x40] sm:$0xff] }
 0x166   : > { %1515 = vst [vmem:[#allocation2 + $0x8] sm:$0xff] %v1483_v51  ;;  %v2550_v57 = vadd.f32 %v2549_v55, %v2548_v52  ;;  %v2551_v58 = vpop.f32.mrb[6].mxu1  ;;  %v2440_v59 = vpop.f32.mrb[7].mxu0  ;;  %v497_v55 = vld [vmem:[#allocation2 + $0x48] sm:$0xff] }
 0x167   : > { %v2441_v61 = vadd.f32 %v2440_v59, %v2439_v56  ;;  %v2552_v62 = vpop.f32.mrb[7].mxu1 }
 0x168   : > { %v1364_v63 = vadd.f32 %v2550_v57, %v2438_v54  ;;  %v2553_v0 = vadd.f32 %v2552_v62, %v2551_v58 }
 0x16a   : > { %v1484_v2 = vadd.f32 %v1364_v63, %v490_v60  ;;  %v1367_v3 = vadd.f32 %v2553_v0, %v2441_v61 }
 0x16b   : > { %v2442_v4 = vpop.f32.mrb[8].mxu0 }
 0x16c   : > { %1516 = vst [vmem:[#allocation2 + $0x10] sm:$0xff] %v1484_v2  ;;  %v1485_v5 = vadd.f32 %v1367_v3, %v491_v1  ;;  %v2554_v6 = vpop.f32.mrb[8].mxu1  ;;  %v2443_v7 = vpop.f32.mrb[9].mxu0 }
 0x16d   : > { %v2444_v8 = vadd.f32 %v2443_v7, %v2442_v4  ;;  %v2555_v9 = vpop.f32.mrb[9].mxu1  ;;  %v2445_v10 = vpop.f32.mrb[10].mxu0  ;;  %v498_v4 = vld [vmem:[#allocation2 + $0x50] sm:$0xff] }
 0x16e   : > { %1517 = vst [vmem:[#allocation2 + $0x18] sm:$0xff] %v1485_v5  ;;  %v2556_v11 = vadd.f32 %v2555_v9, %v2554_v6  ;;  %v2557_v12 = vpop.f32.mrb[10].mxu1  ;;  %v2446_v13 = vpop.f32.mrb[11].mxu0  ;;  %v499_v9 = vld [vmem:[#allocation2 + $0x58] sm:$0xff] }
 0x16f   : > { %v2447_v15 = vadd.f32 %v2446_v13, %v2445_v10  ;;  %v2558_v16 = vpop.f32.mrb[11].mxu1 }
 0x170   : > { %v1372_v17 = vadd.f32 %v2556_v11, %v2444_v8  ;;  %v2559_v18 = vadd.f32 %v2558_v16, %v2557_v12 }
 0x172   : > { %v1486_v20 = vadd.f32 %v1372_v17, %v492_v14  ;;  %v1375_v21 = vadd.f32 %v2559_v18, %v2447_v15 }
 0x173   : > { %v2448_v22 = vpop.f32.mrb[12].mxu0 }
 0x174   : > { %1518 = vst [vmem:[#allocation2 + $0x20] sm:$0xff] %v1486_v20  ;;  %v1487_v23 = vadd.f32 %v1375_v21, %v493_v19  ;;  %v2560_v24 = vpop.f32.mrb[12].mxu1  ;;  %v2449_v25 = vpop.f32.mrb[13].mxu0 }
 0x175   : > { %v2450_v26 = vadd.f32 %v2449_v25, %v2448_v22  ;;  %v2561_v27 = vpop.f32.mrb[13].mxu1  ;;  %v2451_v28 = vpop.f32.mrb[14].mxu0  ;;  %v500_v22 = vld [vmem:[#allocation2 + $0x60] sm:$0xff] }
 0x176   : > { %1519 = vst [vmem:[#allocation2 + $0x28] sm:$0xff] %v1487_v23  ;;  %v2562_v29 = vadd.f32 %v2561_v27, %v2560_v24  ;;  %v2563_v30 = vpop.f32.mrb[14].mxu1  ;;  %v2452_v31 = vpop.f32.mrb[15].mxu0  ;;  %v501_v27 = vld [vmem:[#allocation2 + $0x68] sm:$0xff] }
 0x177   : > { %v2453_v33 = vadd.f32 %v2452_v31, %v2451_v28  ;;  %v2564_v34 = vpop.f32.mrb[15].mxu1 }
 0x178   : > { %v1380_v35 = vadd.f32 %v2562_v29, %v2450_v26  ;;  %v2565_v36 = vadd.f32 %v2564_v34, %v2563_v30 }
 0x17a   : > { %v1488_v38 = vadd.f32 %v1380_v35, %v494_v32  ;;  %v1383_v39 = vadd.f32 %v2565_v36, %v2453_v33 }
 0x17b   : > { %v2454_v40 = vpop.f32.mrb[16].mxu0 }
 0x17c   : > { %1520 = vst [vmem:[#allocation2 + $0x30] sm:$0xff] %v1488_v38  ;;  %v1489_v41 = vadd.f32 %v1383_v39, %v495_v37  ;;  %v2566_v42 = vpop.f32.mrb[16].mxu1  ;;  %v2455_v43 = vpop.f32.mrb[17].mxu0 }
 0x17d   : > { %v2456_v44 = vadd.f32 %v2455_v43, %v2454_v40  ;;  %v2567_v45 = vpop.f32.mrb[17].mxu1  ;;  %v2457_v46 = vpop.f32.mrb[18].mxu0  ;;  %v502_v40 = vld [vmem:[#allocation2 + $0x70] sm:$0xff] }
 0x17e   : > { %1521 = vst [vmem:[#allocation2 + $0x38] sm:$0xff] %v1489_v41  ;;  %v2568_v47 = vadd.f32 %v2567_v45, %v2566_v42  ;;  %v2569_v48 = vpop.f32.mrb[18].mxu1  ;;  %v2458_v49 = vpop.f32.mrb[19].mxu0  ;;  %v503_v45 = vld [vmem:[#allocation2 + $0x78] sm:$0xff] }
 0x17f   : > { %v2459_v51 = vadd.f32 %v2458_v49, %v2457_v46  ;;  %v2570_v52 = vpop.f32.mrb[19].mxu1 }
 0x180   : > { %v1388_v53 = vadd.f32 %v2568_v47, %v2456_v44  ;;  %v2571_v54 = vadd.f32 %v2570_v52, %v2569_v48 }
 0x182   : > { %v1490_v56 = vadd.f32 %v1388_v53, %v496_v50  ;;  %v1391_v57 = vadd.f32 %v2571_v54, %v2459_v51 }
 0x183   : > { %v2460_v58 = vpop.f32.mrb[20].mxu0 }
 0x184   : > { %1522 = vst [vmem:[#allocation2 + $0x40] sm:$0xff] %v1490_v56  ;;  %v1491_v59 = vadd.f32 %v1391_v57, %v497_v55  ;;  %v2572_v60 = vpop.f32.mrb[20].mxu1  ;;  %v2461_v61 = vpop.f32.mrb[21].mxu0 }
 0x185   : > { %v2462_v62 = vadd.f32 %v2461_v61, %v2460_v58  ;;  %v2573_v63 = vpop.f32.mrb[21].mxu1  ;;  %v2463_v0 = vpop.f32.mrb[22].mxu0  ;;  %v504_v58 = vld [vmem:[#allocation2 + $0x80] sm:$0xff] }
 0x186   : > { %1523 = vst [vmem:[#allocation2 + $0x48] sm:$0xff] %v1491_v59  ;;  %v2574_v1 = vadd.f32 %v2573_v63, %v2572_v60  ;;  %v2575_v2 = vpop.f32.mrb[22].mxu1  ;;  %v2464_v3 = vpop.f32.mrb[23].mxu0  ;;  %v505_v63 = vld [vmem:[#allocation2 + $0x88] sm:$0xff] }
 0x187   : > { %v2465_v5 = vadd.f32 %v2464_v3, %v2463_v0  ;;  %v2576_v6 = vpop.f32.mrb[23].mxu1 }
 0x188   : > { %v1396_v7 = vadd.f32 %v2574_v1, %v2462_v62  ;;  %v2577_v8 = vadd.f32 %v2576_v6, %v2575_v2 }
 0x18a   : > { %v1492_v10 = vadd.f32 %v1396_v7, %v498_v4  ;;  %v1399_v11 = vadd.f32 %v2577_v8, %v2465_v5 }
 0x18b   : > { %v2466_v12 = vpop.f32.mrb[24].mxu0 }
 0x18c   : > { %1524 = vst [vmem:[#allocation2 + $0x50] sm:$0xff] %v1492_v10  ;;  %v1493_v13 = vadd.f32 %v1399_v11, %v499_v9  ;;  %v2578_v14 = vpop.f32.mrb[24].mxu1  ;;  %v2467_v15 = vpop.f32.mrb[25].mxu0 }
 0x18d   : > { %v2468_v16 = vadd.f32 %v2467_v15, %v2466_v12  ;;  %v2579_v17 = vpop.f32.mrb[25].mxu1  ;;  %v2469_v18 = vpop.f32.mrb[26].mxu0  ;;  %v506_v12 = vld [vmem:[#allocation2 + $0x90] sm:$0xff] }
 0x18e   : > { %1525 = vst [vmem:[#allocation2 + $0x58] sm:$0xff] %v1493_v13  ;;  %v2580_v19 = vadd.f32 %v2579_v17, %v2578_v14  ;;  %v2581_v20 = vpop.f32.mrb[26].mxu1  ;;  %v2470_v21 = vpop.f32.mrb[27].mxu0  ;;  %v507_v17 = vld [vmem:[#allocation2 + $0x98] sm:$0xff] }
 0x18f   : > { %v2471_v23 = vadd.f32 %v2470_v21, %v2469_v18  ;;  %v2582_v24 = vpop.f32.mrb[27].mxu1 }
 0x190   : > { %v1404_v25 = vadd.f32 %v2580_v19, %v2468_v16  ;;  %v2583_v26 = vadd.f32 %v2582_v24, %v2581_v20 }
 0x192   : > { %v1494_v28 = vadd.f32 %v1404_v25, %v500_v22  ;;  %v1407_v29 = vadd.f32 %v2583_v26, %v2471_v23 }
 0x193   : > { %v2472_v30 = vpop.f32.mrb[28].mxu0 }
 0x194   : > { %1526 = vst [vmem:[#allocation2 + $0x60] sm:$0xff] %v1494_v28  ;;  %v1495_v31 = vadd.f32 %v1407_v29, %v501_v27  ;;  %v2584_v32 = vpop.f32.mrb[28].mxu1  ;;  %v2473_v33 = vpop.f32.mrb[29].mxu0 }
 0x195   : > { %v2474_v34 = vadd.f32 %v2473_v33, %v2472_v30  ;;  %v2585_v35 = vpop.f32.mrb[29].mxu1  ;;  %v2475_v36 = vpop.f32.mrb[30].mxu0  ;;  %v508_v30 = vld [vmem:[#allocation2 + $0xa0] sm:$0xff] }
 0x196   : > { %1527 = vst [vmem:[#allocation2 + $0x68] sm:$0xff] %v1495_v31  ;;  %v2586_v37 = vadd.f32 %v2585_v35, %v2584_v32  ;;  %v2587_v38 = vpop.f32.mrb[30].mxu1  ;;  %v2476_v39 = vpop.f32.mrb[31].mxu0  ;;  %v509_v35 = vld [vmem:[#allocation2 + $0xa8] sm:$0xff] }
 0x197   : > { %v2477_v41 = vadd.f32 %v2476_v39, %v2475_v36  ;;  %v2588_v42 = vpop.f32.mrb[31].mxu1 }
 0x198   : > { %v1412_v43 = vadd.f32 %v2586_v37, %v2474_v34  ;;  %v2589_v44 = vadd.f32 %v2588_v42, %v2587_v38 }
 0x19a   : > { %v1496_v46 = vadd.f32 %v1412_v43, %v502_v40  ;;  %v1415_v47 = vadd.f32 %v2589_v44, %v2477_v41 }
 0x19b   : > { %v2478_v48 = vpop.f32.mrb[32].mxu0 }
 0x19c   : > { %1528 = vst [vmem:[#allocation2 + $0x70] sm:$0xff] %v1496_v46  ;;  %v1497_v49 = vadd.f32 %v1415_v47, %v503_v45  ;;  %v2590_v50 = vpop.f32.mrb[32].mxu1  ;;  %v2479_v51 = vpop.f32.mrb[33].mxu0 }
 0x19d   : > { %v2480_v52 = vadd.f32 %v2479_v51, %v2478_v48  ;;  %v2591_v53 = vpop.f32.mrb[33].mxu1  ;;  %v2481_v54 = vpop.f32.mrb[34].mxu0  ;;  %v510_v48 = vld [vmem:[#allocation2 + $0xb0] sm:$0xff] }
 0x19e   : > { %1529 = vst [vmem:[#allocation2 + $0x78] sm:$0xff] %v1497_v49  ;;  %v2592_v55 = vadd.f32 %v2591_v53, %v2590_v50  ;;  %v2593_v56 = vpop.f32.mrb[34].mxu1  ;;  %v2482_v57 = vpop.f32.mrb[35].mxu0  ;;  %v511_v53 = vld [vmem:[#allocation2 + $0xb8] sm:$0xff] }
 0x19f   : > { %v2483_v59 = vadd.f32 %v2482_v57, %v2481_v54  ;;  %v2594_v60 = vpop.f32.mrb[35].mxu1 }
 0x1a0   : > { %v1420_v61 = vadd.f32 %v2592_v55, %v2480_v52  ;;  %v2595_v62 = vadd.f32 %v2594_v60, %v2593_v56 }
 0x1a2   : > { %v1498_v0 = vadd.f32 %v1420_v61, %v504_v58  ;;  %v1423_v1 = vadd.f32 %v2595_v62, %v2483_v59 }
 0x1a3   : > { %v2484_v2 = vpop.f32.mrb[36].mxu0 }
 0x1a4   : > { %1530 = vst [vmem:[#allocation2 + $0x80] sm:$0xff] %v1498_v0  ;;  %v1499_v3 = vadd.f32 %v1423_v1, %v505_v63  ;;  %v2596_v4 = vpop.f32.mrb[36].mxu1  ;;  %v2485_v5 = vpop.f32.mrb[37].mxu0 }
 0x1a5   : > { %v2486_v6 = vadd.f32 %v2485_v5, %v2484_v2  ;;  %v2597_v7 = vpop.f32.mrb[37].mxu1  ;;  %v2487_v8 = vpop.f32.mrb[38].mxu0  ;;  %v512_v2 = vld [vmem:[#allocation2 + $0xc0] sm:$0xff] }
 0x1a6   : > { %1531 = vst [vmem:[#allocation2 + $0x88] sm:$0xff] %v1499_v3  ;;  %v2598_v9 = vadd.f32 %v2597_v7, %v2596_v4  ;;  %v2599_v10 = vpop.f32.mrb[38].mxu1  ;;  %v2488_v11 = vpop.f32.mrb[39].mxu0  ;;  %v513_v7 = vld [vmem:[#allocation2 + $0xc8] sm:$0xff] }
 0x1a7   : > { %v2489_v13 = vadd.f32 %v2488_v11, %v2487_v8  ;;  %v2600_v14 = vpop.f32.mrb[39].mxu1 }
 0x1a8   : > { %v1428_v15 = vadd.f32 %v2598_v9, %v2486_v6  ;;  %v2601_v16 = vadd.f32 %v2600_v14, %v2599_v10 }
 0x1aa   : > { %v1500_v18 = vadd.f32 %v1428_v15, %v506_v12  ;;  %v1431_v19 = vadd.f32 %v2601_v16, %v2489_v13 }
 0x1ab   : > { %v2490_v20 = vpop.f32.mrb[40].mxu0 }
 0x1ac   : > { %1532 = vst [vmem:[#allocation2 + $0x90] sm:$0xff] %v1500_v18  ;;  %v1501_v21 = vadd.f32 %v1431_v19, %v507_v17  ;;  %v2602_v22 = vpop.f32.mrb[40].mxu1  ;;  %v2491_v23 = vpop.f32.mrb[41].mxu0 }
 0x1ad   : > { %v2492_v24 = vadd.f32 %v2491_v23, %v2490_v20  ;;  %v2603_v25 = vpop.f32.mrb[41].mxu1  ;;  %v2493_v26 = vpop.f32.mrb[42].mxu0  ;;  %v514_v20 = vld [vmem:[#allocation2 + $0xd0] sm:$0xff] }
 0x1ae   : > { %1533 = vst [vmem:[#allocation2 + $0x98] sm:$0xff] %v1501_v21  ;;  %v2604_v27 = vadd.f32 %v2603_v25, %v2602_v22  ;;  %v2605_v28 = vpop.f32.mrb[42].mxu1  ;;  %v2494_v29 = vpop.f32.mrb[43].mxu0  ;;  %v515_v25 = vld [vmem:[#allocation2 + $0xd8] sm:$0xff] }
 0x1af   : > { %v2495_v31 = vadd.f32 %v2494_v29, %v2493_v26  ;;  %v2606_v32 = vpop.f32.mrb[43].mxu1 }
 0x1b0   : > { %v1436_v33 = vadd.f32 %v2604_v27, %v2492_v24  ;;  %v2607_v34 = vadd.f32 %v2606_v32, %v2605_v28 }
 0x1b2   : > { %v1502_v36 = vadd.f32 %v1436_v33, %v508_v30  ;;  %v1439_v37 = vadd.f32 %v2607_v34, %v2495_v31 }
 0x1b3   : > { %v2496_v38 = vpop.f32.mrb[44].mxu0 }
 0x1b4   : > { %1534 = vst [vmem:[#allocation2 + $0xa0] sm:$0xff] %v1502_v36  ;;  %v1503_v39 = vadd.f32 %v1439_v37, %v509_v35  ;;  %v2608_v40 = vpop.f32.mrb[44].mxu1  ;;  %v2497_v41 = vpop.f32.mrb[45].mxu0 }
 0x1b5   : > { %v2498_v42 = vadd.f32 %v2497_v41, %v2496_v38  ;;  %v2609_v43 = vpop.f32.mrb[45].mxu1  ;;  %v2499_v44 = vpop.f32.mrb[46].mxu0  ;;  %v516_v38 = vld [vmem:[#allocation2 + $0xe0] sm:$0xff] }
 0x1b6   : > { %1535 = vst [vmem:[#allocation2 + $0xa8] sm:$0xff] %v1503_v39  ;;  %v2610_v45 = vadd.f32 %v2609_v43, %v2608_v40  ;;  %v2611_v46 = vpop.f32.mrb[46].mxu1  ;;  %v2500_v47 = vpop.f32.mrb[47].mxu0  ;;  %v517_v43 = vld [vmem:[#allocation2 + $0xe8] sm:$0xff] }
 0x1b7   : > { %v2501_v49 = vadd.f32 %v2500_v47, %v2499_v44  ;;  %v2612_v50 = vpop.f32.mrb[47].mxu1 }
 0x1b8   : > { %v1444_v51 = vadd.f32 %v2610_v45, %v2498_v42  ;;  %v2613_v52 = vadd.f32 %v2612_v50, %v2611_v46 }
 0x1ba   : > { %v1504_v54 = vadd.f32 %v1444_v51, %v510_v48  ;;  %v1447_v55 = vadd.f32 %v2613_v52, %v2501_v49 }
 0x1bb   : > { %v2502_v56 = vpop.f32.mrb[48].mxu0 }
 0x1bc   : > { %1536 = vst [vmem:[#allocation2 + $0xb0] sm:$0xff] %v1504_v54  ;;  %v1505_v57 = vadd.f32 %v1447_v55, %v511_v53  ;;  %v2614_v58 = vpop.f32.mrb[48].mxu1  ;;  %v2503_v59 = vpop.f32.mrb[49].mxu0 }
 0x1bd   : > { %v2504_v60 = vadd.f32 %v2503_v59, %v2502_v56  ;;  %v2615_v61 = vpop.f32.mrb[49].mxu1  ;;  %v2505_v62 = vpop.f32.mrb[50].mxu0  ;;  %v518_v56 = vld [vmem:[#allocation2 + $0xf0] sm:$0xff] }
 0x1be   : > { %1537 = vst [vmem:[#allocation2 + $0xb8] sm:$0xff] %v1505_v57  ;;  %v2616_v63 = vadd.f32 %v2615_v61, %v2614_v58  ;;  %v2617_v0 = vpop.f32.mrb[50].mxu1  ;;  %v2506_v1 = vpop.f32.mrb[51].mxu0  ;;  %v519_v61 = vld [vmem:[#allocation2 + $0xf8] sm:$0xff] }
 0x1bf   : > { %v2507_v3 = vadd.f32 %v2506_v1, %v2505_v62  ;;  %v2618_v4 = vpop.f32.mrb[51].mxu1  ;;  %v1550_v1 = vld [vmem:[#allocation2] sm:$0xff] (!%p2167_p6) }
 0x1c0   : > { %v1452_v5 = vadd.f32 %v2616_v63, %v2504_v60  ;;  %v2619_v6 = vadd.f32 %v2618_v4, %v2617_v0 }
 0x1c2   : > { %v1506_v8 = vadd.f32 %v1452_v5, %v512_v2  ;;  %v1455_v9 = vadd.f32 %v2619_v6, %v2507_v3  ;;  %v1551_v2 = vld [vmem:[#allocation2 + $0x8] sm:$0xff] (!%p2167_p6)  ;;  %v3351_v3 = vld [vmem:[%s3488_s2] ss:$0 sm:$0xff] (!%p2167_p6) }
 0x1c3   : > { %v2508_v10 = vpop.f32.mrb[52].mxu0  ;;  %v1589_v4 = vadd.f32 (!%p2167_p6), %v3351_v3, %v1550_v1  ;;  %v1590_v5 = vadd.f32 (!%p2167_p6), %v3351_v3, %v1551_v2  ;;  %v2241_v6 = vld [vmem:[%s3244_s18] sm:$0xff] (!%p2167_p6)  }
 0x1c4   : > { %1538 = vst [vmem:[#allocation2 + $0xc0] sm:$0xff] %v1506_v8  ;;  %v1507_v11 = vadd.f32 %v1455_v9, %v513_v7  ;;  %v2620_v12 = vpop.f32.mrb[52].mxu1  ;;  %v2509_v13 = vpop.f32.mrb[53].mxu0  ;;  %v1552_v7 = vld [vmem:[#allocation2 + $0x10] sm:$0xff] (!%p2167_p6)  ;;  %v1553_v8 = vld [vmem:[#allocation2 + $0x18] sm:$0xff] (!%p2167_p6)  ;;  %v2242_v9 = vunpack.c.l.bf16 (!%p2167_p6), %v2241_v6 }
 0x1c5   : > { %v2510_v14 = vadd.f32 %v2509_v13, %v2508_v10  ;;  %v2621_v15 = vpop.f32.mrb[53].mxu1  ;;  %v2511_v16 = vpop.f32.mrb[54].mxu0  ;;  %v2243_v10 = vunpack.c.h.bf16 (!%p2167_p6), %v2241_v6  ;;  %v2384_v13 = vld [vmem:[%s3244_s18 + $0x8] sm:$0xff] (!%p2167_p6)   ;;  %v1564_v6 = vld [vmem:[#allocation2 + $0x70] sm:$0xff] (!%p2167_p6) }
 0x1c6   : > { %1539 = vst [vmem:[#allocation2 + $0xc8] sm:$0xff] %v1507_v11  ;;  %v2622_v17 = vadd.f32 %v2621_v15, %v2620_v12  ;;  %v2623_v18 = vpop.f32.mrb[54].mxu1  ;;  %v2512_v19 = vpop.f32.mrb[55].mxu0  ;;  %v1591_v11 = vadd.f32 (!%p2167_p6), %v3351_v3, %v1552_v7  ;;  %v1592_v12 = vadd.f32 (!%p2167_p6), %v3351_v3, %v1553_v8  ;;  %v1555_v15 = vld [vmem:[#allocation2 + $0x28] sm:$0xff] (!%p2167_p6)  ;;  %v1565_v7 = vld [vmem:[#allocation2 + $0x78] sm:$0xff] (!%p2167_p6) }
 0x1c7   : > { %v2513_v21 = vadd.f32 %v2512_v19, %v2511_v16  ;;  %v2624_v22 = vpop.f32.mrb[55].mxu1  ;;  %v2246_v16 = vunpack.c.l.bf16 (!%p2167_p6), %v2384_v13  ;;  %v1594_v19 = vadd.f32 (!%p2167_p6), %v3351_v3, %v1555_v15 }
 0x1c8   : > { %v1460_v23 = vadd.f32 %v2622_v17, %v2510_v14  ;;  %v2625_v24 = vadd.f32 %v2624_v22, %v2623_v18  ;;  %v1554_v14 = vld [vmem:[#allocation2 + $0x20] sm:$0xff] (!%p2167_p6)  ;;  %v2247_v17 = vunpack.c.h.bf16 (!%p2167_p6), %v2384_v13  ;;  %v1557_v22 = vld [vmem:[#allocation2 + $0x38] sm:$0xff] (!%p2167_p6) }
 0x1c9   : > { %v1593_v18 = vadd.f32 (!%p2167_p6), %v3351_v3, %v1554_v14 }
 0x1ca   : > { %v1508_v26 = vadd.f32 %v1460_v23, %v514_v20  ;;  %v1463_v27 = vadd.f32 %v2625_v24, %v2513_v21  ;;  %v2385_v20 = vld [vmem:[%s3244_s18 + $0x10] sm:$0xff] (!%p2167_p6)   ;;  %v1685_v23 = vadd.f32 (!%p2167_p6), %v2242_v9, %v1589_v4  ;;  %v1686_v24 = vadd.f32 (!%p2167_p6), %v2243_v10, %v1590_v5 }
 0x1cb   : > { %v2514_v28 = vpop.f32.mrb[56].mxu0  ;;  %v1556_v21 = vld [vmem:[#allocation2 + $0x30] sm:$0xff] (!%p2167_p6) }
 0x1cc   : > { %1540 = vst [vmem:[#allocation2 + $0xd0] sm:$0xff] %v1508_v26  ;;  %v1509_v29 = vadd.f32 %v1463_v27, %v515_v25  ;;  %v2626_v30 = vpop.f32.mrb[56].mxu1  ;;  %v2515_v31 = vpop.f32.mrb[57].mxu0  ;;  %v2250_v25 = vunpack.c.l.bf16 (!%p2167_p6), %v2385_v20  ;;  %v2251_v26 = vunpack.c.h.bf16 (!%p2167_p6), %v2385_v20  ;;  %v2386_v27 = vld [vmem:[%s3244_s18 + $0x18] sm:$0xff] (!%p2167_p6)  }
 0x1cd   : > { %v2516_v32 = vadd.f32 %v2515_v31, %v2514_v28  ;;  %v2627_v33 = vpop.f32.mrb[57].mxu1  ;;  %v2517_v34 = vpop.f32.mrb[58].mxu0  ;;  %v1687_v28 = vadd.f32 (!%p2167_p6), %v2246_v16, %v1591_v11  ;;  %v1596_v31 = vadd.f32 (!%p2167_p6), %v3351_v3, %v1557_v22  ;;  %v1604_v22 = vadd.f32 (!%p2167_p6), %v3351_v3, %v1565_v7 }
 0x1ce   : > { %1541 = vst [vmem:[#allocation2 + $0xd8] sm:$0xff] %v1509_v29  ;;  %v2628_v35 = vadd.f32 %v2627_v33, %v2626_v30  ;;  %v2629_v36 = vpop.f32.mrb[58].mxu1  ;;  %v2518_v37 = vpop.f32.mrb[59].mxu0  ;;  %v1688_v29 = vadd.f32 (!%p2167_p6), %v2247_v17, %v1592_v12  ;;  %v1595_v30 = vadd.f32 (!%p2167_p6), %v3351_v3, %v1556_v21  ;;  %v1717_v33 = vmax.f32 (!%p2167_p6), %v1685_v23, 0.0  ;;  %v2390_v12 = vld [vmem:[%s3244_s18 + $0x38] sm:$0xff] (!%p2167_p6)   ;;  %v1566_v17 = vld [vmem:[#allocation2 + $0x80] sm:$0xff] (!%p2167_p6) }
 0x1cf   : > { %v2519_v39 = vadd.f32 %v2518_v37, %v2517_v34  ;;  %v2630_v40 = vpop.f32.mrb[59].mxu1  ;;  %v1718_v34 = vmax.f32 (!%p2167_p6), %v1686_v24, 0.0  ;;  %v1559_v37 = vld [vmem:[#allocation2 + $0x48] sm:$0xff] (!%p2167_p6)  ;;  %v1603_v21 = vadd.f32 (!%p2167_p6), %v3351_v3, %v1564_v6  ;;  %v2391_v23 = vld [vmem:[%s3244_s18 + $0x40] sm:$0xff] (!%p2167_p6)  }
 0x1d0   : > { %v1468_v41 = vadd.f32 %v2628_v35, %v2516_v32  ;;  %v2631_v42 = vadd.f32 %v2630_v40, %v2629_v36  ;;  %v1558_v32 = vld [vmem:[#allocation2 + $0x40] sm:$0xff] (!%p2167_p6)  ;;  %v1689_v35 = vadd.f32 (!%p2167_p6), %v2250_v25, %v1593_v18  ;;  %v1690_v36 = vadd.f32 (!%p2167_p6), %v2251_v26, %v1594_v19  ;;  %v1567_v18 = vld [vmem:[#allocation2 + $0x88] sm:$0xff] (!%p2167_p6) }
 0x1d1   : > { %v2254_v40 = vunpack.c.l.bf16 (!%p2167_p6), %v2386_v27 }
 0x1d2   : > { %v1510_v44 = vadd.f32 %v1468_v41, %v516_v38  ;;  %v1471_v45 = vadd.f32 %v2631_v42, %v2519_v39  ;;  %v1719_v38 = vmax.f32 (!%p2167_p6), %v1687_v28, 0.0  ;;  %v1720_v39 = vmax.f32 (!%p2167_p6), %v1688_v29, 0.0  ;;  %v2387_v42 = vld [vmem:[%s3244_s18 + $0x20] sm:$0xff] (!%p2167_p6)   ;;  %v1568_v28 = vld [vmem:[#allocation2 + $0x90] sm:$0xff] (!%p2167_p6)  ;;  %v1569_v29 = vld [vmem:[#allocation2 + $0x98] sm:$0xff] (!%p2167_p6) }
 0x1d3   : > { %v2520_v46 = vpop.f32.mrb[60].mxu0  ;;  %v2255_v41 = vunpack.c.h.bf16 (!%p2167_p6), %v2386_v27  ;;  %v2270_v27 = vunpack.c.l.bf16 (!%p2167_p6), %v2390_v12 }
 0x1d4   : > { %1542 = vst [vmem:[#allocation2 + $0xe0] sm:$0xff] %v1510_v44  ;;  %v1511_v47 = vadd.f32 %v1471_v45, %v517_v43  ;;  %v2632_v48 = vpop.f32.mrb[60].mxu1  ;;  %v2521_v49 = vpop.f32.mrb[61].mxu0  ;;  %v1560_v43 = vld [vmem:[#allocation2 + $0x50] sm:$0xff] (!%p2167_p6)  ;;  %v2307_v44 = vpack.c.bf16 (!%p2167_p6), %v1718_v34, %v1717_v33  ;;  %v1721_v45 = vmax.f32 (!%p2167_p6), %v1689_v35, 0.0  ;;  %v1606_v33 = vadd.f32 (!%p2167_p6), %v3351_v3, %v1567_v18  ;;  %v2392_v34 = vld [vmem:[%s3244_s18 + $0x48] sm:$0xff] (!%p2167_p6)  }
 0x1d5   : > { %v2522_v50 = vadd.f32 %v2521_v49, %v2520_v46  ;;  %v2633_v51 = vpop.f32.mrb[61].mxu1  ;;  %v2523_v52 = vpop.f32.mrb[62].mxu0  ;;  %v1722_v46 = vmax.f32 (!%p2167_p6), %v1690_v36, 0.0  ;;  %v2388_v49 = vld [vmem:[%s3244_s18 + $0x28] sm:$0xff] (!%p2167_p6)  }
 0x1d6   : > { %1543 = vst [vmem:[#allocation2 + $0xe8] sm:$0xff] %v1511_v47  ;;  %v2634_v53 = vadd.f32 %v2633_v51, %v2632_v48  ;;  %v2635_v54 = vpop.f32.mrb[62].mxu1  ;;  %v2524_v55 = vpop.f32.mrb[63].mxu0  ;;  %v1597_v47 = vadd.f32 (!%p2167_p6), %v3351_v3, %v1558_v32  ;;  %v1561_v48 = vld [vmem:[#allocation2 + $0x58] sm:$0xff] (!%p2167_p6)  ;;  %v1691_v51 = vadd.f32 (!%p2167_p6), %v2254_v40, %v1595_v30  ;;  %2308 = vst [vmem:[%s3248_s14] sm:$0xff] (!%p2167_p6), %v2307_v44   ;;  %v2263_v4 = vunpack.c.h.bf16 (!%p2167_p6), %v2388_v49  ;;  %v1571_v44 = vld [vmem:[#allocation2 + $0xa8] sm:$0xff] (!%p2167_p6) }
 0x1d7   : > { %v2525_v57 = vadd.f32 %v2524_v55, %v2523_v52  ;;  %v2636_v58 = vpop.f32.mrb[63].mxu1  ;;  %v1692_v52 = vadd.f32 (!%p2167_p6), %v2255_v41, %v1596_v31  ;;  %v2317_v55 = vpack.c.bf16 (!%p2167_p6), %v1722_v46, %v1721_v45  ;;  %v2271_v31 = vunpack.c.h.bf16 (!%p2167_p6), %v2390_v12  ;;  %v2393_v45 = vld [vmem:[%s3244_s18 + $0x50] sm:$0xff] (!%p2167_p6)  }
 0x1d8   : > { %v1476_v59 = vadd.f32 %v2634_v53, %v2522_v50  ;;  %v2637_v60 = vadd.f32 %v2636_v58, %v2635_v54  ;;  %1549 = sbr.rel (%p2167_p6) target bundleno = 506 (0x1fa), region = 67  ;;  %v2312_v50 = vpack.c.bf16 (!%p2167_p6), %v1720_v39, %v1719_v38  ;;  %v1598_v53 = vadd.f32 (!%p2167_p6), %v3351_v3, %v1559_v37  ;;  %v1562_v54 = vld [vmem:[#allocation2 + $0x60] sm:$0xff] (!%p2167_p6) }
 0x1d9   : > { %v1599_v58 = vadd.f32 (!%p2167_p6), %v3351_v3, %v1560_v43  ;;  %2400 = vst [vmem:[%s3248_s14 + $0x10] sm:$0xff] (!%p2167_p6), %v2317_v55   ;;  %v1601_v5 = vadd.f32 (!%p2167_p6), %v3351_v3, %v1562_v54  ;;  %v1605_v32 = vadd.f32 (!%p2167_p6), %v3351_v3, %v1566_v17  ;;  %v1699_v37 = vadd.f32 (!%p2167_p6), %v2270_v27, %v1603_v21  ;;  %v1570_v39 = vld [vmem:[#allocation2 + $0xa0] sm:$0xff] (!%p2167_p6)  ;;  %v1572_v54 = vld [vmem:[#allocation2 + $0xb0] sm:$0xff] (!%p2167_p6)  ;;  %v1573_v55 = vld [vmem:[#allocation2 + $0xb8] sm:$0xff] (!%p2167_p6) }
 0x1da   : > { %v1512_v62 = vadd.f32 %v1476_v59, %v518_v56  ;;  %v1479_v63 = vadd.f32 %v2637_v60, %v2525_v57  ;;  %v2258_v56 = vunpack.c.l.bf16 (!%p2167_p6), %v2387_v42  ;;  %v2259_v57 = vunpack.c.h.bf16 (!%p2167_p6), %v2387_v42  ;;  %v1563_v59 = vld [vmem:[#allocation2 + $0x68] sm:$0xff] (!%p2167_p6)  ;;  %v2389_v60 = vld [vmem:[%s3244_s18 + $0x30] sm:$0xff] (!%p2167_p6)   ;;  %2399 = vst [vmem:[%s3248_s14 + $0x8] sm:$0xff] (!%p2167_p6), %v2312_v50  }
 0x1db   : > { %v1602_v10 = vadd.f32 (!%p2167_p6), %v3351_v3, %v1563_v59  ;;  %v2266_v11 = vunpack.c.l.bf16 (!%p2167_p6), %v2389_v60  ;;  %v2267_v16 = vunpack.c.h.bf16 (!%p2167_p6), %v2389_v60  ;;  %v2274_v38 = vunpack.c.l.bf16 (!%p2167_p6), %v2391_v23  ;;  %v2394_v60 = vld [vmem:[%s3244_s18 + $0x58] sm:$0xff] (!%p2167_p6)  }
 0x1dc   : > { %1544 = vst [vmem:[#allocation2 + $0xf0] sm:$0xff] %v1512_v62  ;;  %v1513_v0 = vadd.f32 %v1479_v63, %v519_v61  ;;  %v1723_v61 = vmax.f32 (!%p2167_p6), %v1691_v51, 0.0  ;;  %v1724_v62 = vmax.f32 (!%p2167_p6), %v1692_v52, 0.0  ;;  %v1600_v63 = vadd.f32 (!%p2167_p6), %v3351_v3, %v1561_v48 }
 0x1dd   : > { %v1693_v1 = vadd.f32 (!%p2167_p6), %v2258_v56, %v1597_v47  ;;  %v1694_v2 = vadd.f32 (!%p2167_p6), %v2259_v57, %v1598_v53  ;;  %v1697_v20 = vadd.f32 (!%p2167_p6), %v2266_v11, %v1601_v5  ;;  %v1698_v26 = vadd.f32 (!%p2167_p6), %v2267_v16, %v1602_v10 }
 0x1de   : > { %1545 = vst [vmem:[#allocation2 + $0xf8] sm:$0xff] %v1513_v0  ;;  %v2262_v0 = vunpack.c.l.bf16 (!%p2167_p6), %v2388_v49  ;;  %v2322_v8 = vpack.c.bf16 (!%p2167_p6), %v1724_v62, %v1723_v61  ;;  %v1696_v15 = vadd.f32 (!%p2167_p6), %v2263_v4, %v1600_v63  ;;  %v1700_v40 = vadd.f32 (!%p2167_p6), %v2271_v31, %v1604_v22 }
 0x1df   : > { %v1725_v13 = vmax.f32 %v1693_v1, 0.0  ;;  %v1726_v14 = vmax.f32 %v1694_v2, 0.0  ;;  %v1729_v30 = vmax.f32 %v1697_v20, 0.0  ;;  %v1730_v36 = vmax.f32 %v1698_v26, 0.0  ;;  %v1574_v1 = vld [vmem:[#allocation2 + $0xc0] sm:$0xff]  ;;  %v1575_v2 = vld [vmem:[#allocation2 + $0xc8] sm:$0xff] }
 0x1e0   : > { %v1695_v9 = vadd.f32 %v2262_v0, %v1599_v58  ;;  %2401 = vst [vmem:[%s3248_s14 + $0x18] sm:$0xff] %v2322_v8   ;;  %v1728_v25 = vmax.f32 %v1696_v15, 0.0  ;;  %v2275_v41 = vunpack.c.h.bf16 %v2391_v23  ;;  %v1607_v42 = vadd.f32 %v3351_v3, %v1568_v28  ;;  %v2395_v8 = vld [vmem:[%s3244_s18 + $0x60] sm:$0xff]  }
 0x1e1   : > { %v2327_v24 = vpack.c.bf16 %v1726_v14, %v1725_v13  ;;  %v1608_v43 = vadd.f32 %v3351_v3, %v1569_v29  ;;  %v2337_v46 = vpack.c.bf16 %v1730_v36, %v1729_v30  ;;  %v1731_v47 = vmax.f32 %v1699_v37, 0.0  ;;  %v1576_v13 = vld [vmem:[#allocation2 + $0xd0] sm:$0xff]  ;;  %v1577_v14 = vld [vmem:[#allocation2 + $0xd8] sm:$0xff]  ;;  %v1579_v29 = vld [vmem:[#allocation2 + $0xe8] sm:$0xff] }
 0x1e2   : > { %v1727_v19 = vmax.f32 %v1695_v9, 0.0  ;;  %v1701_v48 = vadd.f32 %v2274_v38, %v1605_v32  ;;  %v2278_v49 = vunpack.c.l.bf16 %v2392_v34  ;;  %v1732_v50 = vmax.f32 %v1700_v40, 0.0  ;;  %v2397_v30 = vld [vmem:[%s3244_s18 + $0x70] sm:$0xff]  }
 0x1e3   : > { %2402 = vst [vmem:[%s3248_s14 + $0x20] sm:$0xff] %v2327_v24   ;;  %v1702_v51 = vadd.f32 %v2275_v41, %v1606_v33  ;;  %v2279_v52 = vunpack.c.h.bf16 %v2392_v34  ;;  %v1609_v53 = vadd.f32 %v3351_v3, %v1570_v39  ;;  %2404 = vst [vmem:[%s3248_s14 + $0x30] sm:$0xff] %v2337_v46   ;;  %v1610_v58 = vadd.f32 %v3351_v3, %v1571_v44  ;;  %v1578_v24 = vld [vmem:[#allocation2 + $0xe0] sm:$0xff]  ;;  %v1580_v39 = vld [vmem:[#allocation2 + $0xf0] sm:$0xff] }
 0x1e4   : > { %v2332_v35 = vpack.c.bf16 %v1728_v25, %v1727_v19  ;;  %v1733_v56 = vmax.f32 %v1701_v48, 0.0  ;;  %v1703_v57 = vadd.f32 %v2278_v49, %v1607_v42  ;;  %v2282_v59 = vunpack.c.l.bf16 %v2393_v45  ;;  %v2396_v19 = vld [vmem:[%s3244_s18 + $0x68] sm:$0xff]  }
 0x1e5   : > { %v2342_v61 = vpack.c.bf16 %v1732_v50, %v1731_v47  ;;  %v1734_v62 = vmax.f32 %v1702_v51, 0.0  ;;  %v1704_v63 = vadd.f32 %v2279_v52, %v1608_v43  ;;  %v2283_v0 = vunpack.c.h.bf16 %v2393_v45  ;;  %v1581_v40 = vld [vmem:[#allocation2 + $0xf8] sm:$0xff] }
 0x1e6   : > { %2403 = vst [vmem:[%s3248_s14 + $0x28] sm:$0xff] %v2332_v35   ;;  %v1735_v4 = vmax.f32 %v1703_v57, 0.0  ;;  %v1705_v5 = vadd.f32 %v2282_v59, %v1609_v53  ;;  %v1611_v6 = vadd.f32 %v3351_v3, %v1572_v54  ;;  %v1612_v7 = vadd.f32 %v3351_v3, %v1573_v55  ;;  %v2398_v45 = vld [vmem:[%s3244_s18 + $0x78] sm:$0xff]  }
 0x1e7   : > { %2405 = vst [vmem:[%s3248_s14 + $0x38] sm:$0xff] %v2342_v61   ;;  %v2347_v9 = vpack.c.bf16 %v1734_v62, %v1733_v56  ;;  %v1736_v10 = vmax.f32 %v1704_v63, 0.0  ;;  %v1706_v11 = vadd.f32 %v2283_v0, %v1610_v58  ;;  %v2286_v12 = vunpack.c.l.bf16 %v2394_v60 }
 0x1e8   : > { %v1737_v15 = vmax.f32 %v1705_v5, 0.0  ;;  %v2287_v16 = vunpack.c.h.bf16 %v2394_v60  ;;  %v1613_v17 = vadd.f32 %v3351_v3, %v1574_v1  ;;  %v1614_v18 = vadd.f32 %v3351_v3, %v1575_v2 }
 0x1e9   : > { %2406 = vst [vmem:[%s3248_s14 + $0x40] sm:$0xff] %v2347_v9   ;;  %v2352_v20 = vpack.c.bf16 %v1736_v10, %v1735_v4  ;;  %v1738_v21 = vmax.f32 %v1706_v11, 0.0  ;;  %v1707_v22 = vadd.f32 %v2286_v12, %v1611_v6  ;;  %v2290_v23 = vunpack.c.l.bf16 %v2395_v8 }
 0x1ea   : > { %v1708_v25 = vadd.f32 %v2287_v16, %v1612_v7  ;;  %v2291_v26 = vunpack.c.h.bf16 %v2395_v8  ;;  %v1615_v27 = vadd.f32 %v3351_v3, %v1576_v13  ;;  %v1616_v28 = vadd.f32 %v3351_v3, %v1577_v14 }
 0x1eb   : > { %2407 = vst [vmem:[%s3248_s14 + $0x48] sm:$0xff] %v2352_v20   ;;  %v2357_v31 = vpack.c.bf16 %v1738_v21, %v1737_v15  ;;  %v1739_v32 = vmax.f32 %v1707_v22, 0.0  ;;  %v1709_v33 = vadd.f32 %v2290_v23, %v1613_v17  ;;  %v2294_v34 = vunpack.c.l.bf16 %v2396_v19 }
 0x1ec   : > { %v1740_v35 = vmax.f32 %v1708_v25, 0.0  ;;  %v1710_v36 = vadd.f32 %v2291_v26, %v1614_v18  ;;  %v2295_v37 = vunpack.c.h.bf16 %v2396_v19  ;;  %v1617_v38 = vadd.f32 %v3351_v3, %v1578_v24 }
 0x1ed   : > { %2408 = vst [vmem:[%s3248_s14 + $0x50] sm:$0xff] %v2357_v31   ;;  %v1741_v41 = vmax.f32 %v1709_v33, 0.0  ;;  %v1711_v42 = vadd.f32 %v2294_v34, %v1615_v27  ;;  %v1618_v43 = vadd.f32 %v3351_v3, %v1579_v29  ;;  %v2298_v44 = vunpack.c.l.bf16 %v2397_v30 }
 0x1ee   : > { %v2362_v46 = vpack.c.bf16 %v1740_v35, %v1739_v32  ;;  %v1742_v47 = vmax.f32 %v1710_v36, 0.0  ;;  %v1712_v48 = vadd.f32 %v2295_v37, %v1616_v28  ;;  %v2299_v49 = vunpack.c.h.bf16 %v2397_v30 }
 0x1ef   : > { %v1743_v50 = vmax.f32 %v1711_v42, 0.0  ;;  %v1713_v51 = vadd.f32 %v2298_v44, %v1617_v38  ;;  %v1619_v52 = vadd.f32 %v3351_v3, %v1580_v39  ;;  %v1620_v53 = vadd.f32 %v3351_v3, %v1581_v40 }
 0x1f0   : > { %2409 = vst [vmem:[%s3248_s14 + $0x58] sm:$0xff] %v2362_v46   ;;  %v2367_v54 = vpack.c.bf16 %v1742_v47, %v1741_v41  ;;  %v1744_v55 = vmax.f32 %v1712_v48, 0.0  ;;  %v1714_v56 = vadd.f32 %v2299_v49, %v1618_v43  ;;  %v2302_v57 = vunpack.c.l.bf16 %v2398_v45 }
 0x1f1   : > { %v1745_v58 = vmax.f32 %v1713_v51, 0.0  ;;  %v2303_v59 = vunpack.c.h.bf16 %v2398_v45 }
 0x1f2   : > { %2410 = vst [vmem:[%s3248_s14 + $0x60] sm:$0xff] %v2367_v54   ;;  %v2372_v60 = vpack.c.bf16 %v1744_v55, %v1743_v50  ;;  %v1746_v61 = vmax.f32 %v1714_v56, 0.0  ;;  %v1715_v62 = vadd.f32 %v2302_v57, %v1619_v52 }
 0x1f3   : > { %v1716_v63 = vadd.f32 %v2303_v59, %v1620_v53 }
 0x1f4   : > { %2411 = vst [vmem:[%s3248_s14 + $0x68] sm:$0xff] %v2372_v60   ;;  %v2377_v0 = vpack.c.bf16 %v1746_v61, %v1745_v58  ;;  %v1747_v1 = vmax.f32 %v1715_v62, 0.0 }
 0x1f5   : > { %v1748_v2 = vmax.f32 %v1716_v63, 0.0 }
 0x1f6   : > { %2412 = vst [vmem:[%s3248_s14 + $0x70] sm:$0xff] %v2377_v0  }
 0x1f7   : > { %v2382_v3 = vpack.c.bf16 %v1748_v2, %v1747_v1 }
 0x1f9   : > { %2413 = vst [vmem:[%s3248_s14 + $0x78] sm:$0xff] %v2382_v3  }
 0x1fa PF: > { %s2239_s20 = sshll.u32 %s2954_s21, 11  ;;  %s1924_s30 = sshll.u32 %s3248_s14, 4  ;;  %s3424_s30 = int_to_ptr.vmem [resolvable:$true] %s1924_s30 }
 0x1fb   : > { %s3421_s26 = scalar_lea.hbm %s3490_s4, %s2239_s20  ;;  %s3501_s8 = sand.u32 1, %s2934_s16  }
 0x1fc   : > { %s3428_s9 = scalar_lea.sflag [#allocation5], %s3501_s8  ;;  %s2856_s6 = scalar_lea.vmem %s3424_s30, 2048 }
 0x1fd   : > { %p2857_p8 = scmp.ne.s32.totalorder %s3424_s30, %s2856_s6  ;;  %s2969_s21 = smov [#allocation4]  }
 0x1fe   : > { %s2860_s29 = sshll.u32 %s2969_s21, 4  ;;  %s2861_s29 = int_to_ptr.vmem [resolvable:$false] %s2860_s29 }
 0x1ff   : > { %p2858_p9 = pnand %p2857_p8, %p3069_p7  ;;  %s2862_s5 = scalar_lea.vmem %s2861_s29, 4096 }
 0x200   : > { %p2863_p11 = scmp.lt.s32.totalorder %s3424_s30, %s2861_s29  ;;  %p2864_p13 = scmp.lt.s32.totalorder %s2862_s5, %s2856_s6 }
 0x201   : > { %p2859_p10 = pneg %p2858_p9 }
 0x202   : > { %p2865_p0 = por %p2864_p13, %p2863_p11 }
 0x204   : > { %p2866_p1 = pnand %p2865_p0, %p2859_p10 }
 0x206   : > { %2869 = shalt.err (!%p2866_p1)
}
 0x207   : > { %s2870_s14 = scalar_lea.hbm %s3421_s26, 2048  ;;  %s2874_s0 = scalar_lea.hbm %s3490_s4, 32768 }
 0x208   : > { %p2871_p2 = scmp.ne.s32.totalorder %s3421_s26, %s2870_s14  ;;  %p2875_p5 = scmp.lt.u32.totalorder %s3421_s26, %s3490_s4 }
 0x209   : > { %p2876_p6 = scmp.lt.u32.totalorder %s2874_s0, %s2870_s14  ;;  %p2878_p9 = scmp.lt.u32.totalorder %s2870_s14, %s3421_s26 }
 0x20a   : > { %p2872_p3 = pnand %p2871_p2, %p3069_p7 }
 0x20b   : > { %p2877_p8 = por %p2876_p6, %p2875_p5 }
 0x20c   : > { %p2873_p4 = pneg %p2872_p3 }
 0x20d   : > { %p2879_p10 = por %p2878_p9, %p2877_p8 }
 0x20f   : > { %p2880_p11 = pnand %p2879_p10, %p2873_p4 }
 0x211   : > { %2883 = shalt.err (!%p2880_p11)
}
 0x212   : > { %s2970_s28 = smov 64   ;;  %s2971_s25 = smov 4  }
 0x213   : > { %2638 = dma.vmem_to_hbm [thread:$0]  (%p3069_p7), %s3424_s30, 2048, %s3421_s26, %s3428_s9, %s2970_s28, %s2970_s28, %s2971_s25  }
 0x214 PF: > { %p2644_p13 = scmp.ge.s32.totalorder %s2966_s24, 2  ;;  %s1939_s8 = sand.u32 1, %s2930_s15  }
 0x215   : > { %s1940_s6 = scalar_lea.sflag [#allocation5], %s1939_s8 }
 0x216   : > { %p2641_p0 = pnand %p2644_p13, %p3077_p12 }
 0x218   : > { %2925 = dma.done.wait (!%p2641_p0), %s1940_s6, 2048  }
 0x219   : > { %2927 = vsyncadd (!%p2641_p0), %s1940_s6, 4294965248  ;;  %s17_s24 = sadd.s32 1, %s2966_s24   ;;  %s3502_s7 = sld [smem:[#allocation7_spill]] }
 0x21a   : > { %p14_p1 = scmp.ge.s32.totalorder %s17_s24, 34   ;;  %s3503_s26 = sld [smem:[#allocation8_spill]] }
 0x21b   : > { %s3504_s15 = smov %s2934_s16  ;;  %s3505_s16 = smov %s2938_s17 }
 0x21c   : > { %s3506_s17 = smov %s3082_s11  ;;  %s3507_s18 = smov %s2946_s19 }
 0x21d   : > { %s3508_s19 = smov %s3085_s12  ;;  %s3509_s20 = smov %s2958_s22 }
 0x21e   : > { %s3510_s21 = smov %s2962_s23  ;;  %16 = sbr.rel (!%p14_p1) target bundleno = 8 (0x8), region = 116 }
 0x21f   : > { %s3511_s22 = smov %s3502_s7 }
 0x220   : > { %s3512_s23 = smov %s3503_s26 }
 0x225   :  { %1945 = vsyncpa [#allocation5], 1 }
 0x226   :  { %1947 = vsyncpa [#allocation5 + $0x1], 1 }

</bundles_post_ra>
